<compile_context>
chip_gen: v7x
topology: tpu7x:2x2x1
jax: 0.10.0
libtpu: 0.0.40
codegen_flags: <defaults>
</compile_context>

<pallas_src>
import math
from functools import partial

import jax
import jax.numpy as jnp
from jax.experimental import pallas as pl
from jax.experimental.pallas import tpu as pltpu


# Packed-row tile cap.  Sized so the double-buffered VMEM footprint of both
# problems stays ~11 MiB (under the 16 MiB scoped-VMEM default on v5e), while
# each step still writes >= 2 MiB per output (past the ~85%-of-roofline knee).
_TILE_PACKED_ROWS = 1024


def _round_up(x, m):
    return -(-x // m) * m


def _pack_factor(q, d):
    """Rows-per-packed-row r: fold r consecutive output rows into one lane row.

    Choose r so that r*d is a multiple of 128 (unmasked full-lane vst) and,
    when cheap, r*q is also a multiple of 128 (lane-dense A, K=128 MXU
    contraction).  Falls back to r=1 (correct, masked stores) otherwise.
    """
    if d % 128 == 0:
        return 1                                   # output already lane-dense
    if 128 % d != 0:
        return 1   # TODO(synk): masked-store fallback for D that doesn't divide 128
    r_store = 128 // d                             # r*d == 128
    r_lane = 128 // math.gcd(128, q)               # r*q multiple of 128
    r = r_store * r_lane // math.gcd(r_store, r_lane)   # lcm
    if r * q > 1024 or r * d > 2048:               # keep packed K/N modest
        r = r_store
    return r


def pack_structure_maps(user_map, item_map):
    """Block-diagonal (lane-dense) packing of the (q, D) map parameters.

    Depends only on the parameters: call once per weight update in a training
    loop and reuse via structure_forward_packed().  structure_forward() calls
    this internally for convenience.
    """
    q, d = user_map.shape
    r = _pack_factor(q, d)
    if r == 1:
        return user_map, item_map
    eye = jnp.eye(r, dtype=user_map.dtype)
    return jnp.kron(eye, user_map), jnp.kron(eye, item_map)


def _pack_rows(a, r):
    """(M, q) -> (ceil(M/r), r*q): fold r consecutive rows (free, row-major)."""
    m, _ = a.shape
    m_pad = _round_up(m, r)
    if m_pad != m:
        a = jnp.pad(a, ((0, m_pad - m), (0, 0)))
    return a.reshape(m_pad // r, -1) if r > 1 else a


def _fused_structure_kernel(au_ref, bu_ref, ai_ref, bi_ref, ou_ref, oi_ref):
    # One grid step emits one lane-dense row tile of BOTH outputs.
    # HIGHEST precision keeps f32 parity with the PyTorch f32 matmul; the
    # kernel is HBM-write bound, so the extra MXU passes are free.
    ou_ref[...] = jnp.dot(
        au_ref[...], bu_ref[...],
        preferred_element_type=jnp.float32,
        precision=jax.lax.Precision.HIGHEST,
    ).astype(ou_ref.dtype)
    oi_ref[...] = jnp.dot(
        ai_ref[...], bi_ref[...],
        preferred_element_type=jnp.float32,
        precision=jax.lax.Precision.HIGHEST,
    ).astype(oi_ref.dtype)


@partial(jax.jit, static_argnames=("embedding_dim",))
def structure_forward_packed(u_mul_s, v_mul_s, packed_user_map, packed_item_map,
                             *, embedding_dim):
    """Forward pass given pre-packed maps (see pack_structure_maps)."""
    d = embedding_dim
    mu = u_mul_s.shape[0]
    mi = v_mul_s.shape[0]
    ku, nu = packed_user_map.shape
    ki, ni = packed_item_map.shape
    r = nu // d                                    # packing factor baked into B

    au = _pack_rows(u_mul_s, r)
    ai = _pack_rows(v_mul_s, r)

    # Grid policy: one step unless a tile genuinely can't hold all rows; when
    # splitting, use an EVEN tile count so a 2-TC chip (v7x) stays balanced.
    max_rows = max(au.shape[0], ai.shape[0])
    n_tiles = pl.cdiv(max_rows, _TILE_PACKED_ROWS)
    if n_tiles > 1 and n_tiles % 2 == 1:
        n_tiles += 1

    def pad_rows(x):
        rows_pad = _round_up(x.shape[0], 8 * n_tiles)   # f32 sublane multiple per tile
        if rows_pad != x.shape[0]:
            x = jnp.pad(x, ((0, rows_pad - x.shape[0]), (0, 0)))
        return x

    au = pad_rows(au)
    ai = pad_rows(ai)
    tu = au.shape[0] // n_tiles
    ti = ai.shape[0] // n_tiles

    q = ku // r
    flops = 2 * q * d * (mu + mi)
    bytes_accessed = 4 * (au.size + packed_user_map.size + ai.size
                          + packed_item_map.size
                          + au.shape[0] * nu + ai.shape[0] * ni)

    ou_p, oi_p = pl.pallas_call(
        _fused_structure_kernel,
        out_shape=(
            jax.ShapeDtypeStruct((au.shape[0], nu), u_mul_s.dtype),
            jax.ShapeDtypeStruct((ai.shape[0], ni), v_mul_s.dtype),
        ),
        grid_spec=pltpu.PrefetchScalarGridSpec(
            num_scalar_prefetch=0,
            grid=(n_tiles,),
            in_specs=[
                pl.BlockSpec((tu, ku), lambda i: (i, 0)),
                pl.BlockSpec((ku, nu), lambda i: (0, 0)),   # constant block: DMA deduped
                pl.BlockSpec((ti, ki), lambda i: (i, 0)),
                pl.BlockSpec((ki, ni), lambda i: (0, 0)),   # constant block: DMA deduped
            ],
            out_specs=(
                pl.BlockSpec((tu, nu), lambda i: (i, 0)),
                pl.BlockSpec((ti, ni), lambda i: (i, 0)),
            ),
        ),
        compiler_params=pltpu.CompilerParams(
            dimension_semantics=("parallel",) if n_tiles > 1 else ("arbitrary",),
            vmem_limit_bytes=32 * 1024 * 1024,
        ),
        cost_estimate=pl.CostEstimate(
            flops=flops, transcendentals=0, bytes_accessed=bytes_accessed
        ),
    )(au, packed_user_map, ai, packed_item_map)

    # Unpack lane-dense outputs back to (M, D) and drop padding rows (free views).
    users_structure = ou_p.reshape(-1, d)[:mu]
    items_structure = oi_p.reshape(-1, d)[:mi]
    return users_structure, items_structure


@jax.jit
def structure_forward(u_mul_s, v_mul_s, user_map, item_map):
    """Pallas equivalent of Structure.forward() -- one fused kernel launch."""
    bu, bi = pack_structure_maps(user_map, item_map)
    return structure_forward_packed(
        u_mul_s, v_mul_s, bu, bi, embedding_dim=user_map.shape[1]
    )


if __name__ == "__main__":
    # Small synthetic shapes consistent with the module:
    #   num_users=128, num_items=256, q=8 (SVD rank), embedding_dim=32
    num_users, num_items, q, embedding_dim = 128, 256, 8, 32

    key = jax.random.PRNGKey(0)
    k_u, k_v, k_um, k_im = jax.random.split(key, 4)

    # dataset.U_mul_S / dataset.V_mul_S stand-ins (SVD factors * singular values)
    U_mul_S = jax.random.normal(k_u, (num_users, q), dtype=jnp.float32)
    V_mul_S = jax.random.normal(k_v, (num_items, q), dtype=jnp.float32)

    # Parameter init mirrors init_weight(): uniform(-stdv, stdv), stdv = 1/sqrt(D)
    stdv = 1.0 / math.sqrt(embedding_dim)
    user_map = jax.random.uniform(
        k_um, (q, embedding_dim), minval=-stdv, maxval=stdv, dtype=jnp.float32
    )
    item_map = jax.random.uniform(
        k_im, (q, embedding_dim), minval=-stdv, maxval=stdv, dtype=jnp.float32
    )

    users_structure, items_structure = structure_forward(
        U_mul_S, V_mul_S, user_map, item_map
    )
    jax.block_until_ready((users_structure, items_structure))

    # Correctness check against a full-precision JAX reference.
    hi = jax.lax.Precision.HIGHEST
    ref_users = jnp.dot(U_mul_S, user_map, precision=hi)
    ref_items = jnp.dot(V_mul_S, item_map, precision=hi)
    assert users_structure.shape == (num_users, embedding_dim)
    assert items_structure.shape == (num_items, embedding_dim)
    assert jnp.allclose(users_structure, ref_users, atol=1e-5, rtol=1e-5)
    assert jnp.allclose(items_structure, ref_items, atol=1e-5, rtol=1e-5)

    # Ragged row counts (not multiples of the packing factor) exercise pad/unpack.
    us2, is2 = structure_forward(U_mul_S[:100], V_mul_S[:250], user_map, item_map)
    jax.block_until_ready((us2, is2))
    assert us2.shape == (100, embedding_dim)
    assert is2.shape == (250, embedding_dim)
    assert jnp.allclose(us2, ref_users[:100], atol=1e-5, rtol=1e-5)
    assert jnp.allclose(is2, ref_items[:250], atol=1e-5, rtol=1e-5)

    # TODO(synk): Structure.computer() needs scipy sparse subtraction + torch.svd_lowrank
    # (data-dependent sparse SVD); no clean Pallas equivalent, so only forward() is implemented.
    print("KERNEL_OK")
</pallas_src>

<mosaic_0001>
module attributes {stable_mosaic.version = 11 : i64} {
  func.func @_fused_structure_kernel(%arg0: i32, %arg1: memref<8x128xf32, #tpu.memory_space<vmem>>, %arg2: memref<128x512xf32, #tpu.memory_space<vmem>>, %arg3: memref<16x128xf32, #tpu.memory_space<vmem>>, %arg4: memref<128x512xf32, #tpu.memory_space<vmem>>, %arg5: memref<8x512xf32, #tpu.memory_space<vmem>>, %arg6: memref<16x512xf32, #tpu.memory_space<vmem>>) attributes {dimension_semantics = [#tpu.dimension_semantics<arbitrary>], iteration_bounds = array<i64: 1>, scalar_prefetch = 0 : i64, scratch_operands = 0 : i64, tpu.core_type = #tpu.core_type<tc>, window_params = [{transform_indices = @transform_0, window_bounds = array<i64: 8, 128>}, {pipeline_mode = #tpu.pipeline_mode<synchronous>, transform_indices = @transform_1, window_bounds = array<i64: 128, 512>}, {transform_indices = @transform_2, window_bounds = array<i64: 16, 128>}, {pipeline_mode = #tpu.pipeline_mode<synchronous>, transform_indices = @transform_3, window_bounds = array<i64: 128, 512>}, {transform_indices = @transform_4, window_bounds = array<i64: 8, 512>}, {transform_indices = @transform_5, window_bounds = array<i64: 16, 512>}]} {
    %c0 = arith.constant 0 : index
    %c0_0 = arith.constant 0 : index
    %0 = vector.load %arg1[%c0, %c0_0] : memref<8x128xf32, #tpu.memory_space<vmem>>, vector<8x128xf32>
    %c0_1 = arith.constant 0 : index
    %c0_2 = arith.constant 0 : index
    %1 = vector.load %arg2[%c0_1, %c0_2] : memref<128x512xf32, #tpu.memory_space<vmem>>, vector<128x512xf32>
    %cst = arith.constant dense<0.000000e+00> : vector<8x512xf32>
    %2 = tpu.matmul %0, %1, %cst {dimension_numbers = #tpu.dot_dimension_numbers<[1], [0], [0], [1], [0, 0, 1, 1], [], []>, precision = #tpu.contract_precision<fp32>} : vector<8x128xf32>, vector<128x512xf32>, vector<8x512xf32> -> vector<8x512xf32>
    %c0_3 = arith.constant 0 : index
    %c0_4 = arith.constant 0 : index
    %3 = vector.load %arg5[%c0_3, %c0_4] : memref<8x512xf32, #tpu.memory_space<vmem>>, vector<8x512xf32>
    tpu.vector_store %arg5[%c0_3, %c0_4], %2 {strides = array<i32>} : memref<8x512xf32, #tpu.memory_space<vmem>>, vector<8x512xf32>,
    %c0_5 = arith.constant 0 : index
    %c0_6 = arith.constant 0 : index
    %4 = vector.load %arg3[%c0_5, %c0_6] : memref<16x128xf32, #tpu.memory_space<vmem>>, vector<16x128xf32>
    %c0_7 = arith.constant 0 : index
    %c0_8 = arith.constant 0 : index
    %5 = vector.load %arg4[%c0_7, %c0_8] : memref<128x512xf32, #tpu.memory_space<vmem>>, vector<128x512xf32>
    %cst_9 = arith.constant dense<0.000000e+00> : vector<16x512xf32>
    %6 = tpu.matmul %4, %5, %cst_9 {dimension_numbers = #tpu.dot_dimension_numbers<[1], [0], [0], [1], [0, 0, 1, 1], [], []>, precision = #tpu.contract_precision<fp32>} : vector<16x128xf32>, vector<128x512xf32>, vector<16x512xf32> -> vector<16x512xf32>
    %c0_10 = arith.constant 0 : index
    %c0_11 = arith.constant 0 : index
    %7 = vector.load %arg6[%c0_10, %c0_11] : memref<16x512xf32, #tpu.memory_space<vmem>>, vector<16x512xf32>
    tpu.vector_store %arg6[%c0_10, %c0_11], %6 {strides = array<i32>} : memref<16x512xf32, #tpu.memory_space<vmem>>, vector<16x512xf32>,
    return
  }
  func.func @transform_0(%arg0: i32) -> (i32, i32) {
    %c0_i32 = arith.constant 0 : i32
    %c0_i32_0 = arith.constant 0 : i32
    return %arg0, %c0_i32 : i32, i32
  }
  func.func @transform_1(%arg0: i32) -> (i32, i32) {
    %c0_i32 = arith.constant 0 : i32
    %c0_i32_0 = arith.constant 0 : i32
    %c0_i32_1 = arith.constant 0 : i32
    return %c0_i32, %c0_i32_0 : i32, i32
  }
  func.func @transform_2(%arg0: i32) -> (i32, i32) {
    %c0_i32 = arith.constant 0 : i32
    %c0_i32_0 = arith.constant 0 : i32
    return %arg0, %c0_i32 : i32, i32
  }
  func.func @transform_3(%arg0: i32) -> (i32, i32) {
    %c0_i32 = arith.constant 0 : i32
    %c0_i32_0 = arith.constant 0 : i32
    %c0_i32_1 = arith.constant 0 : i32
    return %c0_i32, %c0_i32_0 : i32, i32
  }
  func.func @transform_4(%arg0: i32) -> (i32, i32) {
    %c0_i32 = arith.constant 0 : i32
    %c0_i32_0 = arith.constant 0 : i32
    return %arg0, %c0_i32 : i32, i32
  }
  func.func @transform_5(%arg0: i32) -> (i32, i32) {
    %c0_i32 = arith.constant 0 : i32
    %c0_i32_0 = arith.constant 0 : i32
    return %arg0, %c0_i32 : i32, i32
  }
}

</mosaic_0001>

<bundles_post_ra>
// kernel: structure_forward_packed.1
= control target key start
LH: loop header
LB: loop body
LE: loop exit
PB: predicated region body
PF: predicated region fallthrough
CT: control target
= control target key end

     0   :  { %11 = vsyncpa [#allocation3], 0  ;;  %s4559_s18 = smov [#allocation2]   ;;  %s6651_s0 = inlined_call_operand.vmem [shape: f32[8,128], index: 0, kind: input, shape index: {}]   ;;  %s6652_s1 = inlined_call_operand.vmem [shape: f32[128,512], index: 1, kind: input, shape index: {}]   ;;  %s6653_s2 = inlined_call_operand.vmem [shape: f32[16,128], index: 2, kind: input, shape index: {}]   ;;  %s6654_s3 = inlined_call_operand.hbm [shape: f32[128,512], index: 3, kind: input, shape index: {}]   ;;  %s6655_s4 = inlined_call_operand.vmem [shape: f32[8,512], index: 4, kind: output, shape index: {0}]   ;;  %s6656_s5 = inlined_call_operand.vmem [shape: f32[16,512], index: 5, kind: output, shape index: {1}]  }
   0x1   :  { %s23_s19 = sshll.u32 %s4559_s18, 4  ;;  %s4535_s22 = scalar_lea.hbm %s6654_s3, 8192  ;;  %s24_s19 = int_to_ptr.vmem [resolvable:$true] %s23_s19 }
   0x2   :  { %p4536_p0 = scmp.ne.s32.totalorder %s6654_s3, %s4535_s22  ;;  %p4539_p1 = scmp.lt.u32.totalorder %s4535_s22, %s6654_s3 }
   0x4   :  { %p4541_p2 = pnand %p4539_p1, %p4536_p0 }
   0x6   :  { %4544 = shalt.err (!%p4541_p2)
}
   0x7   :  { %s4545_s27 = scalar_lea.vmem %s24_s19, 8192  ;;  %p4550_p4 = scmp.lt.s32.totalorder %s24_s19, %s24_s19 }
   0x8   :  { %p4546_p3 = scmp.ne.s32.totalorder %s24_s19, %s4545_s27  ;;  %p4551_p5 = scmp.lt.s32.totalorder %s4545_s27, %s4545_s27 }
   0xa   :  { %p4552_p6 = por %p4551_p5, %p4550_p4 }
   0xc   :  { %p4553_p7 = pnand %p4552_p6, %p4546_p3 }
   0xe   :  { %4556 = shalt.err (!%p4553_p7)
}
   0xf   :  { %s4560_s28 = smov 512   ;;  %s4561_s29 = smov 32  }
  0x10   :  { %29 = dma.hbm_to_vmem [thread:$0]  %s6654_s3, 8192, %s24_s19, [#allocation3], %s4560_s28, %s4560_s28, %s4561_s29  }
  0x11   :  { %4557 = dma.done.wait [#allocation3], 8192  }
  0x12   :  { %4558 = vsyncadd [#allocation3], 4294959104  ;;  %v6657_v0 = vmov 0.0   ;;  %v35_v1 = vld [vmem:[%s6652_s1 + $0x8] sm:$0xff]  ;;  %v37_v3 = vld [vmem:[%s6652_s1 + $0x18] sm:$0xff] }
  0x13   :  { %194 = vmatprep.mubr.f32.mxu0 %v6657_v0  ;;  %1049 = vmatprep.mubr.f32.mxu1 %v6657_v0  ;;  %v39_v2 = vld [vmem:[%s6652_s1 + $0x28] sm:$0xff]  ;;  %v98_v4 = vand.u32 4294901760, %v35_v1  ;;  %v41_v6 = vld [vmem:[%s6652_s1 + $0x38] sm:$0xff]  ;;  %v953_v7 = vand.u32 4294901760, %v37_v3  ;;  %v34_v8 = vld [vmem:[%s6652_s1] sm:$0xff] }
  0x14   :  { %v102_v5 = vand.u32 4294901760, %v39_v2  ;;  %v38_v9 = vld [vmem:[%s6652_s1 + $0x20] sm:$0xff]  ;;  %v957_v10 = vand.u32 4294901760, %v41_v6  ;;  %v100_v11 = vand.u32 4294901760, %v34_v8  ;;  %v36_v13 = vld [vmem:[%s6652_s1 + $0x10] sm:$0xff]  ;;  %v43_v15 = vld [vmem:[%s6652_s1 + $0x48] sm:$0xff] }
  0x15   :  { %v104_v12 = vand.u32 4294901760, %v38_v9  ;;  %v40_v14 = vld [vmem:[%s6652_s1 + $0x30] sm:$0xff]  ;;  %v4636_v17 = vsub.f32 %v35_v1, %v98_v4  ;;  %v4640_v19 = vsub.f32 %v37_v3, %v953_v7  ;;  %v47_v20 = vld [vmem:[%s6652_s1 + $0x68] sm:$0xff]  ;;  %v45_v21 = vld [vmem:[%s6652_s1 + $0x58] sm:$0xff]  ;;  %v955_v29 = vand.u32 4294901760, %v36_v13 }
  0x16   :  { %v4634_v16 = vpack.c.bf16 %v102_v5, %v98_v4  ;;  %v4638_v18 = vsub.f32 %v39_v2, %v102_v5  ;;  %v49_v22 = vld [vmem:[%s6652_s1 + $0x78] sm:$0xff]  ;;  %v4651_v23 = vpack.c.bf16 %v957_v10, %v953_v7  ;;  %v4653_v24 = vsub.f32 %v41_v6, %v957_v10  ;;  %v42_v27 = vld [vmem:[%s6652_s1 + $0x40] sm:$0xff]  ;;  %v44_v37 = vld [vmem:[%s6652_s1 + $0x50] sm:$0xff] }
  0x17   :  { %6991 = vst [vmem:[#allocation6_spill] sm:$0xff] %v4636_v17  ;;  %6993 = vst [vmem:[#allocation8_spill] sm:$0xff] %v4640_v19  ;;  %v4655_v25 = vpack.c.bf16 %v104_v12, %v100_v11  ;;  %v4657_v26 = vsub.f32 %v34_v8, %v100_v11  ;;  %v4663_v28 = vsub.f32 %v38_v9, %v104_v12  ;;  %v959_v30 = vand.u32 4294901760, %v40_v14  ;;  %v46_v32 = vld [vmem:[%s6652_s1 + $0x60] sm:$0xff]  ;;  %v48_v38 = vld [vmem:[%s6652_s1 + $0x70] sm:$0xff] }
  0x18   :  { %6990 = vst [vmem:[#allocation5_spill] sm:$0xff] %v4634_v16  ;;  %6992 = vst [vmem:[#allocation7_spill] sm:$0xff] %v4638_v18  ;;  %3704 = vmatprep.subr.bf16.mxu0 %v4634_v16  ;;  %v106_v31 = vand.u32 4294901760, %v43_v15  ;;  %3896 = vmatprep.subr.bf16.mxu1 %v4651_v23  ;;  %v110_v33 = vand.u32 4294901760, %v47_v20  ;;  %v961_v34 = vand.u32 4294901760, %v45_v21  ;;  %v965_v35 = vand.u32 4294901760, %v49_v22 }
  0x19   :  { %6994 = vst [vmem:[#allocation9_spill] sm:$0xff] %v4651_v23  ;;  %6995 = vst [vmem:[#allocation10_spill] sm:$0xff] %v4653_v24  ;;  %3706 = vmatpush1.bf16.msra.mxu0 %v4655_v25  ;;  %v108_v36 = vand.u32 4294901760, %v42_v27  ;;  %v4676_v39 = vpack.c.bf16 %v959_v30, %v955_v29  ;;  %v4678_v40 = vsub.f32 %v36_v13, %v955_v29  ;;  %v51_v43 = vld [vmem:[%s6652_s1 + $0x88] sm:$0xff]  ;;  %v53_v45 = vld [vmem:[%s6652_s1 + $0x98] sm:$0xff]  ;;  %v112_v52 = vand.u32 4294901760, %v46_v32 }
  0x1a   :  { %6996 = vst [vmem:[#allocation11_spill] sm:$0xff] %v4655_v25  ;;  %6997 = vst [vmem:[#allocation12_spill] sm:$0xff] %v4663_v28  ;;  %v4680_v41 = vsub.f32 %v40_v14, %v959_v30  ;;  %v4682_v42 = vsub.f32 %v43_v15, %v106_v31  ;;  %v55_v44 = vld [vmem:[%s6652_s1 + $0xa8] sm:$0xff]  ;;  %v4693_v46 = vpack.c.bf16 %v110_v33, %v106_v31  ;;  %v57_v50 = vld [vmem:[%s6652_s1 + $0xb8] sm:$0xff]  ;;  %v963_v54 = vand.u32 4294901760, %v44_v37 }
  0x1b   :  { %6998 = vst [vmem:[#allocation13_spill] sm:$0xff] %v4676_v39  ;;  %v4695_v47 = vsub.f32 %v47_v20, %v110_v33  ;;  %v4697_v48 = vpack.c.bf16 %v965_v35, %v961_v34  ;;  %v4699_v49 = vsub.f32 %v45_v21, %v961_v34  ;;  %3898 = vmatpush1.bf16.msra.mxu1 %v4676_v39  ;;  %v967_v55 = vand.u32 4294901760, %v48_v38  ;;  %v50_v59 = vld [vmem:[%s6652_s1 + $0x80] sm:$0xff]  ;;  %v52_v2 = vld [vmem:[%s6652_s1 + $0x90] sm:$0xff]  ;;  %v59_v4 = vld [vmem:[%s6652_s1 + $0xc8] sm:$0xff] }
  0x1c   :  { %6999 = vst [vmem:[#allocation14_spill] sm:$0xff] %v4693_v46  ;;  %v4705_v51 = vsub.f32 %v49_v22, %v965_v35  ;;  %v4707_v53 = vsub.f32 %v42_v27, %v108_v36  ;;  %3708 = vmatprep.subr.bf16.mxu0 %v4693_v46  ;;  %v114_v56 = vand.u32 4294901760, %v51_v43  ;;  %v118_v57 = vand.u32 4294901760, %v55_v44  ;;  %v54_v60 = vld [vmem:[%s6652_s1 + $0xa0] sm:$0xff]  ;;  %v56_v3 = vld [vmem:[%s6652_s1 + $0xb0] sm:$0xff]  ;;  %v63_v9 = vld [vmem:[%s6652_s1 + $0xe8] sm:$0xff] }
  0x1d   :  { %7000 = vst [vmem:[#allocation15_spill] sm:$0xff] %v4697_v48  ;;  %3900 = vmatprep.subr.bf16.mxu1 %v4697_v48  ;;  %v969_v58 = vand.u32 4294901760, %v53_v45  ;;  %v4717_v61 = vpack.c.bf16 %v112_v52, %v108_v36  ;;  %v4719_v62 = vsub.f32 %v46_v32, %v112_v52  ;;  %v4721_v63 = vsub.f32 %v44_v37, %v963_v54  ;;  %v61_v10 = vld [vmem:[%s6652_s1 + $0xd8] sm:$0xff]  ;;  %v58_v33 = vld [vmem:[%s6652_s1 + $0xc0] sm:$0xff]  ;;  %v76_v48 = vld [vmem:[%s6652_s1 + $0x150] sm:$0xff] }
  0x1e   :  { %v973_v1 = vand.u32 4294901760, %v57_v50  ;;  %v4732_v5 = vpack.c.bf16 %v967_v55, %v963_v54  ;;  %v4734_v6 = vsub.f32 %v48_v38, %v967_v55  ;;  %v4736_v7 = vpack.c.bf16 %v118_v57, %v114_v56  ;;  %v65_v11 = vld [vmem:[%s6652_s1 + $0xf8] sm:$0xff]  ;;  %v62_v38 = vld [vmem:[%s6652_s1 + $0xe0] sm:$0xff]  ;;  %v67_v55 = vld [vmem:[%s6652_s1 + $0x108] sm:$0xff] }
  0x1f   :  { %7001 = vst [vmem:[#allocation16_spill] sm:$0xff] %v4717_v61  ;;  %v4738_v8 = vsub.f32 %v51_v43, %v114_v56  ;;  %3710 = vmatpush1.bf16.msra.mxu0 %v4717_v61  ;;  %v4750_v12 = vsub.f32 %v55_v44, %v118_v57  ;;  %v4754_v14 = vsub.f32 %v53_v45, %v969_v58  ;;  %v116_v20 = vand.u32 4294901760, %v50_v59  ;;  %v60_v43 = vld [vmem:[%s6652_s1 + $0xd0] sm:$0xff]  ;;  %v71_v56 = vld [vmem:[%s6652_s1 + $0x128] sm:$0xff]  ;;  %v69_v57 = vld [vmem:[%s6652_s1 + $0x118] sm:$0xff] }
  0x20   :  { %7002 = vst [vmem:[#allocation17_spill] sm:$0xff] %v4732_v5  ;;  %7003 = vst [vmem:[#allocation18_spill] sm:$0xff] %v4736_v7  ;;  %v4752_v13 = vpack.c.bf16 %v973_v1, %v969_v58  ;;  %v4756_v15 = vsub.f32 %v57_v50, %v973_v1  ;;  %3902 = vmatpush1.bf16.msra.mxu1 %v4732_v5  ;;  %3712 = vmatprep.subr.bf16.mxu0 %v4736_v7  ;;  %v120_v21 = vand.u32 4294901760, %v54_v60  ;;  %v64_v44 = vld [vmem:[%s6652_s1 + $0xf0] sm:$0xff]  ;;  %v83_v39 = vld [vmem:[%s6652_s1 + $0x188] sm:$0xff] }
  0x21   :  { %v971_v22 = vand.u32 4294901760, %v52_v2  ;;  %v975_v27 = vand.u32 4294901760, %v56_v3  ;;  %v122_v29 = vand.u32 4294901760, %v59_v4  ;;  %v126_v30 = vand.u32 4294901760, %v63_v9  ;;  %v87_v46 = vld [vmem:[%s6652_s1 + $0x1a8] sm:$0xff] }
  0x22   :  { %7004 = vst [vmem:[#allocation19_spill] sm:$0xff] %v4752_v13  ;;  %3904 = vmatprep.subr.bf16.mxu1 %v4752_v13  ;;  %v977_v31 = vand.u32 4294901760, %v61_v10  ;;  %v981_v32 = vand.u32 4294901760, %v65_v11  ;;  %v4764_v34 = vpack.c.bf16 %v120_v21, %v116_v20  ;;  %v4766_v35 = vsub.f32 %v50_v59, %v116_v20 }
  0x23   :  { %v4768_v36 = vsub.f32 %v54_v60, %v120_v21  ;;  %v4770_v37 = vpack.c.bf16 %v975_v27, %v971_v22  ;;  %v4781_v45 = vsub.f32 %v52_v2, %v971_v22  ;;  %v4783_v50 = vsub.f32 %v56_v3, %v975_v27  ;;  %v73_v21 = vld [vmem:[%s6652_s1 + $0x138] sm:$0xff] }
  0x24   :  { %7005 = vst [vmem:[#allocation20_spill] sm:$0xff] %v4764_v34  ;;  %v4785_v52 = vpack.c.bf16 %v126_v30, %v122_v29  ;;  %v4787_v54 = vsub.f32 %v59_v4, %v122_v29  ;;  %3714 = vmatpush1.bf16.msra.mxu0 %v4764_v34  ;;  %v4800_v58 = vsub.f32 %v63_v9, %v126_v30  ;;  %v124_v1 = vand.u32 4294901760, %v58_v33  ;;  %v66_v29 = vld [vmem:[%s6652_s1 + $0x100] sm:$0xff]  ;;  %v68_v30 = vld [vmem:[%s6652_s1 + $0x110] sm:$0xff] }
  0x25   :  { %7006 = vst [vmem:[#allocation21_spill] sm:$0xff] %v4770_v37  ;;  %3906 = vmatpush1.bf16.msra.mxu1 %v4770_v37  ;;  %v4802_v59 = vpack.c.bf16 %v981_v32, %v977_v31  ;;  %v4804_v60 = vsub.f32 %v61_v10, %v977_v31  ;;  %v4807_v2 = vsub.f32 %v65_v11, %v981_v32  ;;  %v128_v3 = vand.u32 4294901760, %v62_v38  ;;  %v70_v11 = vld [vmem:[%s6652_s1 + $0x120] sm:$0xff]  ;;  %v75_v37 = vld [vmem:[%s6652_s1 + $0x148] sm:$0xff] }
  0x26   :  { %7007 = vst [vmem:[#allocation22_spill] sm:$0xff] %v4785_v52  ;;  %3716 = vmatprep.subr.bf16.mxu0 %v4785_v52  ;;  %v979_v4 = vand.u32 4294901760, %v60_v43  ;;  %v983_v20 = vand.u32 4294901760, %v64_v44  ;;  %v4813_v9 = vsub.f32 %v58_v33, %v124_v1  ;;  %v130_v22 = vand.u32 4294901760, %v67_v55  ;;  %v79_v52 = vld [vmem:[%s6652_s1 + $0x168] sm:$0xff] }
  0x27   :  { %7008 = vst [vmem:[#allocation23_spill] sm:$0xff] %v4802_v59  ;;  %3908 = vmatprep.subr.bf16.mxu1 %v4802_v59  ;;  %v134_v27 = vand.u32 4294901760, %v71_v56  ;;  %v985_v10 = vand.u32 4294901760, %v69_v57  ;;  %v4824_v31 = vpack.c.bf16 %v128_v3, %v124_v1  ;;  %v4826_v32 = vsub.f32 %v62_v38, %v128_v3  ;;  %v72_v59 = vld [vmem:[%s6652_s1 + $0x130] sm:$0xff] }
  0x28   :  { %v4828_v33 = vpack.c.bf16 %v983_v20, %v979_v4  ;;  %v4830_v0 = vsub.f32 %v60_v43, %v979_v4  ;;  %v4841_v1 = vsub.f32 %v64_v44, %v983_v20  ;;  %v4845_v3 = vsub.f32 %v67_v55, %v130_v22  ;;  %v77_v55 = vld [vmem:[%s6652_s1 + $0x158] sm:$0xff] }
  0x29   :  { %7009 = vst [vmem:[#allocation24_spill] sm:$0xff] %v4824_v31  ;;  %v4843_v38 = vpack.c.bf16 %v134_v27, %v130_v22  ;;  %v4847_v43 = vsub.f32 %v71_v56, %v134_v27  ;;  %3718 = vmatpush1.bf16.msra.mxu0 %v4824_v31  ;;  %v989_v4 = vand.u32 4294901760, %v73_v21  ;;  %v4851_v34 = vsub.f32 %v69_v57, %v985_v10  ;;  %v81_v56 = vld [vmem:[%s6652_s1 + $0x178] sm:$0xff]  ;;  %v78_v31 = vld [vmem:[%s6652_s1 + $0x160] sm:$0xff] }
  0x2a   :  { %7010 = vst [vmem:[#allocation25_spill] sm:$0xff] %v4828_v33  ;;  %3910 = vmatpush1.bf16.msra.mxu1 %v4828_v33  ;;  %v132_v13 = vand.u32 4294901760, %v66_v29  ;;  %v136_v5 = vand.u32 4294901760, %v70_v11  ;;  %v987_v7 = vand.u32 4294901760, %v68_v30  ;;  %v991_v44 = vand.u32 4294901760, %v72_v59 }
  0x2b   :  { %7011 = vst [vmem:[#allocation26_spill] sm:$0xff] %v4843_v38  ;;  %7012 = vst [vmem:[#allocation27_spill] sm:$0xff] %v4851_v34  ;;  %3720 = vmatprep.subr.bf16.mxu0 %v4843_v38  ;;  %v138_v20 = vand.u32 4294901760, %v75_v37  ;;  %v142_v61 = vand.u32 4294901760, %v79_v52  ;;  %v4860_v22 = vpack.c.bf16 %v989_v4, %v985_v10  ;;  %v4862_v57 = vsub.f32 %v73_v21, %v989_v4  ;;  %v74_v38 = vld [vmem:[%s6652_s1 + $0x140] sm:$0xff] }
  0x2c   :  { %v4864_v27 = vpack.c.bf16 %v136_v5, %v132_v13  ;;  %v4866_v33 = vsub.f32 %v66_v29, %v132_v13  ;;  %v4877_v10 = vsub.f32 %v70_v11, %v136_v5  ;;  %v4879_v21 = vpack.c.bf16 %v991_v44, %v987_v7  ;;  %v80_v29 = vld [vmem:[%s6652_s1 + $0x170] sm:$0xff] }
  0x2d   :  { %7013 = vst [vmem:[#allocation28_spill] sm:$0xff] %v4860_v22  ;;  %7014 = vst [vmem:[#allocation29_spill] sm:$0xff] %v4862_v57  ;;  %v4881_v4 = vsub.f32 %v68_v30, %v987_v7  ;;  %v4883_v13 = vsub.f32 %v72_v59, %v991_v44  ;;  %3912 = vmatprep.subr.bf16.mxu1 %v4860_v22  ;;  %v4896_v5 = vpack.c.bf16 %v142_v61, %v138_v20 }
  0x2e   :  { %7015 = vst [vmem:[#allocation30_spill] sm:$0xff] %v4864_v27  ;;  %7016 = vst [vmem:[#allocation31_spill] sm:$0xff] %v4866_v33  ;;  %3722 = vmatpush1.bf16.msra.mxu0 %v4864_v27  ;;  %v4898_v7 = vsub.f32 %v75_v37, %v138_v20  ;;  %v4900_v59 = vsub.f32 %v79_v52, %v142_v61  ;;  %v993_v11 = vand.u32 4294901760, %v77_v55  ;;  %3914 = vmatpush1.bf16.msra.mxu1 %v4879_v21  ;;  %v85_v37 = vld [vmem:[%s6652_s1 + $0x198] sm:$0xff] }
  0x2f   :  { %7017 = vst [vmem:[#allocation32_spill] sm:$0xff] %v4877_v10  ;;  %7018 = vst [vmem:[#allocation33_spill] sm:$0xff] %v4879_v21  ;;  %v997_v30 = vand.u32 4294901760, %v81_v56  ;;  %v140_v44 = vand.u32 4294901760, %v74_v38  ;;  %v144_v25 = vand.u32 4294901760, %v78_v31  ;;  %v995_v23 = vand.u32 4294901760, %v76_v48  ;;  %3724 = vmatprep.subr.bf16.mxu0 %v4896_v5 }
  0x30   :  { %7019 = vst [vmem:[#allocation34_spill] sm:$0xff] %v4883_v13  ;;  %7020 = vst [vmem:[#allocation35_spill] sm:$0xff] %v4896_v5  ;;  %v4904_v16 = vsub.f32 %v77_v55, %v993_v11  ;;  %v999_v22 = vand.u32 4294901760, %v80_v29  ;;  %v146_v13 = vand.u32 4294901760, %v83_v39  ;;  %v150_v27 = vand.u32 4294901760, %v87_v46  ;;  %v89_v61 = vld [vmem:[%s6652_s1 + $0x1b8] sm:$0xff] }
  0x31   :  { %7021 = vst [vmem:[#allocation36_spill] sm:$0xff] %v4898_v7  ;;  %7022 = vst [vmem:[#allocation37_spill] sm:$0xff] %v4900_v59  ;;  %v4912_v52 = vpack.c.bf16 %v997_v30, %v993_v11  ;;  %v4914_v20 = vsub.f32 %v81_v56, %v997_v30  ;;  %v4916_v21 = vpack.c.bf16 %v144_v25, %v140_v44  ;;  %v82_v55 = vld [vmem:[%s6652_s1 + $0x180] sm:$0xff]  ;;  %v84_v59 = vld [vmem:[%s6652_s1 + $0x190] sm:$0xff] }
  0x32   :  { %7023 = vst [vmem:[#allocation38_spill] sm:$0xff] %v4904_v16  ;;  %v4918_v5 = vsub.f32 %v74_v38, %v140_v44  ;;  %v86_v16 = vld [vmem:[%s6652_s1 + $0x1a0] sm:$0xff]  ;;  %v4929_v11 = vsub.f32 %v78_v31, %v144_v25  ;;  %v4931_v56 = vpack.c.bf16 %v999_v22, %v995_v23  ;;  %v4933_v30 = vsub.f32 %v76_v48, %v995_v23  ;;  %v88_v44 = vld [vmem:[%s6652_s1 + $0x1b0] sm:$0xff] }
  0x33   :  { %7024 = vst [vmem:[#allocation39_spill] sm:$0xff] %v4912_v52  ;;  %7025 = vst [vmem:[#allocation40_spill] sm:$0xff] %v4914_v20  ;;  %v4935_v38 = vsub.f32 %v80_v29, %v999_v22  ;;  %v95_v20 = vld [vmem:[%s6652_s1 + $0x1e8] sm:$0xff]  ;;  %3916 = vmatprep.subr.bf16.mxu1 %v4912_v52  ;;  %3726 = vmatpush1.bf16.msra.mxu0 %v4916_v21  ;;  %v4948_v23 = vpack.c.bf16 %v150_v27, %v146_v13  ;;  %v1001_v31 = vand.u32 4294901760, %v85_v37 }
  0x34   :  { %7026 = vst [vmem:[#allocation41_spill] sm:$0xff] %v4916_v21  ;;  %7027 = vst [vmem:[#allocation42_spill] sm:$0xff] %v4918_v5  ;;  %v91_v5 = vld [vmem:[%s6652_s1 + $0x1c8] sm:$0xff]  ;;  %v4950_v25 = vsub.f32 %v83_v39, %v146_v13  ;;  %v4952_v48 = vsub.f32 %v87_v46, %v150_v27  ;;  %3918 = vmatpush1.bf16.msra.mxu1 %v4931_v56  ;;  %v1005_v22 = vand.u32 4294901760, %v89_v61  ;;  %v148_v29 = vand.u32 4294901760, %v82_v55  ;;  %v93_v39 = vld [vmem:[%s6652_s1 + $0x1d8] sm:$0xff] }
  0x35   :  { %7028 = vst [vmem:[#allocation43_spill] sm:$0xff] %v4929_v11  ;;  %7029 = vst [vmem:[#allocation44_spill] sm:$0xff] %v4931_v56  ;;  %3728 = vmatprep.subr.bf16.mxu0 %v4948_v23  ;;  %v4956_v11 = vsub.f32 %v85_v37, %v1001_v31  ;;  %v1007_v52 = vand.u32 4294901760, %v88_v44  ;;  %v154_v7 = vand.u32 4294901760, %v91_v5  ;;  %v158_v21 = vand.u32 4294901760, %v95_v20  ;;  %v97_v46 = vld [vmem:[%s6652_s1 + $0x1f8] sm:$0xff] }
  0x36   :  { %7030 = vst [vmem:[#allocation45_spill] sm:$0xff] %v4933_v30  ;;  %7031 = vst [vmem:[#allocation46_spill] sm:$0xff] %v4935_v38  ;;  %v152_v38 = vand.u32 4294901760, %v86_v16  ;;  %v1003_v30 = vand.u32 4294901760, %v84_v59  ;;  %v4964_v27 = vpack.c.bf16 %v1005_v22, %v1001_v31  ;;  %v4966_v13 = vsub.f32 %v89_v61, %v1005_v22  ;;  %v90_v37 = vld [vmem:[%s6652_s1 + $0x1c0] sm:$0xff] }
  0x37   :  { %7032 = vst [vmem:[#allocation47_spill] sm:$0xff] %v4948_v23  ;;  %7033 = vst [vmem:[#allocation48_spill] sm:$0xff] %v4950_v25  ;;  %v4970_v23 = vsub.f32 %v82_v55, %v148_v29  ;;  %v4987_v55 = vsub.f32 %v88_v44, %v1007_v52 }
  0x38   :  { %7034 = vst [vmem:[#allocation49_spill] sm:$0xff] %v4952_v48  ;;  %7035 = vst [vmem:[#allocation50_spill] sm:$0xff] %v4956_v11  ;;  %v4968_v56 = vpack.c.bf16 %v152_v38, %v148_v29  ;;  %v94_v11 = vld [vmem:[%s6652_s1 + $0x1e0] sm:$0xff]  ;;  %v92_v48 = vld [vmem:[%s6652_s1 + $0x1d0] sm:$0xff]  ;;  %v4981_v31 = vsub.f32 %v86_v16, %v152_v38  ;;  %v4983_v61 = vpack.c.bf16 %v1007_v52, %v1003_v30  ;;  %3920 = vmatprep.subr.bf16.mxu1 %v4964_v27 }
  0x39   :  { %7036 = vst [vmem:[#allocation51_spill] sm:$0xff] %v4964_v27  ;;  %7037 = vst [vmem:[#allocation52_spill] sm:$0xff] %v4966_v13  ;;  %v4985_v22 = vsub.f32 %v84_v59, %v1003_v30  ;;  %v96_v29 = vld [vmem:[%s6652_s1 + $0x1f0] sm:$0xff]  ;;  %v4996_v13 = vsub.f32 %v91_v5, %v154_v7  ;;  %v4998_v16 = vsub.f32 %v95_v20, %v158_v21  ;;  %v1009_v38 = vand.u32 4294901760, %v93_v39 }
  0x3a   :  { %7038 = vst [vmem:[#allocation53_spill] sm:$0xff] %v4968_v56  ;;  %7039 = vst [vmem:[#allocation54_spill] sm:$0xff] %v4970_v23  ;;  %3730 = vmatpush1.bf16.msra.mxu0 %v4968_v56  ;;  %v4994_v23 = vpack.c.bf16 %v158_v21, %v154_v7  ;;  %3922 = vmatpush1.bf16.msra.mxu1 %v4983_v61  ;;  %v1013_v59 = vand.u32 4294901760, %v97_v46  ;;  %v156_v52 = vand.u32 4294901760, %v90_v37  ;;  %v160_v30 = vand.u32 4294901760, %v94_v11 }
  0x3b   :  { %7040 = vst [vmem:[#allocation55_spill] sm:$0xff] %v4983_v61  ;;  %7041 = vst [vmem:[#allocation56_spill] sm:$0xff] %v4985_v22  ;;  %v1011_v44 = vand.u32 4294901760, %v92_v48  ;;  %v1015_v27 = vand.u32 4294901760, %v96_v29  ;;  %v6733_v22 = vand.u32 4294901760, %v4638_v18  ;;  %v33_v61 = vld [vmem:[%s6651_s0] sm:$0xff] }
  0x3c   :  { %7042 = vst [vmem:[#allocation57_spill] sm:$0xff] %v4987_v55  ;;  %7043 = vst [vmem:[#allocation58_spill] sm:$0xff] %v4994_v23  ;;  %3732 = vmatprep.subr.bf16.mxu0 %v4994_v23  ;;  %v5002_v55 = vsub.f32 %v93_v39, %v1009_v38  ;;  %v5006_v5 = vpack.c.bf16 %v1013_v59, %v1009_v38  ;;  %v5008_v21 = vsub.f32 %v97_v46, %v1013_v59 }
  0x3d   :  { %v5010_v7 = vpack.c.bf16 %v160_v30, %v156_v52  ;;  %v5012_v20 = vsub.f32 %v90_v37, %v156_v52  ;;  %v5017_v23 = vsub.f32 %v94_v11, %v160_v30  ;;  %v5019_v39 = vpack.c.bf16 %v1015_v27, %v1011_v44 }
  0x3e   :  { %7044 = vst [vmem:[#allocation59_spill] sm:$0xff] %v5002_v55  ;;  %7045 = vst [vmem:[#allocation60_spill] sm:$0xff] %v5006_v5  ;;  %v5021_v55 = vsub.f32 %v92_v48, %v1011_v44  ;;  %v5023_v56 = vsub.f32 %v96_v29, %v1015_v27  ;;  %3924 = vmatprep.subr.bf16.mxu1 %v5006_v5  ;;  %v7053_v46 = vand.u32 4294901760, %v4636_v17  ;;  %v6738_v11 = vand.u32 4294901760, %v4640_v19 }
  0x3f   :  { %7046 = vst [vmem:[#allocation61_spill] sm:$0xff] %v5008_v21  ;;  %7047 = vst [vmem:[#allocation62_spill] sm:$0xff] %v5010_v7  ;;  %3734 = vmatpush1.bf16.msra.mxu0 %v5010_v7  ;;  %v221_v38 = vsub.f32 %v4638_v18, %v6733_v22  ;;  %v6743_v59 = vand.u32 4294901760, %v4653_v24  ;;  %3926 = vmatpush1.bf16.msra.mxu1 %v5019_v39  ;;  %v5036_v48 = vand.u32 4294901760, %v33_v61  ;;  %v6750_v27 = vand.u32 4294901760, %v4657_v26 }
  0x40   :  { %7048 = vst [vmem:[#allocation63_spill] sm:$0xff] %v5012_v20  ;;  %7049 = vst [vmem:[#allocation64_spill] sm:$0xff] %v5017_v23  ;;  %v209_v37 = vsub.f32 %v4636_v17, %v7053_v46  ;;  %v6751_v29 = vand.u32 4294901760, %v4663_v28  ;;  %v6757_v52 = vand.u32 4294901760, %v4678_v40  ;;  %v1064_v46 = vsub.f32 %v4640_v19, %v6738_v11 }
  0x41   :  { %7050 = vst [vmem:[#allocation65_spill] sm:$0xff] %v5019_v39  ;;  %7051 = vst [vmem:[#allocation66_spill] sm:$0xff] %v5021_v55  ;;  %v222_v44 = vand.u32 4294901760, %v221_v38  ;;  %v1076_v22 = vsub.f32 %v4653_v24, %v6743_v59  ;;  %v5048_v39 = vsub.f32 %v33_v61, %v5036_v48  ;;  %v215_v7 = vsub.f32 %v4657_v26, %v6750_v27 }
  0x42   :  { %7052 = vst [vmem:[#allocation67_spill] sm:$0xff] %v5023_v56  ;;  %7054 = vst [vmem:[#allocation68_spill] sm:$0xff] %v5036_v48  ;;  %v210_v30 = vand.u32 4294901760, %v209_v37  ;;  %v227_v37 = vsub.f32 %v4663_v28, %v6751_v29  ;;  %v1070_v38 = vsub.f32 %v4678_v40, %v6757_v52  ;;  %v1065_v5 = vand.u32 4294901760, %v1064_v46 }
  0x43   :  { %7055 = vst [vmem:[#allocation69_spill] sm:$0xff] %v5048_v39  ;;  %v1077_v19 = vand.u32 4294901760, %v1076_v22  ;;  %v6754_v59 = vand.u32 4294901760, %v4680_v41  ;;  %v5061_v61 = vand.u32 4294901760, %v5048_v39  ;;  %v216_v48 = vand.u32 4294901760, %v215_v7 }
  0x44   :  { %v3735_v11 = vpack.c.bf16 %v222_v44, %v210_v30  ;;  %v228_v24 = vand.u32 4294901760, %v227_v37  ;;  %v1071_v18 = vand.u32 4294901760, %v1070_v38  ;;  %v6755_v28 = vand.u32 4294901760, %v4682_v42 }
  0x45   :  { %7056 = vst [vmem:[#allocation70_spill] sm:$0xff] %v5061_v61  ;;  %v3927_v27 = vpack.c.bf16 %v1077_v19, %v1065_v5  ;;  %v1082_v29 = vsub.f32 %v4680_v41, %v6754_v59  ;;  %v6756_v30 = vand.u32 4294901760, %v4695_v47  ;;  %v198_v22 = vsub.f32 %v5048_v39, %v5061_v61 }
  0x46   :  { %3736 = vmatprep.subr.bf16.mxu0 %v3735_v11  ;;  %v3737_v44 = vpack.c.bf16 %v228_v24, %v216_v48  ;;  %v6758_v46 = vand.u32 4294901760, %v4699_v49  ;;  %v6761_v7 = vand.u32 4294901760, %v4705_v51  ;;  %v233_v19 = vsub.f32 %v4682_v42, %v6755_v28 }
  0x47   :  { %3928 = vmatprep.subr.bf16.mxu1 %v3927_v27  ;;  %v1083_v37 = vand.u32 4294901760, %v1082_v29  ;;  %v245_v5 = vsub.f32 %v4695_v47, %v6756_v30  ;;  %v6762_v11 = vand.u32 4294901760, %v4707_v53  ;;  %v199_v38 = vand.u32 4294901760, %v198_v22 }
  0x48   :  { %v1088_v24 = vsub.f32 %v4699_v49, %v6758_v46  ;;  %v1100_v48 = vsub.f32 %v4705_v51, %v6761_v7  ;;  %v6767_v27 = vand.u32 4294901760, %v4719_v62  ;;  %v234_v59 = vand.u32 4294901760, %v233_v19 }
  0x49   :  { %v3929_v29 = vpack.c.bf16 %v1083_v37, %v1071_v18  ;;  %v246_v28 = vand.u32 4294901760, %v245_v5  ;;  %v239_v30 = vsub.f32 %v4707_v53, %v6762_v11  ;;  %200 = vmatmul.mubr.f32.vlgmr.msra.gmra.mrb[0].mxu0 %v199_v38  ;;  %1055 = vmatmul.mubr.f32.vlgmr.msra.gmra.mrb[0].mxu1 %v199_v38  ;;  %v6763_v61 = vand.u32 4294901760, %v4721_v63 }
  0x4a   :  { %v1089_v22 = vand.u32 4294901760, %v1088_v24  ;;  %v1101_v52 = vand.u32 4294901760, %v1100_v48  ;;  %v251_v46 = vsub.f32 %v4719_v62, %v6767_v27  ;;  %3738 = vmatpush1.bf16.msra.mxu0 %v3737_v44  ;;  %v6764_v37 = vand.u32 4294901760, %v4734_v6 }
  0x4b   :  { %3930 = vmatpush1.bf16.msra.mxu1 %v3929_v29  ;;  %v3739_v7 = vpack.c.bf16 %v246_v28, %v234_v59  ;;  %v240_v18 = vand.u32 4294901760, %v239_v30  ;;  %v6765_v19 = vand.u32 4294901760, %v4738_v8  ;;  %v1094_v38 = vsub.f32 %v4721_v63, %v6763_v61 }
  0x4c   :  { %v3931_v5 = vpack.c.bf16 %v1101_v52, %v1089_v22  ;;  %v252_v11 = vand.u32 4294901760, %v251_v46  ;;  %v6766_v24 = vand.u32 4294901760, %v4750_v12  ;;  %v7057_v48 = vmov 0.0  }
  0x4d   :  { %430 = vmatprep.mubr.f32.mxu0 %v7057_v48  ;;  %1285 = vmatprep.mubr.f32.mxu1 %v7057_v48  ;;  %v1106_v28 = vsub.f32 %v4734_v6, %v6764_v37  ;;  %v257_v59 = vsub.f32 %v4738_v8, %v6765_v19  ;;  %v6768_v52 = vand.u32 4294901760, %v4754_v14  ;;  %v6779_v30 = vand.u32 4294901760, %v4756_v15 }
  0x4e   :  { %3740 = vmatprep.subr.bf16.mxu0 %v3739_v7  ;;  %3932 = vmatprep.subr.bf16.mxu1 %v3931_v5  ;;  %v3741_v44 = vpack.c.bf16 %v252_v11, %v240_v18  ;;  %v1095_v46 = vand.u32 4294901760, %v1094_v38  ;;  %v269_v29 = vsub.f32 %v4750_v12, %v6766_v24  ;;  %v6771_v7 = vand.u32 4294901760, %v4766_v35 }
  0x4f   :  { %v1107_v22 = vand.u32 4294901760, %v1106_v28  ;;  %v258_v61 = vand.u32 4294901760, %v257_v59  ;;  %v1112_v37 = vsub.f32 %v4754_v14, %v6768_v52  ;;  %v1124_v19 = vsub.f32 %v4756_v15, %v6779_v30 }
  0x50   :  { %3742 = vmatpush1.bf16.msra.mxu0 %v3741_v44  ;;  %v270_v5 = vand.u32 4294901760, %v269_v29  ;;  %v263_v11 = vsub.f32 %v4766_v35, %v6771_v7  ;;  %v6772_v18 = vand.u32 4294901760, %v4768_v36  ;;  %v6776_v38 = vand.u32 4294901760, %v4781_v45 }
  0x51   :  { %v3933_v28 = vpack.c.bf16 %v1107_v22, %v1095_v46  ;;  %v1113_v59 = vand.u32 4294901760, %v1112_v37  ;;  %v1125_v24 = vand.u32 4294901760, %v1124_v19  ;;  %v6773_v27 = vand.u32 4294901760, %v4783_v50 }
  0x52   :  { %v3743_v52 = vpack.c.bf16 %v270_v5, %v258_v61  ;;  %v264_v39 = vand.u32 4294901760, %v263_v11  ;;  %v275_v44 = vsub.f32 %v4768_v36, %v6772_v18  ;;  %v1118_v29 = vsub.f32 %v4781_v45, %v6776_v38 }
  0x53   :  { %3934 = vmatpush1.bf16.msra.mxu1 %v3933_v28  ;;  %v3935_v7 = vpack.c.bf16 %v1125_v24, %v1113_v59  ;;  %v1130_v46 = vsub.f32 %v4783_v50, %v6773_v27  ;;  %v6774_v37 = vand.u32 4294901760, %v4787_v54  ;;  %v6775_v19 = vand.u32 4294901760, %v4800_v58 }
  0x54   :  { %3744 = vmatprep.subr.bf16.mxu0 %v3743_v52  ;;  %v276_v61 = vand.u32 4294901760, %v275_v44  ;;  %v1119_v22 = vand.u32 4294901760, %v1118_v29  ;;  %v6777_v5 = vand.u32 4294901760, %v4804_v60  ;;  %v6778_v11 = vand.u32 4294901760, %v4807_v2 }
  0x55   :  { %3936 = vmatprep.subr.bf16.mxu1 %v3935_v7  ;;  %v1131_v18 = vand.u32 4294901760, %v1130_v46  ;;  %v281_v24 = vsub.f32 %v4787_v54, %v6774_v37  ;;  %v293_v28 = vsub.f32 %v4800_v58, %v6775_v19  ;;  %v6785_v59 = vand.u32 4294901760, %v4813_v9 }
  0x56   :  { %v3745_v27 = vpack.c.bf16 %v276_v61, %v264_v39  ;;  %v1136_v52 = vsub.f32 %v4804_v60, %v6777_v5  ;;  %v1148_v7 = vsub.f32 %v4807_v2, %v6778_v11  ;;  %v6784_v44 = vand.u32 4294901760, %v4826_v32 }
  0x57   :  { %v3937_v29 = vpack.c.bf16 %v1131_v18, %v1119_v22  ;;  %v282_v46 = vand.u32 4294901760, %v281_v24  ;;  %v294_v37 = vand.u32 4294901760, %v293_v28  ;;  %v287_v19 = vsub.f32 %v4813_v9, %v6785_v59 }
  0x58   :  { %3746 = vmatpush1.bf16.msra.mxu0 %v3745_v27  ;;  %v1137_v38 = vand.u32 4294901760, %v1136_v52  ;;  %v1149_v39 = vand.u32 4294901760, %v1148_v7  ;;  %v299_v61 = vsub.f32 %v4826_v32, %v6784_v44  ;;  %v6780_v5 = vand.u32 4294901760, %v4830_v0  ;;  %v7058_v44 = vld [vmem:[#allocation34_spill] sm:$0xff] }
  0x59   :  { %3938 = vmatpush1.bf16.msra.mxu1 %v3937_v29  ;;  %v3747_v11 = vpack.c.bf16 %v294_v37, %v282_v46  ;;  %v288_v30 = vand.u32 4294901760, %v287_v19  ;;  %v6781_v18 = vand.u32 4294901760, %v4841_v1  ;;  %v6782_v22 = vand.u32 4294901760, %v4845_v3 }
  0x5a   :  { %v3939_v24 = vpack.c.bf16 %v1149_v39, %v1137_v38  ;;  %v300_v28 = vand.u32 4294901760, %v299_v61  ;;  %v1142_v27 = vsub.f32 %v4830_v0, %v6780_v5  ;;  %v6783_v52 = vand.u32 4294901760, %v4847_v43 }
  0x5b   :  { %3748 = vmatprep.subr.bf16.mxu0 %v3747_v11  ;;  %v1154_v7 = vsub.f32 %v4841_v1, %v6781_v18  ;;  %v305_v37 = vsub.f32 %v4845_v3, %v6782_v22  ;;  %v6786_v19 = vand.u32 4294901760, %v4851_v34  ;;  %v6790_v38 = vand.u32 4294901760, %v4862_v57 }
  0x5c   :  { %3940 = vmatprep.subr.bf16.mxu1 %v3939_v24  ;;  %v3749_v29 = vpack.c.bf16 %v300_v28, %v288_v30  ;;  %v1143_v46 = vand.u32 4294901760, %v1142_v27  ;;  %v317_v39 = vsub.f32 %v4847_v43, %v6783_v52  ;;  %v6789_v11 = vand.u32 4294901760, %v4866_v33 }
  0x5d   :  { %v1155_v61 = vand.u32 4294901760, %v1154_v7  ;;  %v306_v5 = vand.u32 4294901760, %v305_v37  ;;  %v1160_v18 = vsub.f32 %v4851_v34, %v6786_v19  ;;  %v1172_v22 = vsub.f32 %v4862_v57, %v6790_v38 }
  0x5e   :  { %3750 = vmatpush1.bf16.msra.mxu0 %v3749_v29  ;;  %v318_v24 = vand.u32 4294901760, %v317_v39  ;;  %v311_v30 = vsub.f32 %v4866_v33, %v6789_v11  ;;  %v6793_v28 = vand.u32 4294901760, %v4877_v10  ;;  %v6799_v27 = vand.u32 4294901760, %v4881_v4 }
  0x5f   :  { %v3941_v7 = vpack.c.bf16 %v1155_v61, %v1143_v46  ;;  %v1161_v37 = vand.u32 4294901760, %v1160_v18  ;;  %v1173_v52 = vand.u32 4294901760, %v1172_v22  ;;  %v6798_v59 = vand.u32 4294901760, %v7058_v44  ;;  %v7059_v18 = vld [vmem:[#allocation36_spill] sm:$0xff]  ;;  %v7060_v61 = vld [vmem:[#allocation37_spill] sm:$0xff] }
  0x60   :  { %v3751_v19 = vpack.c.bf16 %v318_v24, %v306_v5  ;;  %v312_v34 = vand.u32 4294901760, %v311_v30  ;;  %v323_v29 = vsub.f32 %v4877_v10, %v6793_v28  ;;  %v1166_v39 = vsub.f32 %v4881_v4, %v6799_v27  ;;  %v7061_v30 = vld [vmem:[#allocation38_spill] sm:$0xff]  ;;  %v7062_v28 = vld [vmem:[#allocation40_spill] sm:$0xff] }
  0x61   :  { %3942 = vmatpush1.bf16.msra.mxu1 %v3941_v7  ;;  %v3943_v11 = vpack.c.bf16 %v1173_v52, %v1161_v37  ;;  %v1178_v46 = vsub.f32 %v7058_v44, %v6798_v59  ;;  %v6801_v22 = vand.u32 4294901760, %v7059_v18  ;;  %v6802_v38 = vand.u32 4294901760, %v7060_v61  ;;  %v7063_v37 = vld [vmem:[#allocation42_spill] sm:$0xff] }
  0x62   :  { %3752 = vmatprep.subr.bf16.mxu0 %v3751_v19  ;;  %v324_v5 = vand.u32 4294901760, %v323_v29  ;;  %v1167_v24 = vand.u32 4294901760, %v1166_v39  ;;  %v6804_v33 = vand.u32 4294901760, %v7061_v30  ;;  %v6806_v10 = vand.u32 4294901760, %v7062_v28  ;;  %v7064_v29 = vld [vmem:[#allocation43_spill] sm:$0xff] }
  0x63   :  { %3944 = vmatprep.subr.bf16.mxu1 %v3943_v11  ;;  %v1179_v57 = vand.u32 4294901760, %v1178_v46  ;;  %v329_v52 = vsub.f32 %v7059_v18, %v6801_v22  ;;  %v341_v7 = vsub.f32 %v7060_v61, %v6802_v38  ;;  %v6811_v59 = vand.u32 4294901760, %v7063_v37  ;;  %v7066_v18 = vld [vmem:[#allocation46_spill] sm:$0xff] }
  0x64   :  { %v3753_v27 = vpack.c.bf16 %v324_v5, %v312_v34  ;;  %v1184_v19 = vsub.f32 %v7061_v30, %v6804_v33  ;;  %v1196_v11 = vsub.f32 %v7062_v28, %v6806_v10  ;;  %v6809_v39 = vand.u32 4294901760, %v7064_v29  ;;  %v7065_v33 = vld [vmem:[#allocation45_spill] sm:$0xff] }
  0x65   :  { %v3945_v46 = vpack.c.bf16 %v1179_v57, %v1167_v24  ;;  %v330_v44 = vand.u32 4294901760, %v329_v52  ;;  %v342_v22 = vand.u32 4294901760, %v341_v7  ;;  %v335_v38 = vsub.f32 %v7063_v37, %v6811_v59 }
  0x66   :  { %3754 = vmatpush1.bf16.msra.mxu0 %v3753_v27  ;;  %v1185_v61 = vand.u32 4294901760, %v1184_v19  ;;  %v1197_v34 = vand.u32 4294901760, %v1196_v11  ;;  %v347_v5 = vsub.f32 %v7064_v29, %v6809_v39  ;;  %v6810_v30 = vand.u32 4294901760, %v7065_v33  ;;  %v7067_v19 = vld [vmem:[#allocation49_spill] sm:$0xff] }
  0x67   :  { %3946 = vmatpush1.bf16.msra.mxu1 %v3945_v46  ;;  %v3755_v10 = vpack.c.bf16 %v342_v22, %v330_v44  ;;  %v336_v28 = vand.u32 4294901760, %v335_v38  ;;  %v6814_v57 = vand.u32 4294901760, %v7066_v18  ;;  %v6815_v24 = vand.u32 4294901760, %v4950_v25  ;;  %v7068_v38 = vld [vmem:[#allocation50_spill] sm:$0xff]  ;;  %v7069_v46 = vld [vmem:[#allocation52_spill] sm:$0xff] }
  0x68   :  { %v3947_v52 = vpack.c.bf16 %v1197_v34, %v1185_v61  ;;  %v348_v7 = vand.u32 4294901760, %v347_v5  ;;  %v1190_v27 = vsub.f32 %v7065_v33, %v6810_v30  ;;  %v6816_v11 = vand.u32 4294901760, %v7067_v19 }
  0x69   :  { %3756 = vmatprep.subr.bf16.mxu0 %v3755_v10  ;;  %v1202_v39 = vsub.f32 %v7066_v18, %v6814_v57  ;;  %v353_v44 = vsub.f32 %v4950_v25, %v6815_v24  ;;  %v6821_v22 = vand.u32 4294901760, %v7068_v38  ;;  %v6825_v61 = vand.u32 4294901760, %v7069_v46  ;;  %v7070_v10 = vld [vmem:[#allocation54_spill] sm:$0xff]  ;;  %v7072_v25 = vld [vmem:[#allocation57_spill] sm:$0xff] }
  0x6a   :  { %3948 = vmatprep.subr.bf16.mxu1 %v3947_v52  ;;  %v3757_v34 = vpack.c.bf16 %v348_v7, %v336_v28  ;;  %v1191_v5 = vand.u32 4294901760, %v1190_v27  ;;  %v365_v30 = vsub.f32 %v7067_v19, %v6816_v11  ;;  %v6823_v59 = vand.u32 4294901760, %v7070_v10  ;;  %v7071_v27 = vld [vmem:[#allocation56_spill] sm:$0xff] }
  0x6b   :  { %v1203_v33 = vand.u32 4294901760, %v1202_v39  ;;  %v354_v29 = vand.u32 4294901760, %v353_v44  ;;  %v1208_v57 = vsub.f32 %v7068_v38, %v6821_v22  ;;  %v1220_v24 = vsub.f32 %v7069_v46, %v6825_v61 }
  0x6c   :  { %3758 = vmatpush1.bf16.msra.mxu0 %v3757_v34  ;;  %v366_v52 = vand.u32 4294901760, %v365_v30  ;;  %v359_v28 = vsub.f32 %v7070_v10, %v6823_v59  ;;  %v6824_v7 = vand.u32 4294901760, %v4981_v31  ;;  %v6829_v11 = vand.u32 4294901760, %v7071_v27 }
  0x6d   :  { %v3949_v39 = vpack.c.bf16 %v1203_v33, %v1191_v5  ;;  %v1209_v44 = vand.u32 4294901760, %v1208_v57  ;;  %v1221_v19 = vand.u32 4294901760, %v1220_v24  ;;  %v6826_v18 = vand.u32 4294901760, %v7072_v25 }
  0x6e   :  { %v3759_v22 = vpack.c.bf16 %v366_v52, %v354_v29  ;;  %v360_v38 = vand.u32 4294901760, %v359_v28  ;;  %v371_v34 = vsub.f32 %v4981_v31, %v6824_v7  ;;  %v1214_v30 = vsub.f32 %v7071_v27, %v6829_v11  ;;  %v7073_v52 = vld [vmem:[#allocation59_spill] sm:$0xff] }
  0x6f   :  { %3950 = vmatpush1.bf16.msra.mxu1 %v3949_v39  ;;  %v3951_v59 = vpack.c.bf16 %v1221_v19, %v1209_v44  ;;  %v1226_v33 = vsub.f32 %v7072_v25, %v6826_v18  ;;  %v6827_v57 = vand.u32 4294901760, %v4996_v13  ;;  %v6828_v24 = vand.u32 4294901760, %v4998_v16 }
  0x70   :  { %3760 = vmatprep.subr.bf16.mxu0 %v3759_v22  ;;  %v372_v29 = vand.u32 4294901760, %v371_v34  ;;  %v1215_v5 = vand.u32 4294901760, %v1214_v30  ;;  %v6830_v28 = vand.u32 4294901760, %v7073_v52  ;;  %v6831_v7 = vand.u32 4294901760, %v5008_v21 }
  0x71   :  { %3952 = vmatprep.subr.bf16.mxu1 %v3951_v59  ;;  %v1227_v61 = vand.u32 4294901760, %v1226_v33  ;;  %v377_v19 = vsub.f32 %v4996_v13, %v6827_v57  ;;  %v389_v39 = vsub.f32 %v4998_v16, %v6828_v24  ;;  %v6837_v44 = vand.u32 4294901760, %v5012_v20 }
  0x72   :  { %v3761_v18 = vpack.c.bf16 %v372_v29, %v360_v38  ;;  %v1232_v22 = vsub.f32 %v7073_v52, %v6830_v28  ;;  %v1244_v59 = vsub.f32 %v5008_v21, %v6831_v7  ;;  %v6834_v34 = vand.u32 4294901760, %v5017_v23 }
  0x73   :  { %v3953_v30 = vpack.c.bf16 %v1227_v61, %v1215_v5  ;;  %v378_v33 = vand.u32 4294901760, %v377_v19  ;;  %v390_v57 = vand.u32 4294901760, %v389_v39  ;;  %v383_v24 = vsub.f32 %v5012_v20, %v6837_v44 }
  0x74   :  { %3762 = vmatpush1.bf16.msra.mxu0 %v3761_v18  ;;  %v1233_v11 = vand.u32 4294901760, %v1232_v22  ;;  %v1245_v38 = vand.u32 4294901760, %v1244_v59  ;;  %v395_v29 = vsub.f32 %v5017_v23, %v6834_v34  ;;  %v6835_v28 = vand.u32 4294901760, %v5021_v55  ;;  %v7074_v22 = vld [vmem:[#allocation7_spill] sm:$0xff] }
  0x75   :  { %3954 = vmatpush1.bf16.msra.mxu1 %v3953_v30  ;;  %v3763_v7 = vpack.c.bf16 %v390_v57, %v378_v33  ;;  %v384_v21 = vand.u32 4294901760, %v383_v24  ;;  %v6836_v61 = vand.u32 4294901760, %v5023_v56  ;;  %v3767_v59 = vpack.c.bf16 %v7074_v22, %v4636_v17  ;;  %v7075_v33 = vld [vmem:[#allocation8_spill] sm:$0xff] }
  0x76   :  { %v3955_v5 = vpack.c.bf16 %v1245_v38, %v1233_v11  ;;  %v396_v19 = vand.u32 4294901760, %v395_v29  ;;  %v1238_v39 = vsub.f32 %v5021_v55, %v6835_v28  ;;  %v7076_v11 = vld [vmem:[#allocation10_spill] sm:$0xff]  ;;  %v7077_v29 = vld [vmem:[#allocation12_spill] sm:$0xff]  ;;  %v7081_v17 = vand.u32 4294901760, %v4657_v26 }
  0x77   :  { %3764 = vmatprep.subr.bf16.mxu0 %v3763_v7  ;;  %v1250_v18 = vsub.f32 %v5023_v56, %v6836_v61  ;;  %v3959_v38 = vpack.c.bf16 %v7076_v11, %v7075_v33  ;;  %v3769_v34 = vpack.c.bf16 %v7077_v29, %v4657_v26  ;;  %v3771_v7 = vpack.c.bf16 %v4695_v47, %v4682_v42  ;;  %v7078_v61 = vld [vmem:[#allocation68_spill] sm:$0xff] }
  0x78   :  { %3956 = vmatprep.subr.bf16.mxu1 %v3955_v5  ;;  %v3765_v30 = vpack.c.bf16 %v396_v19, %v384_v21  ;;  %v1239_v57 = vand.u32 4294901760, %v1238_v39  ;;  %v3961_v21 = vpack.c.bf16 %v4680_v41, %v4678_v40  ;;  %v3963_v5 = vpack.c.bf16 %v4705_v51, %v4699_v49 }
  0x79   :  { %v1251_v24 = vand.u32 4294901760, %v1250_v18  ;;  %v3773_v19 = vpack.c.bf16 %v4719_v62, %v4707_v53  ;;  %v3965_v39 = vpack.c.bf16 %v4734_v6, %v4721_v63  ;;  %v3775_v18 = vpack.c.bf16 %v4750_v12, %v4738_v8 }
  0x7a   :  { %3766 = vmatpush1.bf16.msra.mxu0 %v3765_v30  ;;  %v3969_v30 = vpack.c.bf16 %v4783_v50, %v4781_v45  ;;  %v7080_v44 = vand.u32 4294901760, %v7076_v11  ;;  %v7083_v55 = vand.u32 4294901760, %v4678_v40  ;;  %v7084_v23 = vand.u32 4294901760, %v4680_v41 }
  0x7b   :  { %v3957_v28 = vpack.c.bf16 %v1251_v24, %v1239_v57  ;;  %3768 = vmatprep.subr.bf16.mxu0 %v3767_v59  ;;  %v3777_v59 = vpack.c.bf16 %v4768_v36, %v4766_v35  ;;  %v3779_v57 = vpack.c.bf16 %v4800_v58, %v4787_v54  ;;  %v3781_v24 = vpack.c.bf16 %v4826_v32, %v4813_v9 }
  0x7c   :  { %v5346_v20 = vpack.c.bf16 %v7084_v23, %v7083_v55  ;;  %v7087_v26 = vand.u32 4294901760, %v4699_v49  ;;  %v7089_v40 = vand.u32 4294901760, %v4707_v53  ;;  %v7090_v41 = vand.u32 4294901760, %v4719_v62 }
  0x7d   :  { %3958 = vmatpush1.bf16.msra.mxu1 %v3957_v28  ;;  %432 = vmatmul.mubr.f32.vlgmr.msra.gmra.mrb[0].mxu0 %v7078_v61  ;;  %v3967_v28 = vpack.c.bf16 %v4756_v15, %v4754_v14  ;;  %v7094_v49 = vand.u32 4294901760, %v4750_v12  ;;  %v7096_v53 = vand.u32 4294901760, %v4756_v15  ;;  %v7101_v12 = vand.u32 4294901760, %v4787_v54 }
  0x7e   :  { %3960 = vmatprep.subr.bf16.mxu1 %v3959_v38  ;;  %3770 = vmatpush1.bf16.msra.mxu0 %v3769_v34  ;;  %v3971_v34 = vpack.c.bf16 %v4807_v2, %v4804_v60  ;;  %v3783_v38 = vpack.c.bf16 %v4847_v43, %v4845_v3  ;;  %v5364_v23 = vpack.c.bf16 %v7090_v41, %v7089_v40  ;;  %v7103_v15 = vand.u32 4294901760, %v4804_v60 }
  0x7f   :  { %3772 = vmatprep.subr.bf16.mxu0 %v3771_v7  ;;  %566 = vmatprep.mubr.f32.mxu0 %v7057_v48  ;;  %v7079_v7 = vand.u32 4294901760, %v7075_v33  ;;  %v7085_v33 = vand.u32 4294901760, %v4682_v42  ;;  %v7091_v42 = vand.u32 4294901760, %v4721_v63  ;;  %v7098_v63 = vand.u32 4294901760, %v4768_v36 }
  0x80   :  { %1287 = vmatmul.mubr.f32.vlgmr.msra.gmra.mrb[0].mxu1 %v7078_v61  ;;  %v7082_v61 = vand.u32 4294901760, %v7077_v29  ;;  %v7088_v29 = vand.u32 4294901760, %v4705_v51  ;;  %v7105_v36 = vand.u32 4294901760, %v4813_v9  ;;  %v7108_v54 = vand.u32 4294901760, %v4841_v1  ;;  %v7113_v9 = vld [vmem:[#allocation29_spill] sm:$0xff] }
  0x81   :  { %v5333_v22 = vpack.c.bf16 %v7080_v44, %v7079_v7  ;;  %3962 = vmatpush1.bf16.msra.mxu1 %v3961_v21  ;;  %1421 = vmatprep.mubr.f32.mxu1 %v7057_v48  ;;  %v7086_v44 = vand.u32 4294901760, %v4695_v47  ;;  %v7092_v47 = vand.u32 4294901760, %v4734_v6  ;;  %v7095_v21 = vand.u32 4294901760, %v4754_v14 }
  0x82   :  { %v5340_v56 = vpack.c.bf16 %v7082_v61, %v7081_v17  ;;  %3964 = vmatprep.subr.bf16.mxu1 %v3963_v5  ;;  %3774 = vmatpush1.bf16.msra.mxu0 %v3773_v19  ;;  %v5358_v17 = vpack.c.bf16 %v7088_v29, %v7087_v26  ;;  %v7093_v61 = vand.u32 4294901760, %v4738_v8  ;;  %v7097_v5 = vand.u32 4294901760, %v4766_v35  ;;  %v7111_v29 = vld [vmem:[#allocation27_spill] sm:$0xff] }
  0x83   :  { %v5352_v11 = vpack.c.bf16 %v7086_v44, %v7085_v33  ;;  %v5370_v55 = vpack.c.bf16 %v7092_v47, %v7091_v42  ;;  %3776 = vmatprep.subr.bf16.mxu0 %v3775_v18  ;;  %v5382_v62 = vpack.c.bf16 %v7096_v53, %v7095_v21  ;;  %v7099_v19 = vand.u32 4294901760, %v4781_v45  ;;  %v7115_v42 = vld [vmem:[#allocation31_spill] sm:$0xff]  ;;  %v7121_v53 = vld [vmem:[#allocation34_spill] sm:$0xff] }
  0x84   :  { %v5376_v51 = vpack.c.bf16 %v7094_v49, %v7093_v61  ;;  %v5388_v6 = vpack.c.bf16 %v7098_v63, %v7097_v5  ;;  %v7100_v8 = vand.u32 4294901760, %v4783_v50  ;;  %v7102_v14 = vand.u32 4294901760, %v4800_v58  ;;  %v7117_v61 = vld [vmem:[#allocation32_spill] sm:$0xff] }
  0x85   :  { %v7104_v35 = vand.u32 4294901760, %v4807_v2  ;;  %v7106_v45 = vand.u32 4294901760, %v4826_v32  ;;  %v7107_v50 = vand.u32 4294901760, %v4830_v0  ;;  %3966 = vmatpush1.bf16.msra.mxu1 %v3965_v39  ;;  %v7109_v58 = vand.u32 4294901760, %v4845_v3 }
  0x86   :  { %v5394_v18 = vpack.c.bf16 %v7100_v8, %v7099_v19  ;;  %v5400_v7 = vpack.c.bf16 %v7102_v14, %v7101_v12  ;;  %v7110_v60 = vand.u32 4294901760, %v4847_v43  ;;  %v7112_v40 = vand.u32 4294901760, %v7111_v29  ;;  %3968 = vmatprep.subr.bf16.mxu1 %v3967_v28  ;;  %3778 = vmatpush1.bf16.msra.mxu0 %v3777_v59  ;;  %v7124_v43 = vld [vmem:[#allocation36_spill] sm:$0xff]  ;;  %v7126_v19 = vld [vmem:[#allocation37_spill] sm:$0xff]  ;;  %v7129_v14 = vld [vmem:[#allocation38_spill] sm:$0xff] }
  0x87   :  { %v5406_v33 = vpack.c.bf16 %v7104_v35, %v7103_v15  ;;  %v5412_v44 = vpack.c.bf16 %v7106_v45, %v7105_v36  ;;  %v5418_v26 = vpack.c.bf16 %v7108_v54, %v7107_v50  ;;  %v7114_v41 = vand.u32 4294901760, %v7113_v9  ;;  %v7131_v35 = vld [vmem:[#allocation40_spill] sm:$0xff]  ;;  %v7135_v54 = vld [vmem:[#allocation43_spill] sm:$0xff]  ;;  %3780 = vmatprep.subr.bf16.mxu0 %v3779_v57  ;;  %v7138_v28 = vld [vmem:[#allocation45_spill] sm:$0xff] }
  0x88   :  { %v5424_v2 = vpack.c.bf16 %v7110_v60, %v7109_v58  ;;  %v7116_v47 = vand.u32 4294901760, %v7115_v42  ;;  %v7118_v49 = vand.u32 4294901760, %v7117_v61  ;;  %v7120_v39 = vand.u32 4294901760, %v4881_v4 }
  0x89   :  { %v5430_v32 = vpack.c.bf16 %v7114_v41, %v7112_v40  ;;  %v7122_v3 = vand.u32 4294901760, %v7121_v53  ;;  %v7125_v63 = vand.u32 4294901760, %v7124_v43  ;;  %v7127_v8 = vand.u32 4294901760, %v7126_v19  ;;  %v7140_v40 = vld [vmem:[#allocation46_spill] sm:$0xff]  ;;  %3970 = vmatpush1.bf16.msra.mxu1 %v3969_v30 }
  0x8a   :  { %v5436_v21 = vpack.c.bf16 %v7118_v49, %v7116_v47  ;;  %v7130_v15 = vand.u32 4294901760, %v7129_v14  ;;  %v7132_v36 = vand.u32 4294901760, %v7131_v35  ;;  %v7134_v50 = vand.u32 4294901760, %v7063_v37  ;;  %v7143_v49 = vld [vmem:[#allocation48_spill] sm:$0xff]  ;;  %3972 = vmatprep.subr.bf16.mxu1 %v3971_v34  ;;  %3782 = vmatpush1.bf16.msra.mxu0 %v3781_v24 }
  0x8b   :  { %v5442_v5 = vpack.c.bf16 %v7122_v3, %v7120_v39  ;;  %v5448_v12 = vpack.c.bf16 %v7127_v8, %v7125_v63  ;;  %v7136_v58 = vand.u32 4294901760, %v7135_v54  ;;  %v7139_v59 = vand.u32 4294901760, %v7138_v28  ;;  %v7145_v3 = vld [vmem:[#allocation49_spill] sm:$0xff]  ;;  %3784 = vmatprep.subr.bf16.mxu0 %v3783_v38 }
  0x8c   :  { %7119 = vst [vmem:[#allocation42_spill] sm:$0xff] %v5436_v21  ;;  %v5454_v45 = vpack.c.bf16 %v7132_v36, %v7130_v15  ;;  %v7141_v41 = vand.u32 4294901760, %v7140_v40  ;;  %v7144_v39 = vand.u32 4294901760, %v7143_v49  ;;  %v7146_v63 = vand.u32 4294901760, %v7145_v3  ;;  %v7148_v15 = vld [vmem:[#allocation50_spill] sm:$0xff] }
  0x8d   :  { %7123 = vst [vmem:[#allocation52_spill] sm:$0xff] %v5442_v5  ;;  %7128 = vst [vmem:[#allocation54_spill] sm:$0xff] %v5448_v12  ;;  %v5460_v60 = vpack.c.bf16 %v7136_v58, %v7134_v50  ;;  %v7149_v36 = vand.u32 4294901760, %v7148_v15  ;;  %v7152_v57 = vand.u32 4294901760, %v7070_v10  ;;  %v7153_v50 = vand.u32 4294901760, %v4981_v31 }
  0x8e   :  { %7133 = vst [vmem:[#allocation56_spill] sm:$0xff] %v5454_v45  ;;  %v5466_v47 = vpack.c.bf16 %v7141_v41, %v7139_v59  ;;  %v5472_v8 = vpack.c.bf16 %v7146_v63, %v7144_v39  ;;  %v7150_v45 = vand.u32 4294901760, %v7069_v46  ;;  %v7155_v59 = vand.u32 4294901760, %v7071_v27 }
  0x8f   :  { %7137 = vst [vmem:[#allocation57_spill] sm:$0xff] %v5460_v60  ;;  %v5484_v58 = vpack.c.bf16 %v7153_v50, %v7152_v57  ;;  %v7156_v41 = vand.u32 4294901760, %v7072_v25  ;;  %v7158_v39 = vand.u32 4294901760, %v4996_v13  ;;  %v7159_v63 = vand.u32 4294901760, %v4998_v16  ;;  %v7164_v57 = vld [vmem:[#allocation63_spill] sm:$0xff] }
  0x90   :  { %7142 = vst [vmem:[#allocation59_spill] sm:$0xff] %v5466_v47  ;;  %7147 = vst [vmem:[#allocation8_spill] sm:$0xff] %v5472_v8  ;;  %v5478_v5 = vpack.c.bf16 %v7150_v45, %v7149_v36  ;;  %v7161_v45 = vand.u32 4294901760, %v7073_v52  ;;  %v7162_v36 = vld [vmem:[#allocation61_spill] sm:$0xff]  ;;  %v7165_v50 = vand.u32 4294901760, %v7164_v57  ;;  %v3787_v30 = vpack.c.bf16 %v7126_v19, %v7124_v43  ;;  %v7180_v43 = vld [vmem:[#allocation18_spill] sm:$0xff] }
  0x91   :  { %7154 = vst [vmem:[#allocation12_spill] sm:$0xff] %v5484_v58  ;;  %v5490_v47 = vpack.c.bf16 %v7156_v41, %v7155_v59  ;;  %v5496_v8 = vpack.c.bf16 %v7159_v63, %v7158_v39  ;;  %v7166_v58 = vld [vmem:[#allocation64_spill] sm:$0xff]  ;;  %v3973_v59 = vpack.c.bf16 %v4841_v1, %v4830_v0  ;;  %v7168_v41 = vld [vmem:[#allocation66_spill] sm:$0xff]  ;;  %v7170_v39 = vld [vmem:[#allocation67_spill] sm:$0xff]  ;;  %v3977_v0 = vpack.c.bf16 %v7121_v53, %v4881_v4 }
  0x92   :  { %7151 = vst [vmem:[#allocation10_spill] sm:$0xff] %v5478_v5  ;;  %v7163_v5 = vand.u32 4294901760, %v7162_v36  ;;  %v7167_v12 = vand.u32 4294901760, %v7166_v58  ;;  %v7171_v63 = vand.u32 4294901760, %v7170_v39  ;;  %v3979_v1 = vpack.c.bf16 %v7131_v35, %v7129_v14  ;;  %v7179_v53 = vld [vmem:[#allocation16_spill] sm:$0xff]  ;;  %v7181_v19 = vld [vmem:[#allocation17_spill] sm:$0xff] }
  0x93   :  { %7157 = vst [vmem:[#allocation27_spill] sm:$0xff] %v5490_v47  ;;  %7160 = vst [vmem:[#allocation29_spill] sm:$0xff] %v5496_v8  ;;  %v7169_v47 = vand.u32 4294901760, %v7168_v41  ;;  %3974 = vmatpush1.bf16.msra.mxu1 %v3973_v59  ;;  %v3789_v34 = vpack.c.bf16 %v7135_v54, %v7063_v37  ;;  %v3791_v24 = vpack.c.bf16 %v7145_v3, %v7143_v49  ;;  %v7183_v14 = vld [vmem:[#allocation20_spill] sm:$0xff]  ;;  %v7184_v35 = vld [vmem:[#allocation22_spill] sm:$0xff] }
  0x94   :  { %v5502_v60 = vpack.c.bf16 %v7163_v5, %v7161_v45  ;;  %v5508_v21 = vpack.c.bf16 %v7167_v12, %v7165_v50  ;;  %v3975_v5 = vpack.c.bf16 %v7113_v9, %v7111_v29  ;;  %v3785_v45 = vpack.c.bf16 %v7117_v61, %v7115_v42  ;;  %v7182_v12 = vld [vmem:[#allocation19_spill] sm:$0xff]  ;;  %v7185_v54 = vld [vmem:[#allocation21_spill] sm:$0xff]  ;;  %v7190_v3 = vld [vmem:[#allocation28_spill] sm:$0xff] }
  0x95   :  { %v5516_v8 = vpack.c.bf16 %v7171_v63, %v7169_v47  ;;  %v3981_v38 = vpack.c.bf16 %v7140_v40, %v7138_v28  ;;  %v3983_v4 = vpack.c.bf16 %v7069_v46, %v7148_v15  ;;  %v3793_v29 = vpack.c.bf16 %v4981_v31, %v7070_v10  ;;  %v7175_v46 = vld [vmem:[#allocation11_spill] sm:$0xff]  ;;  %v7176_v10 = vld [vmem:[#allocation14_spill] sm:$0xff]  ;;  %v7187_v40 = vld [vmem:[#allocation24_spill] sm:$0xff] }
  0x96   :  { %3976 = vmatprep.subr.bf16.mxu1 %v3975_v5  ;;  %3786 = vmatpush1.bf16.msra.mxu0 %v3785_v45  ;;  %v3795_v37 = vpack.c.bf16 %v4998_v16, %v4996_v13  ;;  %v3985_v9 = vpack.c.bf16 %v7072_v25, %v7071_v27  ;;  %v3987_v42 = vpack.c.bf16 %v7162_v36, %v7073_v52  ;;  %v7172_v13 = vld [vmem:[#allocation5_spill] sm:$0xff]  ;;  %v7178_v52 = vld [vmem:[#allocation15_spill] sm:$0xff]  ;;  %v7188_v47 = vld [vmem:[#allocation26_spill] sm:$0xff] }
  0x97   :  { %3788 = vmatprep.subr.bf16.mxu0 %v3787_v30  ;;  %3978 = vmatpush1.bf16.msra.mxu1 %v3977_v0  ;;  %v3797_v61 = vpack.c.bf16 %v7166_v58, %v7164_v57  ;;  %v3989_v31 = vpack.c.bf16 %v7170_v39, %v7168_v41  ;;  %v7173_v16 = vld [vmem:[#allocation69_spill] sm:$0xff]  ;;  %v7186_v28 = vld [vmem:[#allocation23_spill] sm:$0xff]  ;;  %v7191_v15 = vld [vmem:[#allocation30_spill] sm:$0xff] }
  0x98   :  { %3980 = vmatprep.subr.bf16.mxu1 %v3979_v1  ;;  %v7174_v25 = vld [vmem:[#allocation9_spill] sm:$0xff]  ;;  %v7192_v58 = vld [vmem:[#allocation35_spill] sm:$0xff]  ;;  %v7197_v41 = vld [vmem:[#allocation44_spill] sm:$0xff] }
  0x99   :  { %v7177_v27 = vld [vmem:[#allocation13_spill] sm:$0xff]  ;;  %v7194_v57 = vld [vmem:[#allocation39_spill] sm:$0xff]  ;;  %v7200_v5 = vld [vmem:[#allocation58_spill] sm:$0xff] }
  0x9a   :  { %3790 = vmatpush1.bf16.msra.mxu0 %v3789_v34  ;;  %v7189_v49 = vld [vmem:[#allocation25_spill] sm:$0xff]  ;;  %v7196_v59 = vld [vmem:[#allocation47_spill] sm:$0xff]  ;;  %v7201_v45 = vld [vmem:[#allocation6_spill] sm:$0xff] }
  0x9b   :  { %3792 = vmatprep.subr.bf16.mxu0 %v3791_v24  ;;  %3982 = vmatpush1.bf16.msra.mxu1 %v3981_v38  ;;  %v7193_v36 = vld [vmem:[#allocation33_spill] sm:$0xff]  ;;  %v7198_v39 = vld [vmem:[#allocation51_spill] sm:$0xff]  ;;  %v7202_v30 = vand.u32 4294901760, %v7201_v45  ;;  %v7206_v38 = vld [vmem:[#allocation60_spill] sm:$0xff] }
  0x9c   :  { %3984 = vmatprep.subr.bf16.mxu1 %v3983_v4  ;;  %v7195_v50 = vld [vmem:[#allocation41_spill] sm:$0xff]  ;;  %v7203_v0 = vld [vmem:[#allocation7_spill] sm:$0xff]  ;;  %v7207_v4 = vld [vmem:[#allocation62_spill] sm:$0xff] }
  0x9d   :  { %v7199_v63 = vld [vmem:[#allocation53_spill] sm:$0xff]  ;;  %v7204_v1 = vand.u32 4294901760, %v7203_v0  ;;  %v7205_v24 = vld [vmem:[#allocation55_spill] sm:$0xff] }
  0x9e   :  { %3794 = vmatpush1.bf16.msra.mxu0 %v3793_v29  ;;  %v7208_v29 = vld [vmem:[#allocation65_spill] sm:$0xff] }
  0x9f   :  { %3796 = vmatprep.subr.bf16.mxu0 %v3795_v37  ;;  %3986 = vmatpush1.bf16.msra.mxu1 %v3985_v9  ;;  %v3831_v34 = vpack.c.bf16 %v7204_v1, %v7202_v30  ;;  %v7209_v37 = vld [vmem:[#allocation70_spill] sm:$0xff]  ;;  %v1825_v30 = vld [vmem:[#allocation2 + $0x58] sm:$0xff] }
  0xa0   :  { %3988 = vmatprep.subr.bf16.mxu1 %v3987_v42  ;;  %v1814_v42 = vld [vmem:[#allocation2] sm:$0xff] }
  0xa2   :  { %3798 = vmatpush1.bf16.msra.mxu0 %v3797_v61  ;;  %v1880_v61 = vand.u32 4294901760, %v1814_v42 }
  0xa3   :  { %3800 = vmatprep.subr.bf16.mxu0 %v7172_v13  ;;  %3990 = vmatpush1.bf16.msra.mxu1 %v3989_v31  ;;  %v1823_v31 = vld [vmem:[#allocation2 + $0x48] sm:$0xff] }
  0xa4   :  { %3992 = vmatprep.subr.bf16.mxu1 %v7174_v25 }
  0xa5   :  { %569 = vmatmul.mubr.f32.vlgmr.msra.gmra.mrb[0].mxu0 %v7173_v16 }
  0xa6   :  { %3802 = vmatpush1.bf16.msra.mxu0 %v7175_v46  ;;  %671 = vmatprep.mubr.f32.mxu0 %v7057_v48 }
  0xa7   :  { %3804 = vmatprep.subr.bf16.mxu0 %v7176_v10  ;;  %1424 = vmatmul.mubr.f32.vlgmr.msra.gmra.mrb[0].mxu1 %v7173_v16  ;;  %v1827_v16 = vld [vmem:[#allocation2 + $0x68] sm:$0xff] }
  0xa8   :  { %3994 = vmatpush1.bf16.msra.mxu1 %v7177_v27  ;;  %1526 = vmatprep.mubr.f32.mxu1 %v7057_v48 }
  0xa9   :  { %3996 = vmatprep.subr.bf16.mxu1 %v7178_v52 }
  0xaa   :  { %3806 = vmatpush1.bf16.msra.mxu0 %v7179_v53 }
  0xab   :  { %3808 = vmatprep.subr.bf16.mxu0 %v7180_v43 }
  0xac   :  { %3998 = vmatpush1.bf16.msra.mxu1 %v7181_v19 }
  0xad   :  { %4000 = vmatprep.subr.bf16.mxu1 %v7182_v12 }
  0xae   :  { %3810 = vmatpush1.bf16.msra.mxu0 %v7183_v14 }
  0xaf   :  { %3812 = vmatprep.subr.bf16.mxu0 %v7184_v35 }
  0xb0   :  { %4002 = vmatpush1.bf16.msra.mxu1 %v7185_v54 }
  0xb1   :  { %4004 = vmatprep.subr.bf16.mxu1 %v7186_v28 }
  0xb2   :  { %3814 = vmatpush1.bf16.msra.mxu0 %v7187_v40 }
  0xb3   :  { %3816 = vmatprep.subr.bf16.mxu0 %v7188_v47 }
  0xb4   :  { %4006 = vmatpush1.bf16.msra.mxu1 %v7189_v49 }
  0xb5   :  { %4008 = vmatprep.subr.bf16.mxu1 %v7190_v3 }
  0xb6   :  { %3818 = vmatpush1.bf16.msra.mxu0 %v7191_v15 }
  0xb7   :  { %3820 = vmatprep.subr.bf16.mxu0 %v7192_v58 }
  0xb8   :  { %4010 = vmatpush1.bf16.msra.mxu1 %v7193_v36 }
  0xb9   :  { %4012 = vmatprep.subr.bf16.mxu1 %v7194_v57 }
  0xba   :  { %3822 = vmatpush1.bf16.msra.mxu0 %v7195_v50  ;;  %v7227_v50 = vld [vmem:[#allocation8_spill] sm:$0xff] }
  0xbb   :  { %3824 = vmatprep.subr.bf16.mxu0 %v7196_v59  ;;  %v1833_v59 = vld [vmem:[#allocation2 + $0x98] sm:$0xff] }
  0xbc   :  { %4014 = vmatpush1.bf16.msra.mxu1 %v7197_v41 }
  0xbd   :  { %4016 = vmatprep.subr.bf16.mxu1 %v7198_v39 }
  0xbe   :  { %3826 = vmatpush1.bf16.msra.mxu0 %v7199_v63  ;;  %v7220_v63 = vld [vmem:[#allocation52_spill] sm:$0xff] }
  0xbf   :  { %3828 = vmatprep.subr.bf16.mxu0 %v7200_v5  ;;  %v1835_v5 = vld [vmem:[#allocation2 + $0xa8] sm:$0xff] }
  0xc0   :  { %4018 = vmatpush1.bf16.msra.mxu1 %v7205_v24 }
  0xc1   :  { %4020 = vmatprep.subr.bf16.mxu1 %v7206_v38  ;;  %v1824_v38 = vld [vmem:[#allocation2 + $0x50] sm:$0xff] }
  0xc2   :  { %3830 = vmatpush1.bf16.msra.mxu0 %v7207_v4  ;;  %v7215_v4 = vld [vmem:[#allocation54_spill] sm:$0xff] }
  0xc3   :  { %3832 = vmatprep.subr.bf16.mxu0 %v3831_v34 }
  0xc4   :  { %4022 = vmatpush1.bf16.msra.mxu1 %v7208_v29  ;;  %v1826_v29 = vld [vmem:[#allocation2 + $0x60] sm:$0xff] }
  0xc5   :  { %675 = vmatmul.mubr.f32.vlgmr.msra.gmra.mrb[0].mxu0 %v7209_v37  ;;  %4024 = vmatprep.subr.bf16.mxu1 %v5333_v22  ;;  %v1819_v22 = vld [vmem:[#allocation2 + $0x28] sm:$0xff] }
  0xc6   :  { %3834 = vmatpush1.bf16.msra.mxu0 %v5340_v56  ;;  %841 = vmatprep.mubr.f32.mxu0 %v7057_v48  ;;  %v1815_v56 = vld [vmem:[#allocation2 + $0x8] sm:$0xff] }
  0xc7   :  { %3836 = vmatprep.subr.bf16.mxu0 %v5352_v11  ;;  %1530 = vmatmul.mubr.f32.vlgmr.msra.gmra.mrb[0].mxu1 %v7209_v37  ;;  %v1817_v11 = vld [vmem:[#allocation2 + $0x18] sm:$0xff]  ;;  %v1878_v9 = vand.u32 4294901760, %v1815_v56  ;;  %v1822_v37 = vld [vmem:[#allocation2 + $0x40] sm:$0xff] }
  0xc8   :  { %4026 = vmatpush1.bf16.msra.mxu1 %v5346_v20  ;;  %1696 = vmatprep.mubr.f32.mxu1 %v7057_v48  ;;  %v1821_v20 = vld [vmem:[#allocation2 + $0x38] sm:$0xff] }
  0xc9   :  { %4028 = vmatprep.subr.bf16.mxu1 %v5358_v17  ;;  %v1882_v17 = vand.u32 4294901760, %v1819_v22  ;;  %v5610_v45 = vsub.f32 %v1815_v56, %v1878_v9 }
  0xca   :  { %3838 = vmatpush1.bf16.msra.mxu0 %v5364_v23  ;;  %v1818_v23 = vld [vmem:[#allocation2 + $0x20] sm:$0xff] }
  0xcb   :  { %3840 = vmatprep.subr.bf16.mxu0 %v5376_v51  ;;  %v2786_v51 = vand.u32 4294901760, %v1821_v20  ;;  %7211 = vst [vmem:[#allocation32_spill] sm:$0xff] %v5610_v45  ;;  %v5614_v0 = vsub.f32 %v1819_v22, %v1882_v17  ;;  %v5625_v22 = vsub.f32 %v1814_v42, %v1880_v61 }
  0xcc   :  { %4030 = vmatpush1.bf16.msra.mxu1 %v5370_v55  ;;  %v2782_v55 = vand.u32 4294901760, %v1817_v11 }
  0xcd   :  { %4032 = vmatprep.subr.bf16.mxu1 %v5382_v62  ;;  %v1816_v62 = vld [vmem:[#allocation2 + $0x10] sm:$0xff]  ;;  %7213 = vst [vmem:[#allocation34_spill] sm:$0xff] %v5614_v0  ;;  %v5621_v56 = vsub.f32 %v1821_v20, %v2786_v51  ;;  %7219 = vst [vmem:[#allocation43_spill] sm:$0xff] %v5625_v22  ;;  %v1892_v20 = vand.u32 4294901760, %v1826_v29  ;;  %v1837_v22 = vld [vmem:[#allocation2 + $0xb8] sm:$0xff] }
  0xce   :  { %3842 = vmatpush1.bf16.msra.mxu0 %v5388_v6  ;;  %v1820_v6 = vld [vmem:[#allocation2 + $0x30] sm:$0xff]  ;;  %v2784_v1 = vand.u32 4294901760, %v1816_v62 }
  0xcf   :  { %3844 = vmatprep.subr.bf16.mxu0 %v5400_v7  ;;  %v1884_v7 = vand.u32 4294901760, %v1818_v23  ;;  %v2788_v34 = vand.u32 4294901760, %v1820_v6  ;;  %7217 = vst [vmem:[#allocation38_spill] sm:$0xff] %v5621_v56 }
  0xd0   :  { %4034 = vmatpush1.bf16.msra.mxu1 %v5394_v18  ;;  %v5608_v18 = vpack.c.bf16 %v1882_v17, %v1878_v9  ;;  %v1886_v9 = vand.u32 4294901760, %v1823_v31  ;;  %v2790_v17 = vand.u32 4294901760, %v1825_v30 }
  0xd1   :  { %4036 = vmatprep.subr.bf16.mxu1 %v5406_v33  ;;  %v1829_v33 = vld [vmem:[#allocation2 + $0x78] sm:$0xff]  ;;  %v5623_v24 = vpack.c.bf16 %v1884_v7, %v1880_v61  ;;  %v5628_v39 = vsub.f32 %v1818_v23, %v1884_v7  ;;  %v5634_v41 = vpack.c.bf16 %v2788_v34, %v2784_v1  ;;  %v5636_v42 = vsub.f32 %v1820_v6, %v2788_v34  ;;  %v1830_v34 = vld [vmem:[#allocation2 + $0x80] sm:$0xff] }
  0xd2   :  { %3846 = vmatpush1.bf16.msra.mxu0 %v5412_v44  ;;  %7210 = vst [vmem:[#allocation31_spill] sm:$0xff] %v5608_v18  ;;  %v7212_v44 = vld [vmem:[#allocation42_spill] sm:$0xff]  ;;  %v1890_v18 = vand.u32 4294901760, %v1827_v16  ;;  %v2792_v61 = vand.u32 4294901760, %v1824_v38  ;;  %v5641_v23 = vsub.f32 %v1823_v31, %v1886_v9  ;;  %v1898_v7 = vand.u32 4294901760, %v1835_v5 }
  0xd3   :  { %3848 = vmatprep.subr.bf16.mxu0 %v5424_v2  ;;  %v5616_v2 = vpack.c.bf16 %v2786_v51, %v2782_v55  ;;  %7218 = vst [vmem:[#allocation40_spill] sm:$0xff] %v5623_v24  ;;  %7221 = vst [vmem:[#allocation45_spill] sm:$0xff] %v5628_v39  ;;  %v7224_v51 = vld [vmem:[#allocation57_spill] sm:$0xff]  ;;  %v2798_v31 = vand.u32 4294901760, %v1833_v59 }
  0xd4   :  { %4038 = vmatpush1.bf16.msra.mxu1 %v5418_v26  ;;  %v5619_v26 = vsub.f32 %v1817_v11, %v2782_v55  ;;  %v1888_v11 = vand.u32 4294901760, %v1822_v37  ;;  %v7223_v55 = vld [vmem:[#allocation56_spill] sm:$0xff]  ;;  %7225 = vst [vmem:[#allocation48_spill] sm:$0xff] %v5634_v41  ;;  %7226 = vst [vmem:[#allocation49_spill] sm:$0xff] %v5636_v42  ;;  %v1832_v41 = vld [vmem:[#allocation2 + $0x90] sm:$0xff] }
  0xd5   :  { %4040 = vmatprep.subr.bf16.mxu1 %v5430_v32  ;;  %7214 = vst [vmem:[#allocation36_spill] sm:$0xff] %v5616_v2  ;;  %v1828_v32 = vld [vmem:[#allocation2 + $0x70] sm:$0xff]  ;;  %v1831_v2 = vld [vmem:[#allocation2 + $0x88] sm:$0xff]  ;;  %7229 = vst [vmem:[#allocation61_spill] sm:$0xff] %v5641_v23 }
  0xd6   :  { %3850 = vmatpush1.bf16.msra.mxu0 %v7212_v44  ;;  %7216 = vst [vmem:[#allocation37_spill] sm:$0xff] %v5619_v26  ;;  %v2794_v44 = vand.u32 4294901760, %v1829_v33  ;;  %v2796_v24 = vand.u32 4294901760, %v1828_v32  ;;  %v7234_v42 = vld [vmem:[#allocation59_spill] sm:$0xff] }
  0xd7   :  { %3852 = vmatprep.subr.bf16.mxu0 %v7215_v4  ;;  %v5630_v4 = vsub.f32 %v1816_v62, %v2784_v1  ;;  %v1894_v62 = vand.u32 4294901760, %v1831_v2  ;;  %v5647_v1 = vsub.f32 %v1825_v30, %v2790_v17  ;;  %v1836_v23 = vld [vmem:[#allocation2 + $0xb0] sm:$0xff]  ;;  %v7238_v30 = vld [vmem:[#allocation12_spill] sm:$0xff] }
  0xd8   :  { %4042 = vmatpush1.bf16.msra.mxu1 %v7220_v63  ;;  %v5639_v63 = vpack.c.bf16 %v1890_v18, %v1886_v9  ;;  %v5649_v6 = vsub.f32 %v1829_v33, %v2794_v44  ;;  %v2802_v9 = vand.u32 4294901760, %v1837_v22  ;;  %v5658_v33 = vsub.f32 %v1826_v29, %v1892_v20  ;;  %v1838_v29 = vld [vmem:[#allocation2 + $0xc0] sm:$0xff] }
  0xd9   :  { %7222 = vst [vmem:[#allocation46_spill] sm:$0xff] %v5630_v4  ;;  %4044 = vmatprep.subr.bf16.mxu1 %v7223_v55  ;;  %v5643_v4 = vsub.f32 %v1827_v16, %v1890_v18  ;;  %v5645_v55 = vpack.c.bf16 %v2794_v44, %v2790_v17  ;;  %7232 = vst [vmem:[#allocation66_spill] sm:$0xff] %v5647_v1  ;;  %v1839_v16 = vld [vmem:[#allocation2 + $0xc8] sm:$0xff]  ;;  %v5660_v17 = vpack.c.bf16 %v2796_v24, %v2792_v61 }
  0xda   :  { %3854 = vmatpush1.bf16.msra.mxu0 %v7224_v51  ;;  %7228 = vst [vmem:[#allocation50_spill] sm:$0xff] %v5639_v63  ;;  %7233 = vst [vmem:[#allocation67_spill] sm:$0xff] %v5649_v6  ;;  %v1834_v51 = vld [vmem:[#allocation2 + $0xa0] sm:$0xff]  ;;  %v5654_v63 = vsub.f32 %v1822_v37, %v1888_v11  ;;  %v1843_v18 = vld [vmem:[#allocation2 + $0xe8] sm:$0xff]  ;;  %v5662_v44 = vsub.f32 %v1824_v38, %v2792_v61  ;;  %v5667_v37 = vpack.c.bf16 %v1898_v7, %v1894_v62 }
  0xdb   :  { %3856 = vmatprep.subr.bf16.mxu0 %v7227_v50  ;;  %7230 = vst [vmem:[#allocation63_spill] sm:$0xff] %v5643_v4  ;;  %7231 = vst [vmem:[#allocation64_spill] sm:$0xff] %v5645_v55  ;;  %v5652_v50 = vpack.c.bf16 %v1892_v20, %v1888_v11  ;;  %v7237_v4 = vld [vmem:[#allocation10_spill] sm:$0xff]  ;;  %v1896_v11 = vand.u32 4294901760, %v1830_v34  ;;  %v1900_v55 = vand.u32 4294901760, %v1834_v51  ;;  %v1845_v6 = vld [vmem:[#allocation2 + $0xf8] sm:$0xff]  ;;  %v5670_v38 = vsub.f32 %v1831_v2, %v1894_v62 }
  0xdc   :  { %4046 = vmatpush1.bf16.msra.mxu1 %v7234_v42  ;;  %7236 = vst [vmem:[#allocation69_spill] sm:$0xff] %v5654_v63  ;;  %7239 = vst [vmem:[#allocation9_spill] sm:$0xff] %v5658_v33  ;;  %v7242_v42 = vld [vmem:[#allocation29_spill] sm:$0xff]  ;;  %v1841_v63 = vld [vmem:[#allocation2 + $0xd8] sm:$0xff]  ;;  %v2800_v1 = vand.u32 4294901760, %v1832_v41  ;;  %v1902_v39 = vand.u32 4294901760, %v1839_v16  ;;  %v5672_v61 = vsub.f32 %v1835_v5, %v1898_v7 }
  0xdd   :  { %7235 = vst [vmem:[#allocation5_spill] sm:$0xff] %v5652_v50  ;;  %4048 = vmatprep.subr.bf16.mxu1 %v7237_v4  ;;  %7240 = vst [vmem:[#allocation11_spill] sm:$0xff] %v5660_v17  ;;  %v5665_v50 = vsub.f32 %v1828_v32, %v2796_v24  ;;  %v2804_v4 = vand.u32 4294901760, %v1836_v23  ;;  %v1842_v20 = vld [vmem:[#allocation2 + $0xe0] sm:$0xff]  ;;  %v7245_v33 = vld [vmem:[#allocation27_spill] sm:$0xff]  ;;  %v5674_v24 = vpack.c.bf16 %v2802_v9, %v2798_v31 }
  0xde   :  { %3858 = vmatpush1.bf16.msra.mxu0 %v7238_v30  ;;  %7241 = vst [vmem:[#allocation14_spill] sm:$0xff] %v5662_v44  ;;  %7244 = vst [vmem:[#allocation15_spill] sm:$0xff] %v5667_v37  ;;  %v1906_v30 = vand.u32 4294901760, %v1843_v18  ;;  %v5676_v32 = vsub.f32 %v1833_v59, %v2798_v31  ;;  %v5682_v17 = vsub.f32 %v1830_v34, %v1896_v11  ;;  %v2806_v37 = vand.u32 4294901760, %v1841_v63  ;;  %v1840_v44 = vld [vmem:[#allocation2 + $0xd0] sm:$0xff]  ;;  %v1847_v7 = vld [vmem:[#allocation2 + $0x108] sm:$0xff] }
  0xdf   :  { %3860 = vmatprep.subr.bf16.mxu0 %v7242_v42  ;;  %7243 = vst [vmem:[#allocation13_spill] sm:$0xff] %v5665_v50  ;;  %7246 = vst [vmem:[#allocation16_spill] sm:$0xff] %v5670_v38  ;;  %v5680_v42 = vsub.f32 %v1837_v22, %v2802_v9  ;;  %v2810_v50 = vand.u32 4294901760, %v1845_v6  ;;  %v5685_v5 = vpack.c.bf16 %v1900_v55, %v1896_v11  ;;  %v1904_v59 = vand.u32 4294901760, %v1838_v29  ;;  %v1849_v9 = vld [vmem:[#allocation2 + $0x118] sm:$0xff] }
  0xe0   :  { %4050 = vmatpush1.bf16.msra.mxu1 %v7245_v33  ;;  %7247 = vst [vmem:[#allocation18_spill] sm:$0xff] %v5672_v61  ;;  %7248 = vst [vmem:[#allocation17_spill] sm:$0xff] %v5674_v24  ;;  %v1844_v33 = vld [vmem:[#allocation2 + $0xf0] sm:$0xff]  ;;  %v5687_v2 = vsub.f32 %v1834_v51, %v1900_v55  ;;  %v1908_v62 = vand.u32 4294901760, %v1842_v20  ;;  %v5689_v31 = vpack.c.bf16 %v2804_v4, %v2800_v1  ;;  %v2808_v51 = vand.u32 4294901760, %v1840_v44  ;;  %v1853_v24 = vld [vmem:[#allocation2 + $0x138] sm:$0xff] }
  0xe1   :  { %7249 = vst [vmem:[#allocation19_spill] sm:$0xff] %v5676_v32  ;;  %4052 = vmatprep.subr.bf16.mxu1 %v5502_v60  ;;  %7250 = vst [vmem:[#allocation20_spill] sm:$0xff] %v5680_v42  ;;  %v1851_v60 = vld [vmem:[#allocation2 + $0x128] sm:$0xff]  ;;  %v5693_v22 = vsub.f32 %v1836_v23, %v2804_v4  ;;  %v5695_v34 = vpack.c.bf16 %v1906_v30, %v1902_v39  ;;  %v5699_v11 = vsub.f32 %v1839_v16, %v1902_v39  ;;  %v1848_v4 = vld [vmem:[#allocation2 + $0x110] sm:$0xff] }
  0xe2   :  { %3862 = vmatpush1.bf16.msra.mxu0 %v5508_v21  ;;  %7251 = vst [vmem:[#allocation22_spill] sm:$0xff] %v5682_v17  ;;  %7252 = vst [vmem:[#allocation21_spill] sm:$0xff] %v5685_v5  ;;  %v5691_v21 = vsub.f32 %v1832_v41, %v2800_v1  ;;  %v5701_v55 = vsub.f32 %v1843_v18, %v1906_v30  ;;  %v2812_v5 = vand.u32 4294901760, %v1844_v33  ;;  %v1914_v1 = vand.u32 4294901760, %v1851_v60  ;;  %v1852_v39 = vld [vmem:[#allocation2 + $0x130] sm:$0xff] }
  0xe3   :  { %3864 = vmatprep.subr.bf16.mxu0 %v7172_v13  ;;  %7253 = vst [vmem:[#allocation23_spill] sm:$0xff] %v5687_v2  ;;  %7254 = vst [vmem:[#allocation24_spill] sm:$0xff] %v5689_v31  ;;  %v7258_v13 = vld [vmem:[#allocation68_spill] sm:$0xff]  ;;  %v1846_v2 = vld [vmem:[#allocation2 + $0x100] sm:$0xff]  ;;  %v5705_v41 = vpack.c.bf16 %v2810_v50, %v2806_v37  ;;  %v5707_v23 = vsub.f32 %v1841_v63, %v2806_v37  ;;  %v5711_v16 = vsub.f32 %v1845_v6, %v2810_v50 }
  0xe4   :  { %7255 = vst [vmem:[#allocation26_spill] sm:$0xff] %v5691_v21  ;;  %7256 = vst [vmem:[#allocation25_spill] sm:$0xff] %v5693_v22  ;;  %4054 = vmatpush1.bf16.msra.mxu1 %v5516_v8  ;;  %v1850_v31 = vld [vmem:[#allocation2 + $0x120] sm:$0xff]  ;;  %v1910_v8 = vand.u32 4294901760, %v1847_v7  ;;  %v5713_v18 = vpack.c.bf16 %v1908_v62, %v1904_v59  ;;  %v5715_v30 = vsub.f32 %v1838_v29, %v1904_v59  ;;  %v2818_v63 = vand.u32 4294901760, %v1853_v24 }
  0xe5   :  { %7257 = vst [vmem:[#allocation28_spill] sm:$0xff] %v5695_v34  ;;  %843 = vmatmul.mubr.f32.vlgmr.msra.gmra.mrb[0].mxu0 %v7258_v13  ;;  %7259 = vst [vmem:[#allocation30_spill] sm:$0xff] %v5699_v11  ;;  %4056 = vmatprep.subr.bf16.mxu1 %v7174_v25  ;;  %v2814_v25 = vand.u32 4294901760, %v1849_v9  ;;  %v1912_v37 = vand.u32 4294901760, %v1846_v2  ;;  %v5724_v6 = vsub.f32 %v1840_v44, %v2808_v51  ;;  %v2816_v50 = vand.u32 4294901760, %v1848_v4 }
  0xe6   :  { %7260 = vst [vmem:[#allocation35_spill] sm:$0xff] %v5701_v55  ;;  %3866 = vmatpush1.bf16.msra.mxu0 %v7175_v46  ;;  %7261 = vst [vmem:[#allocation33_spill] sm:$0xff] %v5705_v41  ;;  %945 = vmatprep.mubr.f32.mxu0 %v7057_v48  ;;  %v5718_v46 = vsub.f32 %v1842_v20, %v1908_v62  ;;  %v1916_v41 = vand.u32 4294901760, %v1850_v31  ;;  %v1859_v55 = vld [vmem:[#allocation2 + $0x168] sm:$0xff]  ;;  %v2820_v29 = vand.u32 4294901760, %v1852_v39 }
  0xe7   :  { %7262 = vst [vmem:[#allocation39_spill] sm:$0xff] %v5707_v23  ;;  %3868 = vmatprep.subr.bf16.mxu0 %v7176_v10  ;;  %7263 = vst [vmem:[#allocation6_spill] sm:$0xff] %v5711_v16  ;;  %1698 = vmatmul.mubr.f32.vlgmr.msra.gmra.mrb[0].mxu1 %v7258_v13  ;;  %v1855_v23 = vld [vmem:[#allocation2 + $0x148] sm:$0xff]  ;;  %v5722_v10 = vpack.c.bf16 %v2812_v5, %v2808_v51  ;;  %v5728_v20 = vsub.f32 %v1844_v33, %v2812_v5  ;;  %v1922_v16 = vand.u32 4294901760, %v1859_v55 }
  0xe8   :  { %7264 = vst [vmem:[#allocation7_spill] sm:$0xff] %v5713_v18  ;;  %7265 = vst [vmem:[#allocation70_spill] sm:$0xff] %v5715_v30  ;;  %4058 = vmatpush1.bf16.msra.mxu1 %v7177_v27  ;;  %1800 = vmatprep.mubr.f32.mxu1 %v7057_v48  ;;  %v5730_v59 = vpack.c.bf16 %v1914_v1, %v1910_v8  ;;  %v5732_v62 = vsub.f32 %v1847_v7, %v1910_v8  ;;  %v1861_v27 = vld [vmem:[#allocation2 + $0x178] sm:$0xff]  ;;  %v1918_v51 = vand.u32 4294901760, %v1855_v23  ;;  %v1856_v7 = vld [vmem:[#allocation2 + $0x150] sm:$0xff] }
  0xe9   :  { %7266 = vst [vmem:[#allocation42_spill] sm:$0xff] %v5718_v46  ;;  %7267 = vst [vmem:[#allocation54_spill] sm:$0xff] %v5722_v10  ;;  %4060 = vmatprep.subr.bf16.mxu1 %v7178_v52  ;;  %v1857_v46 = vld [vmem:[#allocation2 + $0x158] sm:$0xff]  ;;  %v5735_v30 = vsub.f32 %v1851_v60, %v1914_v1  ;;  %v5737_v44 = vsub.f32 %v1849_v9, %v2814_v25  ;;  %v1854_v10 = vld [vmem:[#allocation2 + $0x140] sm:$0xff]  ;;  %v5739_v18 = vpack.c.bf16 %v2818_v63, %v2814_v25 }
  0xea   :  { %3870 = vmatpush1.bf16.msra.mxu0 %v7179_v53  ;;  %7268 = vst [vmem:[#allocation52_spill] sm:$0xff] %v5730_v59  ;;  %7269 = vst [vmem:[#allocation56_spill] sm:$0xff] %v5732_v62  ;;  %v1858_v52 = vld [vmem:[#allocation2 + $0x160] sm:$0xff]  ;;  %v5741_v53 = vsub.f32 %v1853_v24, %v2818_v63  ;;  %v5743_v33 = vpack.c.bf16 %v1916_v41, %v1912_v37  ;;  %v5745_v5 = vsub.f32 %v1846_v2, %v1912_v37  ;;  %v1860_v8 = vld [vmem:[#allocation2 + $0x170] sm:$0xff] }
  0xeb   :  { %3872 = vmatprep.subr.bf16.mxu0 %v7180_v43  ;;  %7270 = vst [vmem:[#allocation57_spill] sm:$0xff] %v5735_v30  ;;  %7271 = vst [vmem:[#allocation8_spill] sm:$0xff] %v5739_v18  ;;  %v5748_v43 = vsub.f32 %v1850_v31, %v1916_v41  ;;  %v5750_v60 = vpack.c.bf16 %v2820_v29, %v2816_v50  ;;  %v2822_v9 = vand.u32 4294901760, %v1857_v46  ;;  %v2826_v1 = vand.u32 4294901760, %v1861_v27  ;;  %v1863_v30 = vld [vmem:[#allocation2 + $0x188] sm:$0xff]  ;;  %v1865_v37 = vld [vmem:[#allocation2 + $0x198] sm:$0xff] }
  0xec   :  { %7272 = vst [vmem:[#allocation59_spill] sm:$0xff] %v5743_v33  ;;  %4062 = vmatpush1.bf16.msra.mxu1 %v7181_v19  ;;  %v1867_v62 = vld [vmem:[#allocation2 + $0x1a8] sm:$0xff]  ;;  %v5754_v24 = vsub.f32 %v1848_v4, %v2816_v50  ;;  %v5756_v2 = vsub.f32 %v1852_v39, %v2820_v29  ;;  %v1920_v25 = vand.u32 4294901760, %v1854_v10  ;;  %v1924_v63 = vand.u32 4294901760, %v1858_v52  ;;  %v1869_v19 = vld [vmem:[#allocation2 + $0x1b8] sm:$0xff]  ;;  %v1862_v18 = vld [vmem:[#allocation2 + $0x180] sm:$0xff] }
  0xed   :  { %7273 = vst [vmem:[#allocation10_spill] sm:$0xff] %v5748_v43  ;;  %7274 = vst [vmem:[#allocation12_spill] sm:$0xff] %v5750_v60  ;;  %4064 = vmatprep.subr.bf16.mxu1 %v7182_v12  ;;  %v5759_v31 = vpack.c.bf16 %v1922_v16, %v1918_v51  ;;  %v5761_v41 = vsub.f32 %v1855_v23, %v1918_v51  ;;  %v2824_v60 = vand.u32 4294901760, %v1856_v7  ;;  %v2828_v33 = vand.u32 4294901760, %v1860_v8  ;;  %v1866_v12 = vld [vmem:[#allocation2 + $0x1a0] sm:$0xff]  ;;  %v1864_v50 = vld [vmem:[#allocation2 + $0x190] sm:$0xff] }
  0xee   :  { %3874 = vmatpush1.bf16.msra.mxu0 %v7183_v14  ;;  %7275 = vst [vmem:[#allocation29_spill] sm:$0xff] %v5756_v2  ;;  %v5763_v43 = vsub.f32 %v1859_v55, %v1922_v16  ;;  %v5765_v14 = vsub.f32 %v1857_v46, %v2822_v9  ;;  %v1926_v4 = vand.u32 4294901760, %v1863_v30  ;;  %v1930_v39 = vand.u32 4294901760, %v1867_v62  ;;  %v1868_v29 = vld [vmem:[#allocation2 + $0x1b0] sm:$0xff] }
  0xef   :  { %3876 = vmatprep.subr.bf16.mxu0 %v7184_v35  ;;  %7276 = vst [vmem:[#allocation27_spill] sm:$0xff] %v5759_v31  ;;  %v5768_v2 = vpack.c.bf16 %v2826_v1, %v2822_v9  ;;  %v5770_v35 = vsub.f32 %v1861_v27, %v2826_v1  ;;  %v2830_v23 = vand.u32 4294901760, %v1865_v37  ;;  %v2834_v51 = vand.u32 4294901760, %v1869_v19 }
  0xf0   :  { %7277 = vst [vmem:[#allocation68_spill] sm:$0xff] %v5763_v43  ;;  %7278 = vst [vmem:[#allocation71_spill] sm:$0xff] %v5765_v14  ;;  %4066 = vmatpush1.bf16.msra.mxu1 %v7185_v54  ;;  %v5774_v55 = vpack.c.bf16 %v1924_v63, %v1920_v25  ;;  %v5776_v16 = vsub.f32 %v1854_v10, %v1920_v25  ;;  %v1928_v46 = vand.u32 4294901760, %v1862_v18  ;;  %v1932_v14 = vand.u32 4294901760, %v1866_v12  ;;  %v1871_v10 = vld [vmem:[#allocation2 + $0x1c8] sm:$0xff] }
  0xf1   :  { %7279 = vst [vmem:[#allocation72_spill] sm:$0xff] %v5768_v2  ;;  %4068 = vmatprep.subr.bf16.mxu1 %v7186_v28  ;;  %v5779_v43 = vsub.f32 %v1858_v52, %v1924_v63  ;;  %v5781_v54 = vpack.c.bf16 %v2828_v33, %v2824_v60  ;;  %v2832_v27 = vand.u32 4294901760, %v1864_v50  ;;  %v2836_v9 = vand.u32 4294901760, %v1868_v29  ;;  %v1875_v25 = vld [vmem:[#allocation2 + $0x1e8] sm:$0xff] }
  0xf2   :  { %3878 = vmatpush1.bf16.msra.mxu0 %v7187_v40  ;;  %7280 = vst [vmem:[#allocation73_spill] sm:$0xff] %v5774_v55  ;;  %7281 = vst [vmem:[#allocation74_spill] sm:$0xff] %v5776_v16  ;;  %v5783_v1 = vsub.f32 %v1856_v7, %v2824_v60  ;;  %v5785_v2 = vsub.f32 %v1860_v8, %v2828_v33  ;;  %v5787_v28 = vpack.c.bf16 %v1930_v39, %v1926_v4  ;;  %v1873_v7 = vld [vmem:[#allocation2 + $0x1d8] sm:$0xff] }
  0xf3   :  { %3880 = vmatprep.subr.bf16.mxu0 %v7188_v47  ;;  %7282 = vst [vmem:[#allocation75_spill] sm:$0xff] %v5781_v54  ;;  %v5789_v40 = vsub.f32 %v1863_v30, %v1926_v4  ;;  %v5792_v55 = vsub.f32 %v1867_v62, %v1930_v39  ;;  %v5794_v47 = vpack.c.bf16 %v2834_v51, %v2830_v23  ;;  %v1877_v60 = vld [vmem:[#allocation2 + $0x1f8] sm:$0xff]  ;;  %v1938_v4 = vand.u32 4294901760, %v1875_v25 }
  0xf4   :  { %7283 = vst [vmem:[#allocation76_spill] sm:$0xff] %v5785_v2  ;;  %7284 = vst [vmem:[#allocation77_spill] sm:$0xff] %v5787_v28  ;;  %4070 = vmatpush1.bf16.msra.mxu1 %v7189_v49  ;;  %v5796_v52 = vsub.f32 %v1865_v37, %v2830_v23  ;;  %v5798_v63 = vsub.f32 %v1869_v19, %v2834_v51  ;;  %v5802_v30 = vpack.c.bf16 %v1932_v14, %v1928_v46  ;;  %v1870_v49 = vld [vmem:[#allocation2 + $0x1c0] sm:$0xff] }
  0xf5   :  { %7285 = vst [vmem:[#allocation78_spill] sm:$0xff] %v5792_v55  ;;  %7286 = vst [vmem:[#allocation79_spill] sm:$0xff] %v5794_v47  ;;  %4072 = vmatprep.subr.bf16.mxu1 %v7190_v3  ;;  %v5804_v33 = vsub.f32 %v1862_v18, %v1928_v46  ;;  %v5806_v8 = vsub.f32 %v1866_v12, %v1932_v14  ;;  %v5809_v62 = vpack.c.bf16 %v2836_v9, %v2832_v27  ;;  %v1812_v3 = vld [vmem:[%s6653_s2] sm:$0xff]  ;;  %v1872_v12 = vld [vmem:[#allocation2 + $0x1d0] sm:$0xff] }
  0xf6   :  { %7287 = vst [vmem:[#allocation80_spill] sm:$0xff] %v5798_v63  ;;  %3882 = vmatpush1.bf16.msra.mxu0 %v7191_v15  ;;  %7288 = vst [vmem:[#allocation81_spill] sm:$0xff] %v5802_v30  ;;  %v5811_v37 = vsub.f32 %v1864_v50, %v2832_v27  ;;  %v1934_v19 = vand.u32 4294901760, %v1871_v10  ;;  %v5816_v15 = vsub.f32 %v1868_v29, %v2836_v9  ;;  %v2838_v39 = vand.u32 4294901760, %v1873_v7  ;;  %v1874_v23 = vld [vmem:[#allocation2 + $0x1e0] sm:$0xff]  ;;  %v1876_v14 = vld [vmem:[#allocation2 + $0x1f0] sm:$0xff] }
  0xf7   :  { %7289 = vst [vmem:[#allocation82_spill] sm:$0xff] %v5804_v33  ;;  %7290 = vst [vmem:[#allocation83_spill] sm:$0xff] %v5806_v8  ;;  %3884 = vmatprep.subr.bf16.mxu0 %v7192_v58  ;;  %v2842_v18 = vand.u32 4294901760, %v1877_v60  ;;  %v1936_v58 = vand.u32 4294901760, %v1870_v49  ;;  %v7294_v29 = vld [vmem:[#allocation41_spill] sm:$0xff]  ;;  %v7297_v30 = vld [vmem:[#allocation43_spill] sm:$0xff]  ;;  %v5834_v27 = vsub.f32 %v1875_v25, %v1938_v4 }
  0xf8   :  { %7291 = vst [vmem:[#allocation84_spill] sm:$0xff] %v5809_v62  ;;  %7292 = vst [vmem:[#allocation85_spill] sm:$0xff] %v5811_v37  ;;  %4074 = vmatpush1.bf16.msra.mxu1 %v7193_v36  ;;  %v5825_v9 = vsub.f32 %v1871_v10, %v1934_v19  ;;  %v5827_v62 = vand.u32 4294901760, %v1812_v3  ;;  %v7298_v51 = vld [vmem:[#allocation45_spill] sm:$0xff]  ;;  %v7299_v36 = vld [vmem:[#allocation47_spill] sm:$0xff]  ;;  %v1940_v50 = vand.u32 4294901760, %v1874_v23  ;;  %v5843_v54 = vsub.f32 %v1873_v7, %v2838_v39 }
  0xf9   :  { %7293 = vst [vmem:[#allocation86_spill] sm:$0xff] %v5816_v15  ;;  %4076 = vmatprep.subr.bf16.mxu1 %v7194_v57  ;;  %v5832_v15 = vpack.c.bf16 %v1938_v4, %v1934_v19  ;;  %v2840_v46 = vand.u32 4294901760, %v1872_v12  ;;  %v2844_v37 = vand.u32 4294901760, %v1876_v14  ;;  %7301 = vst [vmem:[#allocation88_spill] sm:$0xff] %v5834_v27  ;;  %v5836_v57 = vpack.c.bf16 %v2842_v18, %v2838_v39  ;;  %v7305_v47 = vld [vmem:[#allocation44_spill] sm:$0xff]  ;;  %v7310_v27 = vld [vmem:[#allocation51_spill] sm:$0xff] }
  0xfa   :  { %3886 = vmatpush1.bf16.msra.mxu0 %v7294_v29  ;;  %7295 = vst [vmem:[#allocation41_spill] sm:$0xff] %v5825_v9  ;;  %7296 = vst [vmem:[#allocation87_spill] sm:$0xff] %v5827_v62  ;;  %v7303_v10 = vand.u32 4294901760, %v5610_v45  ;;  %v7304_v9 = vld [vmem:[#allocation46_spill] sm:$0xff]  ;;  %v7307_v19 = vand.u32 4294901760, %v5614_v0  ;;  %v7309_v4 = vand.u32 4294901760, %v5621_v56 }
  0xfb   :  { %3888 = vmatprep.subr.bf16.mxu0 %v7299_v36  ;;  %7300 = vst [vmem:[#allocation47_spill] sm:$0xff] %v5832_v15  ;;  %7302 = vst [vmem:[#allocation89_spill] sm:$0xff] %v5836_v57  ;;  %v7308_v15 = vand.u32 4294901760, %v5619_v26  ;;  %v7313_v7 = vand.u32 4294901760, %v7297_v30 }
  0xfc   :  { %v2000_v29 = vsub.f32 %v5610_v45, %v7303_v10  ;;  %4078 = vmatpush1.bf16.msra.mxu1 %v7305_v47  ;;  %7306 = vst [vmem:[#allocation44_spill] sm:$0xff] %v5843_v54  ;;  %v2012_v36 = vsub.f32 %v5614_v0, %v7307_v19  ;;  %v2916_v57 = vsub.f32 %v5621_v56, %v7309_v4  ;;  %v7311_v10 = vld [vmem:[#allocation53_spill] sm:$0xff]  ;;  %v7314_v19 = vand.u32 4294901760, %v7298_v51  ;;  %v7316_v0 = vld [vmem:[#allocation58_spill] sm:$0xff] }
  0xfd   :  { %v2904_v25 = vsub.f32 %v5619_v26, %v7308_v15  ;;  %4080 = vmatprep.subr.bf16.mxu1 %v7310_v27  ;;  %v5857_v47 = vsub.f32 %v1812_v3, %v5827_v62  ;;  %v2006_v39 = vsub.f32 %v7297_v30, %v7313_v7  ;;  %v7315_v15 = vld [vmem:[#allocation49_spill] sm:$0xff]  ;;  %v5867_v4 = vsub.f32 %v1877_v60, %v2842_v18  ;;  %v7322_v30 = vld [vmem:[#allocation63_spill] sm:$0xff] }
  0xfe   :  { %3890 = vmatpush1.bf16.msra.mxu0 %v7311_v10  ;;  %v2018_v8 = vsub.f32 %v7298_v51, %v7314_v19  ;;  %v5869_v27 = vpack.c.bf16 %v1940_v50, %v1936_v58  ;;  %v5871_v10 = vsub.f32 %v1870_v49, %v1936_v58  ;;  %v7320_v3 = vld [vmem:[#allocation61_spill] sm:$0xff]  ;;  %v2001_v56 = vand.u32 4294901760, %v2000_v29  ;;  %v7323_v19 = vld [vmem:[#allocation66_spill] sm:$0xff]  ;;  %v7324_v26 = vld [vmem:[#allocation55_spill] sm:$0xff] }
  0xff   :  { %7312 = vst [vmem:[#allocation51_spill] sm:$0xff] %v5857_v47  ;;  %3892 = vmatprep.subr.bf16.mxu0 %v7316_v0  ;;  %7317 = vst [vmem:[#allocation53_spill] sm:$0xff] %v5867_v4  ;;  %v7321_v45 = vand.u32 4294901760, %v7304_v9  ;;  %v2013_v0 = vand.u32 4294901760, %v2012_v36  ;;  %v2905_v60 = vand.u32 4294901760, %v2904_v25  ;;  %v2917_v18 = vand.u32 4294901760, %v2916_v57 }
 0x100   :  { %7318 = vst [vmem:[#allocation58_spill] sm:$0xff] %v5869_v27  ;;  %7319 = vst [vmem:[#allocation90_spill] sm:$0xff] %v5871_v10  ;;  %4082 = vmatpush1.bf16.msra.mxu1 %v7324_v26  ;;  %v7325_v4 = vld [vmem:[#allocation67_spill] sm:$0xff]  ;;  %v7326_v49 = vld [vmem:[#allocation60_spill] sm:$0xff]  ;;  %v5884_v29 = vand.u32 4294901760, %v5857_v47  ;;  %v2007_v62 = vand.u32 4294901760, %v2006_v39  ;;  %v5890_v26 = vsub.f32 %v1874_v23, %v1940_v50  ;;  %v5892_v57 = vpack.c.bf16 %v2844_v37, %v2840_v46 }
 0x101   :  { %v2910_v7 = vsub.f32 %v7304_v9, %v7321_v45  ;;  %4084 = vmatprep.subr.bf16.mxu1 %v7326_v49  ;;  %v7327_v58 = vld [vmem:[#allocation62_spill] sm:$0xff]  ;;  %v2019_v45 = vand.u32 4294901760, %v2018_v8  ;;  %v7329_v54 = vand.u32 4294901760, %v7315_v15  ;;  %v7330_v9 = vld [vmem:[#allocation31_spill] sm:$0xff]  ;;  %v7332_v36 = vand.u32 4294901760, %v7320_v3  ;;  %v7333_v49 = vld [vmem:[#allocation69_spill] sm:$0xff] }
 0x102   :  { %3894 = vmatpush1.bf16.msra.mxu0 %v7327_v58  ;;  %7328 = vst [vmem:[#allocation55_spill] sm:$0xff] %v5884_v29  ;;  %7331 = vst [vmem:[#allocation60_spill] sm:$0xff] %v5892_v57  ;;  %v5898_v27 = vsub.f32 %v1872_v12, %v2840_v46  ;;  %v5900_v39 = vsub.f32 %v1876_v14, %v2844_v37  ;;  %v7334_v8 = vand.u32 4294901760, %v7322_v30  ;;  %v7336_v50 = vld [vmem:[#allocation65_spill] sm:$0xff]  ;;  %v7337_v37 = vand.u32 4294901760, %v7325_v4  ;;  %v7338_v46 = vld [vmem:[#allocation36_spill] sm:$0xff] }
 0x103   :  { %v2922_v51 = vsub.f32 %v7315_v15, %v7329_v54  ;;  %4088 = vmatprep.subr.bf16.mxu0 %v7330_v9  ;;  %v2024_v25 = vsub.f32 %v7320_v3, %v7332_v36  ;;  %v7335_v9 = vand.u32 4294901760, %v7323_v19  ;;  %v5910_v15 = vpack.c.bf16 %v2013_v0, %v2001_v56  ;;  %v7341_v0 = vld [vmem:[#allocation50_spill] sm:$0xff]  ;;  %v7349_v56 = vld [vmem:[#allocation23_spill] sm:$0xff] }
 0x104   :  { %v2036_v54 = vsub.f32 %v7322_v30, %v7334_v8  ;;  %4086 = vmatpush1.bf16.msra.mxu1 %v7336_v50  ;;  %v5912_v36 = vpack.c.bf16 %v2917_v18, %v2905_v60  ;;  %v2911_v12 = vand.u32 4294901760, %v2910_v7  ;;  %v2940_v14 = vsub.f32 %v7325_v4, %v7337_v37  ;;  %v7339_v8 = vld [vmem:[#allocation40_spill] sm:$0xff]  ;;  %v7343_v37 = vld [vmem:[#allocation14_spill] sm:$0xff] }
 0x105   :  { %v2928_v23 = vsub.f32 %v7323_v19, %v7335_v9  ;;  %947 = vmatmul.mubr.f32.vlgmr.msra.gmra.mrb[0].mxu0 %v7258_v13  ;;  %4280 = vmatprep.subr.bf16.mxu1 %v7338_v46  ;;  %v1978_v9 = vsub.f32 %v5857_v47, %v5884_v29  ;;  %v5921_v58 = vpack.c.bf16 %v2019_v45, %v2007_v62  ;;  %v2923_v50 = vand.u32 4294901760, %v2922_v51  ;;  %v7340_v19 = vld [vmem:[#allocation9_spill] sm:$0xff]  ;;  %v7345_v29 = vld [vmem:[#allocation48_spill] sm:$0xff] }
 0x106   :  { %4090 = vmatpush1.bf16.msra.mxu0 %v7339_v8  ;;  %1974 = vmatprep.mubr.f32.mxu0 %v7057_v48  ;;  %v2025_v7 = vand.u32 4294901760, %v2024_v25  ;;  %v7342_v60 = vand.u32 4294901760, %v7333_v49  ;;  %v7344_v46 = vld [vmem:[#allocation13_spill] sm:$0xff]  ;;  %v2037_v62 = vand.u32 4294901760, %v2036_v54  ;;  %v2941_v25 = vand.u32 4294901760, %v2940_v14  ;;  %v7346_v4 = vld [vmem:[#allocation64_spill] sm:$0xff] }
 0x107   :  { %4092 = vmatprep.subr.bf16.mxu0 %v7341_v0  ;;  %1802 = vmatmul.mubr.f32.vlgmr.msra.gmra.mrb[0].mxu1 %v7258_v13  ;;  %v2929_v51 = vand.u32 4294901760, %v2928_v23  ;;  %v7347_v13 = vld [vmem:[#allocation5_spill] sm:$0xff]  ;;  %v7348_v54 = vand.u32 4294901760, %v7340_v19  ;;  %v5952_v0 = vand.u32 4294901760, %v1978_v9  ;;  %v5954_v8 = vpack.c.bf16 %v2923_v50, %v2911_v12 }
 0x108   :  { %v5929_v18 = vsub.f32 %v7333_v49, %v7342_v60  ;;  %4282 = vmatpush1.bf16.msra.mxu1 %v7345_v29  ;;  %2878 = vmatprep.mubr.f32.mxu1 %v7057_v48  ;;  %v7350_v60 = vld [vmem:[#allocation15_spill] sm:$0xff]  ;;  %v5966_v45 = vpack.c.bf16 %v2037_v62, %v2025_v7  ;;  %v7354_v29 = vand.u32 4294901760, %v5670_v38  ;;  %v7355_v12 = vand.u32 4294901760, %v5672_v61 }
 0x109   :  { %4284 = vmatprep.subr.bf16.mxu1 %v7346_v4  ;;  %v5946_v23 = vsub.f32 %v7340_v19, %v7348_v54  ;;  %7351 = vst [vmem:[#allocation62_spill] sm:$0xff] %v5954_v8  ;;  %v7352_v4 = vand.u32 4294901760, %v7343_v37  ;;  %v7353_v54 = vand.u32 4294901760, %v7344_v46  ;;  %v7359_v62 = vand.u32 4294901760, %v5680_v42  ;;  %v7384_v19 = vld [vmem:[#allocation8_spill] sm:$0xff]  ;;  %v7385_v49 = vld [vmem:[#allocation59_spill] sm:$0xff] }
 0x10a   :  { %4094 = vmatpush1.bf16.msra.mxu0 %v7347_v13  ;;  %v5972_v9 = vsub.f32 %v5670_v38, %v7354_v29  ;;  %v5977_v50 = vsub.f32 %v5672_v61, %v7355_v12  ;;  %v7360_v29 = vand.u32 4294901760, %v5682_v17  ;;  %v7361_v12 = vld [vmem:[#allocation17_spill] sm:$0xff]  ;;  %v7390_v38 = vand.u32 4294901760, %v5754_v24 }
 0x10b   :  { %4096 = vmatprep.subr.bf16.mxu0 %v7350_v60  ;;  %v5959_v13 = vsub.f32 %v7343_v37, %v7352_v4  ;;  %v5964_v47 = vsub.f32 %v7344_v46, %v7353_v54  ;;  %v7356_v4 = vld [vmem:[#allocation11_spill] sm:$0xff]  ;;  %v5980_v60 = vpack.c.bf16 %v2941_v25, %v2929_v51  ;;  %v7358_v54 = vand.u32 4294901760, %v5676_v32  ;;  %v7369_v61 = vld [vmem:[#allocation33_spill] sm:$0xff] }
 0x10c   :  { %4286 = vmatpush1.bf16.msra.mxu1 %v7356_v4  ;;  %v5990_v14 = vsub.f32 %v5680_v42, %v7359_v62  ;;  %v5995_v46 = vsub.f32 %v5682_v17, %v7360_v29  ;;  %v7362_v4 = vld [vmem:[#allocation21_spill] sm:$0xff]  ;;  %v7363_v25 = vand.u32 4294901760, %v7349_v56  ;;  %v7365_v42 = vand.u32 4294901760, %v5693_v22  ;;  %v7379_v17 = vld [vmem:[#allocation6_spill] sm:$0xff] }
 0x10d   :  { %7357 = vst [vmem:[#allocation65_spill] sm:$0xff] %v5980_v60  ;;  %v5985_v7 = vsub.f32 %v5676_v32, %v7358_v54  ;;  %4288 = vmatprep.subr.bf16.mxu1 %v7361_v12  ;;  %v7364_v32 = vand.u32 4294901760, %v5691_v21  ;;  %v7373_v51 = vand.u32 4294901760, %v5699_v11  ;;  %v7397_v30 = vand.u32 4294901760, %v5761_v41 }
 0x10e   :  { %4098 = vmatpush1.bf16.msra.mxu0 %v7362_v4  ;;  %v6003_v54 = vsub.f32 %v7349_v56, %v7363_v25  ;;  %v6013_v29 = vsub.f32 %v5693_v22, %v7365_v42  ;;  %v7366_v25 = vld [vmem:[#allocation35_spill] sm:$0xff]  ;;  %v7367_v42 = vld [vmem:[#allocation24_spill] sm:$0xff] }
 0x10f   :  { %v6008_v62 = vsub.f32 %v5691_v21, %v7364_v32  ;;  %4100 = vmatprep.subr.bf16.mxu0 %v5695_v34  ;;  %v6943_v21 = vand.u32 4294901760, %v5724_v6  ;;  %v7368_v22 = vld [vmem:[#allocation39_spill] sm:$0xff]  ;;  %v7371_v34 = vand.u32 4294901760, %v5728_v20  ;;  %v6044_v4 = vsub.f32 %v5699_v11, %v7373_v51  ;;  %v1813_v51 = vld [vmem:[%s6653_s2 + $0x8] sm:$0xff] }
 0x110   :  { %4290 = vmatpush1.bf16.msra.mxu1 %v7367_v42  ;;  %v7370_v56 = vld [vmem:[#allocation7_spill] sm:$0xff]  ;;  %v7374_v12 = vand.u32 4294901760, %v7366_v25  ;;  %v7377_v11 = vld [vmem:[#allocation54_spill] sm:$0xff] }
 0x111   :  { %4292 = vmatprep.subr.bf16.mxu1 %v7369_v61  ;;  %v6038_v42 = vpack.c.bf16 %v7371_v34, %v6943_v21  ;;  %v7375_v34 = vld [vmem:[#allocation10_spill] sm:$0xff]  ;;  %v7381_v21 = vand.u32 4294901760, %v5737_v44 }
 0x112   :  { %4102 = vmatpush1.bf16.msra.mxu0 %v7370_v56  ;;  %v6049_v32 = vsub.f32 %v7366_v25, %v7374_v12  ;;  %v7378_v12 = vand.u32 4294901760, %v7368_v22  ;;  %v7380_v56 = vld [vmem:[#allocation70_spill] sm:$0xff]  ;;  %v7388_v25 = vand.u32 4294901760, %v7375_v34 }
 0x113   :  { %7372 = vst [vmem:[#allocation91_spill] sm:$0xff] %v6038_v42  ;;  %4104 = vmatprep.subr.bf16.mxu0 %v5730_v59  ;;  %v7376_v59 = vld [vmem:[#allocation29_spill] sm:$0xff]  ;;  %v7382_v42 = vand.u32 4294901760, %v5741_v53 }
 0x114   :  { %4294 = vmatpush1.bf16.msra.mxu1 %v7377_v11  ;;  %v6064_v37 = vsub.f32 %v7368_v22, %v7378_v12  ;;  %v7386_v11 = vld [vmem:[#allocation42_spill] sm:$0xff]  ;;  %v7387_v12 = vand.u32 4294901760, %v5745_v5  ;;  %v7391_v60 = vand.u32 4294901760, %v7376_v59 }
 0x115   :  { %v6072_v61 = vpack.c.bf16 %v7382_v42, %v7381_v21  ;;  %4296 = vmatprep.subr.bf16.mxu1 %v7384_v19  ;;  %v7393_v42 = vld [vmem:[#allocation68_spill] sm:$0xff]  ;;  %v6094_v19 = vand.u32 4294901760, %v1813_v51 }
 0x116   :  { %4106 = vmatpush1.bf16.msra.mxu0 %v7385_v49  ;;  %v6082_v22 = vpack.c.bf16 %v7388_v25, %v7387_v12  ;;  %v6088_v21 = vpack.c.bf16 %v7391_v60, %v7390_v38  ;;  %v7394_v49 = vld [vmem:[#allocation71_spill] sm:$0xff]  ;;  %v7396_v38 = vld [vmem:[#allocation12_spill] sm:$0xff]  ;;  %v2073_v60 = vand.u32 4294901760, %v6044_v4  ;;  %v7398_v3 = vand.u32 4294901760, %v7393_v42 }
 0x117   :  { %7383 = vst [vmem:[#allocation10_spill] sm:$0xff] %v6072_v61  ;;  %4108 = vmatprep.subr.bf16.mxu0 %v5759_v31  ;;  %7395 = vst [vmem:[#allocation71_spill] sm:$0xff] %v6094_v19  ;;  %v2085_v61 = vand.u32 4294901760, %v6049_v32  ;;  %v7400_v8 = vand.u32 4294901760, %v7394_v49  ;;  %v7401_v25 = vand.u32 4294901760, %v5770_v35  ;;  %v7403_v12 = vld [vmem:[#allocation72_spill] sm:$0xff] }
 0x118   :  { %7389 = vst [vmem:[#allocation29_spill] sm:$0xff] %v6082_v22  ;;  %7392 = vst [vmem:[#allocation92_spill] sm:$0xff] %v6088_v21  ;;  %4298 = vmatpush1.bf16.msra.mxu1 %v7396_v38  ;;  %v6107_v21 = vpack.c.bf16 %v7398_v3, %v7397_v30  ;;  %v7404_v22 = vld [vmem:[#allocation73_spill] sm:$0xff]  ;;  %v7405_v4 = vand.u32 4294901760, %v7379_v17  ;;  %v7406_v42 = vand.u32 4294901760, %v5776_v16  ;;  %v7407_v30 = vand.u32 4294901760, %v5779_v43 }
 0x119   :  { %v6113_v31 = vpack.c.bf16 %v7401_v25, %v7400_v8  ;;  %4300 = vmatprep.subr.bf16.mxu1 %v7403_v12  ;;  %v7410_v8 = vand.u32 4294901760, %v5785_v2  ;;  %v7414_v12 = vld [vmem:[#allocation85_spill] sm:$0xff]  ;;  %v7415_v2 = vld [vmem:[#allocation86_spill] sm:$0xff]  ;;  %v7418_v38 = vand.u32 4294901760, %v5789_v40 }
 0x11a   :  { %7399 = vst [vmem:[#allocation93_spill] sm:$0xff] %v6107_v21  ;;  %4110 = vmatpush1.bf16.msra.mxu0 %v7404_v22  ;;  %v2988_v32 = vsub.f32 %v7379_v17, %v7405_v4  ;;  %v6125_v3 = vpack.c.bf16 %v7407_v30, %v7406_v42  ;;  %v7409_v21 = vand.u32 4294901760, %v5783_v1  ;;  %v6138_v22 = vsub.f32 %v1813_v51, %v6094_v19  ;;  %v7413_v30 = vld [vmem:[#allocation83_spill] sm:$0xff] }
 0x11b   :  { %7402 = vst [vmem:[#allocation94_spill] sm:$0xff] %v6113_v31  ;;  %4112 = vmatprep.subr.bf16.mxu0 %v5787_v28  ;;  %v7417_v31 = vand.u32 4294901760, %v7380_v56  ;;  %v7419_v51 = vand.u32 4294901760, %v5792_v55  ;;  %v7422_v17 = vand.u32 4294901760, %v5798_v63  ;;  %v7428_v55 = vand.u32 4294901760, %v5804_v33  ;;  %v7436_v63 = vld [vmem:[#allocation44_spill] sm:$0xff] }
 0x11c   :  { %7408 = vst [vmem:[#allocation95_spill] sm:$0xff] %v6125_v3  ;;  %v6131_v25 = vpack.c.bf16 %v7410_v8, %v7409_v21  ;;  %7412 = vst [vmem:[#allocation97_spill] sm:$0xff] %v6138_v22  ;;  %v7416_v8 = vld [vmem:[#allocation75_spill] sm:$0xff]  ;;  %v7421_v3 = vand.u32 4294901760, %v5796_v52  ;;  %v6184_v33 = vand.u32 4294901760, %v6138_v22 }
 0x11d   :  { %4302 = vmatpush1.bf16.msra.mxu1 %v7416_v8  ;;  %v2078_v4 = vsub.f32 %v7380_v56, %v7417_v31  ;;  %v6153_v28 = vpack.c.bf16 %v7419_v51, %v7418_v38  ;;  %v7424_v21 = vld [vmem:[#allocation79_spill] sm:$0xff]  ;;  %v7425_v8 = vld [vmem:[#allocation81_spill] sm:$0xff]  ;;  %v7429_v38 = vand.u32 4294901760, %v7413_v30 }
 0x11e   :  { %7411 = vst [vmem:[#allocation96_spill] sm:$0xff] %v6131_v25  ;;  %v2977_v25 = vand.u32 4294901760, %v6064_v37  ;;  %v6159_v42 = vpack.c.bf16 %v7422_v17, %v7421_v3  ;;  %4304 = vmatprep.subr.bf16.mxu1 %v7424_v21  ;;  %4114 = vmatpush1.bf16.msra.mxu0 %v7425_v8  ;;  %v7426_v37 = vand.u32 4294901760, %v7386_v11  ;;  %v7427_v56 = vld [vmem:[#allocation41_spill] sm:$0xff]  ;;  %v7432_v17 = vand.u32 4294901760, %v7415_v2  ;;  %v7435_v8 = vld [vmem:[#allocation88_spill] sm:$0xff] }
 0x11f   :  { %7420 = vst [vmem:[#allocation98_spill] sm:$0xff] %v6153_v28  ;;  %v6171_v51 = vpack.c.bf16 %v7429_v38, %v7428_v55  ;;  %v7431_v28 = vand.u32 4294901760, %v7414_v12  ;;  %7438 = vst [vmem:[#allocation88_spill] sm:$0xff] %v6184_v33  ;;  %v7442_v19 = vand.u32 4294901760, %v7435_v8  ;;  %v7444_v12 = vand.u32 4294901760, %v7436_v63 }
 0x120   :  { %7423 = vst [vmem:[#allocation99_spill] sm:$0xff] %v6159_v42  ;;  %v2090_v31 = vsub.f32 %v7386_v11, %v7426_v37  ;;  %v7434_v42 = vld [vmem:[#allocation47_spill] sm:$0xff]  ;;  %v7437_v11 = vld [vmem:[#allocation53_spill] sm:$0xff]  ;;  %v7441_v37 = vand.u32 4294901760, %v7427_v56  ;;  %v7449_v21 = vand.u32 4294901760, %v5871_v10  ;;  %v7450_v56 = vand.u32 4294901760, %v5890_v26 }
 0x121   :  { %7430 = vst [vmem:[#allocation100_spill] sm:$0xff] %v6171_v51  ;;  %v6177_v3 = vpack.c.bf16 %v7432_v17, %v7431_v28  ;;  %4116 = vmatprep.subr.bf16.mxu0 %v7434_v42  ;;  %v7439_v17 = vld [vmem:[#allocation84_spill] sm:$0xff]  ;;  %v7445_v55 = vand.u32 4294901760, %v7437_v11  ;;  %v7447_v51 = vld [vmem:[#allocation89_spill] sm:$0xff]  ;;  %v7448_v28 = vld [vmem:[#allocation58_spill] sm:$0xff] }
 0x122   :  { %4306 = vmatpush1.bf16.msra.mxu1 %v7439_v17  ;;  %v7440_v42 = vld [vmem:[#allocation56_spill] sm:$0xff]  ;;  %v6196_v2 = vpack.c.bf16 %v7442_v19, %v7441_v37  ;;  %4118 = vmatpush1.bf16.msra.mxu0 %v7448_v28  ;;  %v2079_v17 = vand.u32 4294901760, %v2078_v4  ;;  %v6210_v30 = vpack.c.bf16 %v7450_v56, %v7449_v21  ;;  %v7452_v19 = vand.u32 4294901760, %v5898_v27  ;;  %v7459_v56 = vld [vmem:[#allocation57_spill] sm:$0xff] }
 0x123   :  { %7433 = vst [vmem:[#allocation101_spill] sm:$0xff] %v6177_v3  ;;  %v2989_v3 = vand.u32 4294901760, %v2988_v32  ;;  %v6202_v38 = vpack.c.bf16 %v7445_v55, %v7444_v12  ;;  %4308 = vmatprep.subr.bf16.mxu1 %v7447_v51  ;;  %v2091_v32 = vand.u32 4294901760, %v2090_v31  ;;  %v7453_v37 = vand.u32 4294901760, %v5900_v39  ;;  %4120 = vmatprep.subr.bf16.mxu0 %v5910_v15 }
 0x124   :  { %7443 = vst [vmem:[#allocation44_spill] sm:$0xff] %v6196_v2  ;;  %7451 = vst [vmem:[#allocation56_spill] sm:$0xff] %v6210_v30  ;;  %v7455_v12 = vand.u32 4294901760, %v5929_v18  ;;  %v7456_v55 = vand.u32 4294901760, %v5946_v23  ;;  %v7457_v31 = vand.u32 4294901760, %v5959_v13  ;;  %v1989_v30 = vsub.f32 %v6138_v22, %v6184_v33 }
 0x125   :  { %7446 = vst [vmem:[#allocation53_spill] sm:$0xff] %v6202_v38  ;;  %v6216_v2 = vpack.c.bf16 %v7453_v37, %v7452_v19  ;;  %v7458_v38 = vand.u32 4294901760, %v5964_v47  ;;  %v7460_v19 = vand.u32 4294901760, %v5972_v9  ;;  %v7461_v37 = vand.u32 4294901760, %v5977_v50  ;;  %1980 = vmatmul.mubr.f32.vlgmr.msra.gmra.mrb[2].mxu0 %v5952_v0 }
 0x126   :  { %v4125_v4 = vpack.c.bf16 %v7456_v55, %v7455_v12  ;;  %v7462_v18 = vand.u32 4294901760, %v5985_v7  ;;  %v7463_v23 = vand.u32 4294901760, %v5990_v14  ;;  %v7464_v13 = vand.u32 4294901760, %v5995_v46  ;;  %4310 = vmatpush1.bf16.msra.mxu1 %v5892_v57  ;;  %4122 = vmatpush1.bf16.msra.mxu0 %v5921_v58 }
 0x127   :  { %7454 = vst [vmem:[#allocation102_spill] sm:$0xff] %v6216_v2  ;;  %v4317_v28 = vpack.c.bf16 %v7458_v38, %v7457_v31  ;;  %v4127_v15 = vpack.c.bf16 %v7461_v37, %v7460_v19  ;;  %v7465_v47 = vand.u32 4294901760, %v6003_v54  ;;  %v7466_v55 = vand.u32 4294901760, %v6008_v62  ;;  %4312 = vmatprep.subr.bf16.mxu1 %v5912_v36  ;;  %4124 = vmatprep.subr.bf16.mxu0 %v5966_v45 }
 0x128   :  { %v4319_v12 = vpack.c.bf16 %v7463_v23, %v7462_v18  ;;  %v7467_v31 = vand.u32 4294901760, %v6013_v29  ;;  %v4131_v9 = vpack.c.bf16 %v2085_v61, %v2073_v60  ;;  %v6250_v50 = vpack.c.bf16 %v2989_v3, %v2977_v25  ;;  %1985 = vmatprep.mubr.f32.mxu0 %v7057_v48 }
 0x129   :  { %v4129_v38 = vpack.c.bf16 %v7465_v47, %v7464_v13  ;;  %v7468_v14 = vand.u32 4294901760, %v5724_v6  ;;  %v6257_v7 = vpack.c.bf16 %v2091_v32, %v2079_v17  ;;  %v7469_v54 = vand.u32 4294901760, %v5728_v20  ;;  %2884 = vmatmul.mubr.f32.vlgmr.msra.gmra.mrb[2].mxu1 %v5952_v0 }
 0x12a   :  { %v6246_v21 = vpack.c.bf16 %v7467_v31, %v7466_v55  ;;  %v7470_v29 = vand.u32 4294901760, %v7440_v42  ;;  %v7471_v60 = vand.u32 4294901760, %v7459_v56  ;;  %v7472_v36 = vand.u32 4294901760, %v5737_v44  ;;  %v7478_v31 = vld [vmem:[#allocation62_spill] sm:$0xff]  ;;  %2889 = vmatprep.mubr.f32.mxu1 %v7057_v48  ;;  %4126 = vmatpush1.bf16.msra.mxu0 %v4125_v4 }
 0x12b   :  { %v2982_v46 = vsub.f32 %v5724_v6, %v7468_v14  ;;  %v2994_v62 = vsub.f32 %v5728_v20, %v7469_v54  ;;  %v7473_v3 = vand.u32 4294901760, %v5741_v53  ;;  %v1990_v32 = vand.u32 4294901760, %v1989_v30  ;;  %4314 = vmatpush1.bf16.msra.mxu1 %v7478_v31  ;;  %v7480_v14 = vld [vmem:[#allocation68_spill] sm:$0xff]  ;;  %4128 = vmatprep.subr.bf16.mxu0 %v4127_v15 }
 0x12c   :  { %v2096_v61 = vsub.f32 %v7440_v42, %v7470_v29  ;;  %v2108_v25 = vsub.f32 %v7459_v56, %v7471_v60  ;;  %v3000_v58 = vsub.f32 %v5737_v44, %v7472_v36  ;;  %v7474_v19 = vand.u32 4294901760, %v5745_v5 }
 0x12d   :  { %v3012_v17 = vsub.f32 %v5741_v53, %v7473_v3  ;;  %v7475_v37 = vand.u32 4294901760, %v7375_v34  ;;  %v7476_v23 = vand.u32 4294901760, %v5754_v24  ;;  %v7477_v47 = vand.u32 4294901760, %v7376_v59  ;;  %v7483_v3 = vld [vmem:[#allocation65_spill] sm:$0xff]  ;;  %1991 = vmatmul.mubr.f32.gmra.mrb[4].mxu0 %v1990_v32  ;;  %2895 = vmatmul.mubr.f32.gmra.mrb[4].mxu1 %v1990_v32 }
 0x12e   :  { %v2102_v45 = vsub.f32 %v5745_v5, %v7474_v19  ;;  %v7479_v0 = vand.u32 4294901760, %v5761_v41  ;;  %v7481_v54 = vand.u32 4294901760, %v7480_v14  ;;  %v7482_v60 = vand.u32 4294901760, %v7394_v49  ;;  %4316 = vmatprep.subr.bf16.mxu1 %v7483_v3  ;;  %2221 = vmatprep.mubr.f32.mxu0 %v7057_v48 }
 0x12f   :  { %v2114_v18 = vsub.f32 %v7375_v34, %v7475_v37  ;;  %v3006_v13 = vsub.f32 %v5754_v24, %v7476_v23  ;;  %v3018_v55 = vsub.f32 %v7376_v59, %v7477_v47  ;;  %v2983_v19 = vand.u32 4294901760, %v2982_v46  ;;  %4318 = vmatpush1.bf16.msra.mxu1 %v4317_v28  ;;  %3125 = vmatprep.mubr.f32.mxu1 %v7057_v48 }
 0x130   :  { %v2120_v30 = vsub.f32 %v5761_v41, %v7479_v0  ;;  %v2132_v29 = vsub.f32 %v7480_v14, %v7481_v54  ;;  %v3024_v36 = vsub.f32 %v7394_v49, %v7482_v60  ;;  %v7484_v37 = vand.u32 4294901760, %v5770_v35  ;;  %4320 = vmatprep.subr.bf16.mxu1 %v4319_v12  ;;  %4130 = vmatpush1.bf16.msra.mxu0 %v4129_v38  ;;  %v7491_v38 = vld [vmem:[#allocation76_spill] sm:$0xff] }
 0x131   :  { %v7485_v47 = vand.u32 4294901760, %v5776_v16  ;;  %v7486_v0 = vand.u32 4294901760, %v5779_v43  ;;  %v2995_v60 = vand.u32 4294901760, %v2994_v62  ;;  %v2097_v2 = vand.u32 4294901760, %v2096_v61  ;;  %4132 = vmatprep.subr.bf16.mxu0 %v4131_v9  ;;  %v7494_v9 = vld [vmem:[#allocation80_spill] sm:$0xff] }
 0x132   :  { %v3036_v23 = vsub.f32 %v5770_v35, %v7484_v37  ;;  %v2109_v33 = vand.u32 4294901760, %v2108_v25  ;;  %v3001_v57 = vand.u32 4294901760, %v3000_v58  ;;  %v3013_v4 = vand.u32 4294901760, %v3012_v17 }
 0x133   :  { %v2126_v31 = vsub.f32 %v5776_v16, %v7485_v47  ;;  %v2138_v54 = vsub.f32 %v5779_v43, %v7486_v0  ;;  %v2103_v46 = vand.u32 4294901760, %v2102_v45  ;;  %v2115_v3 = vand.u32 4294901760, %v2114_v18  ;;  %v7489_v18 = vld [vmem:[#allocation78_spill] sm:$0xff]  ;;  %4322 = vmatpush1.bf16.msra.mxu1 %v6246_v21 }
 0x134   :  { %v3007_v51 = vand.u32 4294901760, %v3006_v13  ;;  %v3019_v37 = vand.u32 4294901760, %v3018_v55  ;;  %v2121_v47 = vand.u32 4294901760, %v2120_v30  ;;  %v2133_v22 = vand.u32 4294901760, %v2132_v29  ;;  %v7496_v0 = vld [vmem:[#allocation82_spill] sm:$0xff]  ;;  %4324 = vmatprep.subr.bf16.mxu1 %v6250_v50  ;;  %4134 = vmatpush1.bf16.msra.mxu0 %v6257_v7 }
 0x135   :  { %v3025_v16 = vand.u32 4294901760, %v3024_v36  ;;  %v3037_v15 = vand.u32 4294901760, %v3036_v23  ;;  %v2127_v62 = vand.u32 4294901760, %v2126_v31  ;;  %v2139_v61 = vand.u32 4294901760, %v2138_v54 }
 0x136   :  { %v7487_v25 = vand.u32 4294901760, %v5783_v1  ;;  %v4325_v17 = vpack.c.bf16 %v2995_v60, %v2983_v19  ;;  %v4135_v32 = vpack.c.bf16 %v2109_v33, %v2097_v2  ;;  %v7488_v28 = vand.u32 4294901760, %v5789_v40  ;;  %v7498_v60 = vld [vmem:[#allocation83_spill] sm:$0xff] }
 0x137   :  { %v7490_v13 = vand.u32 4294901760, %v7489_v18  ;;  %v4327_v12 = vpack.c.bf16 %v3013_v4, %v3001_v57  ;;  %v7492_v30 = vand.u32 4294901760, %v7491_v38  ;;  %v7493_v36 = vand.u32 4294901760, %v5796_v52 }
 0x138   :  { %v3030_v58 = vsub.f32 %v5783_v1, %v7487_v25  ;;  %v2144_v45 = vsub.f32 %v5789_v40, %v7488_v28  ;;  %v7495_v19 = vand.u32 4294901760, %v7494_v9  ;;  %v4137_v33 = vpack.c.bf16 %v2115_v3, %v2103_v46  ;;  %4136 = vmatprep.subr.bf16.mxu0 %v4135_v32  ;;  %4326 = vmatpush1.bf16.msra.mxu1 %v4325_v17 }
 0x139   :  { %v2156_v55 = vsub.f32 %v7489_v18, %v7490_v13  ;;  %v3042_v29 = vsub.f32 %v7491_v38, %v7492_v30  ;;  %v3048_v23 = vsub.f32 %v5796_v52, %v7493_v36  ;;  %v4329_v31 = vpack.c.bf16 %v3019_v37, %v3007_v51  ;;  %v7500_v51 = vld [vmem:[#allocation41_spill] sm:$0xff]  ;;  %4328 = vmatprep.subr.bf16.mxu1 %v4327_v12 }
 0x13a   :  { %v3060_v2 = vsub.f32 %v7494_v9, %v7495_v19  ;;  %v7497_v54 = vand.u32 4294901760, %v7496_v0  ;;  %v7499_v4 = vand.u32 4294901760, %v7498_v60  ;;  %v4139_v28 = vpack.c.bf16 %v2133_v22, %v2121_v47  ;;  %4138 = vmatpush1.bf16.msra.mxu0 %v4137_v33 }
 0x13b   :  { %v4331_v13 = vpack.c.bf16 %v3037_v15, %v3025_v16  ;;  %v4141_v30 = vpack.c.bf16 %v2139_v61, %v2127_v62  ;;  %v3031_v36 = vand.u32 4294901760, %v3030_v58  ;;  %v2145_v21 = vand.u32 4294901760, %v2144_v45  ;;  %v7505_v15 = vld [vmem:[#allocation86_spill] sm:$0xff] }
 0x13c   :  { %v2150_v57 = vsub.f32 %v7496_v0, %v7497_v54  ;;  %v2162_v25 = vsub.f32 %v7498_v60, %v7499_v4  ;;  %v2157_v46 = vand.u32 4294901760, %v2156_v55  ;;  %v7501_v3 = vand.u32 4294901760, %v7500_v51  ;;  %v7503_v0 = vld [vmem:[#allocation85_spill] sm:$0xff]  ;;  %4140 = vmatprep.subr.bf16.mxu0 %v4139_v28  ;;  %4330 = vmatpush1.bf16.msra.mxu1 %v4329_v31 }
 0x13d   :  { %v7502_v19 = vand.u32 4294901760, %v7435_v8  ;;  %v3043_v4 = vand.u32 4294901760, %v3042_v29  ;;  %v3049_v60 = vand.u32 4294901760, %v3048_v23  ;;  %v3061_v50 = vand.u32 4294901760, %v3060_v2  ;;  %4332 = vmatprep.subr.bf16.mxu1 %v4331_v13 }
 0x13e   :  { %v2168_v37 = vsub.f32 %v7500_v51, %v7501_v3  ;;  %v7504_v7 = vand.u32 4294901760, %v7503_v0  ;;  %v2151_v16 = vand.u32 4294901760, %v2150_v57  ;;  %v2163_v47 = vand.u32 4294901760, %v2162_v25  ;;  %4142 = vmatpush1.bf16.msra.mxu0 %v4141_v30  ;;  %v7515_v30 = vld [vmem:[#allocation37_spill] sm:$0xff] }
 0x13f   :  { %v2180_v54 = vsub.f32 %v7435_v8, %v7502_v19  ;;  %v7506_v62 = vand.u32 4294901760, %v7505_v15  ;;  %v7507_v58 = vand.u32 4294901760, %v7436_v63  ;;  %v7508_v45 = vand.u32 4294901760, %v7437_v11 }
 0x140   :  { %v3054_v22 = vsub.f32 %v7503_v0, %v7504_v7  ;;  %v7509_v29 = vand.u32 4294901760, %v5871_v10  ;;  %v7510_v23 = vand.u32 4294901760, %v5890_v26  ;;  %v4143_v57 = vpack.c.bf16 %v2157_v46, %v2145_v21 }
 0x141   :  { %v3066_v61 = vsub.f32 %v7505_v15, %v7506_v62  ;;  %v3072_v32 = vsub.f32 %v7436_v63, %v7507_v58  ;;  %v3084_v55 = vsub.f32 %v7437_v11, %v7508_v45  ;;  %v2169_v25 = vand.u32 4294901760, %v2168_v37 }
 0x142   :  { %v2174_v17 = vsub.f32 %v5871_v10, %v7509_v29  ;;  %v2186_v2 = vsub.f32 %v5890_v26, %v7510_v23  ;;  %v2181_v3 = vand.u32 4294901760, %v2180_v54  ;;  %v4333_v19 = vpack.c.bf16 %v3043_v4, %v3031_v36  ;;  %4144 = vmatprep.subr.bf16.mxu0 %v4143_v57 }
 0x143   :  { %v4335_v7 = vpack.c.bf16 %v3061_v50, %v3049_v60  ;;  %v3055_v12 = vand.u32 4294901760, %v3054_v22  ;;  %v4145_v33 = vpack.c.bf16 %v2163_v47, %v2151_v16  ;;  %v3067_v62 = vand.u32 4294901760, %v3066_v61  ;;  %v7513_v22 = vld [vmem:[#allocation32_spill] sm:$0xff]  ;;  %v7514_v16 = vld [vmem:[#allocation34_spill] sm:$0xff] }
 0x144   :  { %v7511_v58 = vand.u32 4294901760, %v5898_v27  ;;  %v7512_v29 = vand.u32 4294901760, %v5900_v39  ;;  %v3073_v28 = vand.u32 4294901760, %v3072_v32  ;;  %v3085_v21 = vand.u32 4294901760, %v3084_v55  ;;  %4334 = vmatpush1.bf16.msra.mxu1 %v4333_v19  ;;  %v7516_v61 = vld [vmem:[#allocation38_spill] sm:$0xff]  ;;  %v7517_v55 = vld [vmem:[#allocation43_spill] sm:$0xff] }
 0x145   :  { %v2175_v46 = vand.u32 4294901760, %v2174_v17  ;;  %v2187_v37 = vand.u32 4294901760, %v2186_v2  ;;  %v4147_v60 = vpack.c.bf16 %v2181_v3, %v2169_v25  ;;  %v4337_v31 = vpack.c.bf16 %v3067_v62, %v3055_v12  ;;  %4336 = vmatprep.subr.bf16.mxu1 %v4335_v7  ;;  %4146 = vmatpush1.bf16.msra.mxu0 %v4145_v33  ;;  %v7518_v17 = vld [vmem:[#allocation45_spill] sm:$0xff]  ;;  %v7520_v2 = vld [vmem:[#allocation63_spill] sm:$0xff]  ;;  %v7522_v3 = vld [vmem:[#allocation46_spill] sm:$0xff] }
 0x146   :  { %v3078_v45 = vsub.f32 %v5898_v27, %v7511_v58  ;;  %v3090_v10 = vsub.f32 %v5900_v39, %v7512_v29  ;;  %v4339_v4 = vpack.c.bf16 %v3085_v21, %v3073_v28  ;;  %v4151_v47 = vpack.c.bf16 %v7514_v16, %v7513_v22  ;;  %v7521_v25 = vld [vmem:[#allocation87_spill] sm:$0xff]  ;;  %v7523_v19 = vld [vmem:[#allocation49_spill] sm:$0xff]  ;;  %v7524_v12 = vld [vmem:[#allocation66_spill] sm:$0xff] }
 0x147   :  { %v4149_v50 = vpack.c.bf16 %v2187_v37, %v2175_v46  ;;  %4148 = vmatprep.subr.bf16.mxu0 %v4147_v60  ;;  %v4343_v32 = vpack.c.bf16 %v7516_v61, %v7515_v30  ;;  %v4153_v23 = vpack.c.bf16 %v7518_v17, %v7517_v55  ;;  %v4345_v7 = vpack.c.bf16 %v7523_v19, %v7522_v3  ;;  %v7525_v33 = vld [vmem:[#allocation67_spill] sm:$0xff]  ;;  %v7526_v58 = vld [vmem:[#allocation69_spill] sm:$0xff]  ;;  %v7528_v28 = vld [vmem:[#allocation16_spill] sm:$0xff] }
 0x148   :  { %v3079_v36 = vand.u32 4294901760, %v3078_v45  ;;  %v3091_v54 = vand.u32 4294901760, %v3090_v10  ;;  %4338 = vmatpush1.bf16.msra.mxu1 %v4337_v31  ;;  %v7519_v10 = vld [vmem:[#allocation61_spill] sm:$0xff]  ;;  %v4347_v62 = vpack.c.bf16 %v7525_v33, %v7524_v12  ;;  %v7529_v21 = vld [vmem:[#allocation18_spill] sm:$0xff] }
 0x149   :  { %4340 = vmatprep.subr.bf16.mxu1 %v4339_v4  ;;  %4150 = vmatpush1.bf16.msra.mxu0 %v4149_v50  ;;  %v4155_v57 = vpack.c.bf16 %v7520_v2, %v7519_v10  ;;  %v7527_v45 = vld [vmem:[#allocation9_spill] sm:$0xff]  ;;  %v4159_v46 = vpack.c.bf16 %v7529_v21, %v7528_v28  ;;  %v7530_v37 = vld [vmem:[#allocation14_spill] sm:$0xff]  ;;  %v7538_v21 = vld [vmem:[#allocation71_spill] sm:$0xff] }
 0x14a   :  { %v4341_v13 = vpack.c.bf16 %v3091_v54, %v3079_v36  ;;  %4152 = vmatprep.subr.bf16.mxu0 %v4151_v47  ;;  %v4157_v29 = vpack.c.bf16 %v7527_v45, %v7526_v58  ;;  %v7531_v60 = vld [vmem:[#allocation13_spill] sm:$0xff]  ;;  %v7532_v36 = vld [vmem:[#allocation19_spill] sm:$0xff]  ;;  %v7533_v54 = vld [vmem:[#allocation20_spill] sm:$0xff] }
 0x14b   :  { %v4349_v31 = vpack.c.bf16 %v7531_v60, %v7530_v37  ;;  %v4351_v4 = vpack.c.bf16 %v7533_v54, %v7532_v36  ;;  %v7534_v50 = vld [vmem:[#allocation22_spill] sm:$0xff]  ;;  %v7535_v47 = vld [vmem:[#allocation23_spill] sm:$0xff] }
 0x14c   :  { %4342 = vmatpush1.bf16.msra.mxu1 %v4341_v13  ;;  %2223 = vmatmul.mubr.f32.vlgmr.msra.gmra.mrb[2].mxu0 %v7521_v25  ;;  %v4161_v13 = vpack.c.bf16 %v7535_v47, %v7534_v50  ;;  %v7542_v47 = vld [vmem:[#allocation6_spill] sm:$0xff] }
 0x14d   :  { %4344 = vmatprep.subr.bf16.mxu1 %v4343_v32  ;;  %4154 = vmatpush1.bf16.msra.mxu0 %v4153_v23  ;;  %v7536_v32 = vld [vmem:[#allocation30_spill] sm:$0xff]  ;;  %v7537_v23 = vld [vmem:[#allocation35_spill] sm:$0xff] }
 0x14e   :  { %4156 = vmatprep.subr.bf16.mxu0 %v4155_v57  ;;  %2228 = vmatprep.mubr.f32.mxu0 %v7057_v48  ;;  %v4163_v57 = vpack.c.bf16 %v7537_v23, %v7536_v32  ;;  %v7543_v50 = vld [vmem:[#allocation70_spill] sm:$0xff] }
 0x14f   :  { %3127 = vmatmul.mubr.f32.vlgmr.msra.gmra.mrb[2].mxu1 %v7521_v25  ;;  %v7541_v25 = vld [vmem:[#allocation39_spill] sm:$0xff]  ;;  %v7544_v54 = vld [vmem:[#allocation42_spill] sm:$0xff] }
 0x150   :  { %4346 = vmatpush1.bf16.msra.mxu1 %v4345_v7  ;;  %3132 = vmatprep.mubr.f32.mxu1 %v7057_v48  ;;  %v7539_v7 = vld [vmem:[#allocation26_spill] sm:$0xff]  ;;  %v4165_v23 = vpack.c.bf16 %v7544_v54, %v7543_v50  ;;  %v4171_v54 = vpack.c.bf16 %v7480_v14, %v5761_v41  ;;  %v7551_v14 = vld [vmem:[#allocation36_spill] sm:$0xff] }
 0x151   :  { %4348 = vmatprep.subr.bf16.mxu1 %v4347_v62  ;;  %4158 = vmatpush1.bf16.msra.mxu0 %v4157_v29  ;;  %v7540_v62 = vld [vmem:[#allocation25_spill] sm:$0xff] }
 0x152   :  { %4160 = vmatprep.subr.bf16.mxu0 %v4159_v46  ;;  %2230 = vmatmul.mubr.f32.gmra.mrb[4].mxu0 %v7538_v21  ;;  %v4353_v29 = vpack.c.bf16 %v7540_v62, %v7539_v7  ;;  %v4355_v46 = vpack.c.bf16 %v7542_v47, %v7541_v25 }
 0x153   :  { %3134 = vmatmul.mubr.f32.gmra.mrb[4].mxu1 %v7538_v21  ;;  %2364 = vmatprep.mubr.f32.mxu0 %v7057_v48  ;;  %v4167_v21 = vpack.c.bf16 %v7459_v56, %v7440_v42 }
 0x154   :  { %4350 = vmatpush1.bf16.msra.mxu1 %v4349_v31  ;;  %3268 = vmatprep.mubr.f32.mxu1 %v7057_v48  ;;  %v4357_v31 = vpack.c.bf16 %v5728_v20, %v5724_v6  ;;  %v4363_v6 = vpack.c.bf16 %v5770_v35, %v7394_v49  ;;  %v7545_v20 = vld [vmem:[#allocation74_spill] sm:$0xff]  ;;  %v4369_v35 = vpack.c.bf16 %v7505_v15, %v7503_v0  ;;  %v7560_v0 = vld [vmem:[#allocation17_spill] sm:$0xff]  ;;  %v7562_v15 = vld [vmem:[#allocation28_spill] sm:$0xff] }
 0x155   :  { %4352 = vmatprep.subr.bf16.mxu1 %v4351_v4  ;;  %4162 = vmatpush1.bf16.msra.mxu0 %v4161_v13  ;;  %v4359_v4 = vpack.c.bf16 %v5741_v53, %v5737_v44  ;;  %v4169_v13 = vpack.c.bf16 %v7375_v34, %v5745_v5  ;;  %v4175_v44 = vpack.c.bf16 %v7489_v18, %v5789_v40  ;;  %v7546_v5 = vld [vmem:[#allocation82_spill] sm:$0xff]  ;;  %v7549_v34 = vld [vmem:[#allocation31_spill] sm:$0xff]  ;;  %v7552_v18 = vld [vmem:[#allocation40_spill] sm:$0xff] }
 0x156   :  { %4164 = vmatprep.subr.bf16.mxu0 %v4163_v57  ;;  %v4361_v57 = vpack.c.bf16 %v7376_v59, %v5754_v24  ;;  %v4365_v53 = vpack.c.bf16 %v7491_v38, %v5783_v1  ;;  %v4367_v59 = vpack.c.bf16 %v7494_v9, %v5796_v52  ;;  %v7547_v24 = vld [vmem:[#allocation83_spill] sm:$0xff]  ;;  %v4371_v1 = vpack.c.bf16 %v7437_v11, %v7436_v63  ;;  %v7548_v40 = vld [vmem:[#allocation90_spill] sm:$0xff]  ;;  %v7554_v63 = vld [vmem:[#allocation48_spill] sm:$0xff] }
 0x157   :  { %v4177_v41 = vpack.c.bf16 %v7547_v24, %v7546_v5  ;;  %v4181_v49 = vpack.c.bf16 %v5890_v26, %v7548_v40  ;;  %v4373_v52 = vpack.c.bf16 %v5900_v39, %v5898_v27  ;;  %v7553_v11 = vld [vmem:[#allocation50_spill] sm:$0xff]  ;;  %v7555_v27 = vld [vmem:[#allocation64_spill] sm:$0xff]  ;;  %v7556_v26 = vld [vmem:[#allocation5_spill] sm:$0xff] }
 0x158   :  { %4354 = vmatpush1.bf16.msra.mxu1 %v4353_v29  ;;  %v7557_v39 = vld [vmem:[#allocation15_spill] sm:$0xff]  ;;  %v7558_v38 = vld [vmem:[#allocation97_spill] sm:$0xff] }
 0x159   :  { %4356 = vmatprep.subr.bf16.mxu1 %v4355_v46  ;;  %4166 = vmatpush1.bf16.msra.mxu0 %v4165_v23  ;;  %v4173_v23 = vpack.c.bf16 %v5779_v43, %v7545_v20  ;;  %v4179_v43 = vpack.c.bf16 %v7435_v8, %v7500_v51  ;;  %v7550_v8 = vld [vmem:[#allocation51_spill] sm:$0xff]  ;;  %v7561_v51 = vld [vmem:[#allocation21_spill] sm:$0xff]  ;;  %v7566_v46 = vld [vmem:[#allocation52_spill] sm:$0xff] }
 0x15a   :  { %4168 = vmatprep.subr.bf16.mxu0 %v4167_v21  ;;  %v7559_v9 = vld [vmem:[#allocation11_spill] sm:$0xff]  ;;  %v7563_v21 = vld [vmem:[#allocation24_spill] sm:$0xff]  ;;  %v7577_v5 = vld [vmem:[#allocation81_spill] sm:$0xff] }
 0x15b   :  { %v7565_v29 = vld [vmem:[#allocation7_spill] sm:$0xff]  ;;  %v7572_v20 = vld [vmem:[#allocation72_spill] sm:$0xff]  ;;  %v7582_v40 = vld [vmem:[#allocation89_spill] sm:$0xff] }
 0x15c   :  { %4358 = vmatpush1.bf16.msra.mxu1 %v4357_v31  ;;  %v7567_v31 = vld [vmem:[#allocation54_spill] sm:$0xff]  ;;  %v7578_v24 = vld [vmem:[#allocation47_spill] sm:$0xff] }
 0x15d   :  { %4360 = vmatprep.subr.bf16.mxu1 %v4359_v4  ;;  %4170 = vmatpush1.bf16.msra.mxu0 %v4169_v13  ;;  %v7568_v4 = vld [vmem:[#allocation8_spill] sm:$0xff]  ;;  %v7569_v13 = vld [vmem:[#allocation59_spill] sm:$0xff] }
 0x15e   :  { %4172 = vmatprep.subr.bf16.mxu0 %v4171_v54  ;;  %v7564_v54 = vld [vmem:[#allocation33_spill] sm:$0xff] }
 0x160   :  { %4362 = vmatpush1.bf16.msra.mxu1 %v4361_v57  ;;  %v7570_v57 = vld [vmem:[#allocation27_spill] sm:$0xff] }
 0x161   :  { %4364 = vmatprep.subr.bf16.mxu1 %v4363_v6  ;;  %4174 = vmatpush1.bf16.msra.mxu0 %v4173_v23  ;;  %v7571_v6 = vld [vmem:[#allocation12_spill] sm:$0xff]  ;;  %v7573_v23 = vld [vmem:[#allocation73_spill] sm:$0xff] }
 0x162   :  { %4176 = vmatprep.subr.bf16.mxu0 %v4175_v44  ;;  %v7574_v44 = vld [vmem:[#allocation77_spill] sm:$0xff] }
 0x164   :  { %4366 = vmatpush1.bf16.msra.mxu1 %v4365_v53  ;;  %v7575_v53 = vld [vmem:[#allocation75_spill] sm:$0xff] }
 0x165   :  { %4368 = vmatprep.subr.bf16.mxu1 %v4367_v59  ;;  %4178 = vmatpush1.bf16.msra.mxu0 %v4177_v41  ;;  %v7576_v59 = vld [vmem:[#allocation79_spill] sm:$0xff]  ;;  %v7579_v41 = vand.u32 4294901760, %v7513_v22  ;;  %v7588_v22 = vand.u32 4294901760, %v7519_v10  ;;  %v7596_v10 = vand.u32 4294901760, %v7526_v58  ;;  %v7603_v58 = vand.u32 4294901760, %v7532_v36 }
 0x166   :  { %4180 = vmatprep.subr.bf16.mxu0 %v4179_v43  ;;  %v7580_v43 = vand.u32 4294901760, %v7514_v16  ;;  %v7589_v16 = vand.u32 4294901760, %v7520_v2  ;;  %v7597_v2 = vand.u32 4294901760, %v7527_v45  ;;  %v7604_v45 = vld [vmem:[#allocation20_spill] sm:$0xff]  ;;  %v7614_v36 = vand.u32 4294901760, %v7539_v7 }
 0x167   :  { %v7621_v7 = vand.u32 4294901760, %v7440_v42  ;;  %v7629_v42 = vld [vmem:[#allocation95_spill] sm:$0xff] }
 0x168   :  { %4370 = vmatpush1.bf16.msra.mxu1 %v4369_v35  ;;  %v4215_v35 = vpack.c.bf16 %v7580_v43, %v7579_v41  ;;  %v4219_v41 = vpack.c.bf16 %v7589_v16, %v7588_v22  ;;  %v7590_v43 = vld [vmem:[#allocation60_spill] sm:$0xff] }
 0x169   :  { %4372 = vmatprep.subr.bf16.mxu1 %v4371_v1  ;;  %4182 = vmatpush1.bf16.msra.mxu0 %v4181_v49  ;;  %v7581_v1 = vld [vmem:[#allocation84_spill] sm:$0xff]  ;;  %v7583_v49 = vld [vmem:[#allocation58_spill] sm:$0xff] }
 0x16a   :  { %4184 = vmatprep.subr.bf16.mxu0 %v7549_v34 }
 0x16c   :  { %4374 = vmatpush1.bf16.msra.mxu1 %v4373_v52  ;;  %2367 = vmatmul.mubr.f32.vlgmr.msra.gmra.mrb[2].mxu0 %v7550_v8  ;;  %v7584_v52 = vand.u32 4294901760, %v7515_v30  ;;  %v7592_v30 = vand.u32 4294901760, %v7522_v3 }
 0x16d   :  { %4376 = vmatprep.subr.bf16.mxu1 %v7551_v14  ;;  %4186 = vmatpush1.bf16.msra.mxu0 %v7552_v18 }
 0x16e   :  { %4188 = vmatprep.subr.bf16.mxu0 %v7553_v11  ;;  %2372 = vmatprep.mubr.f32.mxu0 %v7057_v48 }
 0x16f   :  { %3271 = vmatmul.mubr.f32.vlgmr.msra.gmra.mrb[2].mxu1 %v7550_v8  ;;  %v7585_v8 = vand.u32 4294901760, %v7516_v61  ;;  %v7593_v61 = vand.u32 4294901760, %v7523_v19  ;;  %v7601_v19 = vand.u32 4294901760, %v7530_v37  ;;  %v7610_v37 = vand.u32 4294901760, %v7536_v32 }
 0x170   :  { %4378 = vmatpush1.bf16.msra.mxu1 %v7554_v63  ;;  %3276 = vmatprep.mubr.f32.mxu1 %v7057_v48  ;;  %v7616_v32 = vand.u32 4294901760, %v7541_v25  ;;  %v7624_v25 = vld [vmem:[#allocation10_spill] sm:$0xff] }
 0x171   :  { %4380 = vmatprep.subr.bf16.mxu1 %v7555_v27  ;;  %4190 = vmatpush1.bf16.msra.mxu0 %v7556_v26 }
 0x172   :  { %4192 = vmatprep.subr.bf16.mxu0 %v7557_v39  ;;  %2375 = vmatmul.mubr.f32.gmra.mrb[4].mxu0 %v7558_v38 }
 0x173   :  { %3279 = vmatmul.mubr.f32.gmra.mrb[4].mxu1 %v7558_v38  ;;  %2477 = vmatprep.mubr.f32.mxu0 %v7057_v48  ;;  %v4407_v38 = vpack.c.bf16 %v7585_v8, %v7584_v52  ;;  %v4409_v52 = vpack.c.bf16 %v7593_v61, %v7592_v30  ;;  %v7599_v8 = vld [vmem:[#allocation18_spill] sm:$0xff]  ;;  %v7611_v61 = vld [vmem:[#allocation35_spill] sm:$0xff] }
 0x174   :  { %4382 = vmatpush1.bf16.msra.mxu1 %v7559_v9  ;;  %3381 = vmatprep.mubr.f32.mxu1 %v7057_v48  ;;  %v7600_v3 = vand.u32 4294901760, %v7599_v8 }
 0x175   :  { %4384 = vmatprep.subr.bf16.mxu1 %v7560_v0  ;;  %4194 = vmatpush1.bf16.msra.mxu0 %v7561_v51 }
 0x176   :  { %4196 = vmatprep.subr.bf16.mxu0 %v7562_v15 }
 0x178   :  { %4386 = vmatpush1.bf16.msra.mxu1 %v7563_v21 }
 0x179   :  { %4388 = vmatprep.subr.bf16.mxu1 %v7564_v54  ;;  %4198 = vmatpush1.bf16.msra.mxu0 %v7565_v29 }
 0x17a   :  { %4200 = vmatprep.subr.bf16.mxu0 %v7566_v46 }
 0x17c   :  { %4390 = vmatpush1.bf16.msra.mxu1 %v7567_v31 }
 0x17d   :  { %4392 = vmatprep.subr.bf16.mxu1 %v7568_v4  ;;  %4202 = vmatpush1.bf16.msra.mxu0 %v7569_v13 }
 0x17e   :  { %4204 = vmatprep.subr.bf16.mxu0 %v7570_v57 }
 0x180   :  { %4394 = vmatpush1.bf16.msra.mxu1 %v7571_v6 }
 0x181   :  { %4396 = vmatprep.subr.bf16.mxu1 %v7572_v20  ;;  %4206 = vmatpush1.bf16.msra.mxu0 %v7573_v23 }
 0x182   :  { %4208 = vmatprep.subr.bf16.mxu0 %v7574_v44 }
 0x184   :  { %4398 = vmatpush1.bf16.msra.mxu1 %v7575_v53 }
 0x185   :  { %4400 = vmatprep.subr.bf16.mxu1 %v7576_v59  ;;  %4210 = vmatpush1.bf16.msra.mxu0 %v7577_v5  ;;  %v7586_v5 = vand.u32 4294901760, %v7517_v55  ;;  %v7594_v55 = vand.u32 4294901760, %v7524_v12  ;;  %v7602_v12 = vand.u32 4294901760, %v7531_v60  ;;  %v7612_v60 = vand.u32 4294901760, %v7611_v61 }
 0x186   :  { %4212 = vmatprep.subr.bf16.mxu0 %v7578_v24  ;;  %v7587_v24 = vand.u32 4294901760, %v7518_v17  ;;  %v7595_v17 = vand.u32 4294901760, %v7525_v33 }
 0x187   :  { %v4413_v33 = vpack.c.bf16 %v7602_v12, %v7601_v19  ;;  %v7623_v19 = vld [vmem:[#allocation91_spill] sm:$0xff]  ;;  %v7627_v12 = vld [vmem:[#allocation92_spill] sm:$0xff] }
 0x188   :  { %4402 = vmatpush1.bf16.msra.mxu1 %v7581_v1  ;;  %v4217_v59 = vpack.c.bf16 %v7587_v24, %v7586_v5  ;;  %v4411_v5 = vpack.c.bf16 %v7595_v17, %v7594_v55  ;;  %v4221_v24 = vpack.c.bf16 %v7597_v2, %v7596_v10  ;;  %v7613_v55 = vld [vmem:[#allocation88_spill] sm:$0xff]  ;;  %v7615_v17 = vand.u32 4294901760, %v7540_v62 }
 0x189   :  { %4404 = vmatprep.subr.bf16.mxu1 %v7582_v40  ;;  %4214 = vmatpush1.bf16.msra.mxu0 %v7583_v49  ;;  %v7591_v40 = vld [vmem:[#allocation55_spill] sm:$0xff]  ;;  %v7617_v10 = vand.u32 4294901760, %v7542_v47  ;;  %v7622_v62 = vand.u32 4294901760, %v7459_v56  ;;  %v7625_v47 = vld [vmem:[#allocation29_spill] sm:$0xff]  ;;  %v7630_v56 = vld [vmem:[#allocation98_spill] sm:$0xff] }
 0x18a   :  { %4216 = vmatprep.subr.bf16.mxu0 %v4215_v35  ;;  %v7598_v35 = vand.u32 4294901760, %v7528_v28  ;;  %v7605_v28 = vand.u32 4294901760, %v7604_v45  ;;  %v7632_v45 = vld [vmem:[#allocation99_spill] sm:$0xff] }
 0x18b   :  { %v4419_v2 = vpack.c.bf16 %v7617_v10, %v7616_v32 }
 0x18c   :  { %4406 = vmatpush1.bf16.msra.mxu1 %v7590_v43  ;;  %2481 = vmatmul.mubr.f32.vlgmr.msra.gmra.mrb[2].mxu0 %v7591_v40  ;;  %v4223_v22 = vpack.c.bf16 %v7600_v3, %v7598_v35  ;;  %v7619_v35 = vld [vmem:[#allocation42_spill] sm:$0xff] }
 0x18d   :  { %4408 = vmatprep.subr.bf16.mxu1 %v4407_v38  ;;  %4218 = vmatpush1.bf16.msra.mxu0 %v4217_v59  ;;  %v4415_v59 = vpack.c.bf16 %v7605_v28, %v7603_v58  ;;  %v7606_v38 = vld [vmem:[#allocation22_spill] sm:$0xff]  ;;  %v7620_v8 = vand.u32 4294901760, %v7619_v35  ;;  %v7631_v58 = vld [vmem:[#allocation96_spill] sm:$0xff] }
 0x18e   :  { %4220 = vmatprep.subr.bf16.mxu0 %v4219_v41  ;;  %2486 = vmatprep.mubr.f32.mxu0 %v7057_v48  ;;  %v7607_v16 = vand.u32 4294901760, %v7606_v38  ;;  %v7608_v41 = vld [vmem:[#allocation23_spill] sm:$0xff]  ;;  %v7633_v28 = vld [vmem:[#allocation100_spill] sm:$0xff]  ;;  %v7635_v38 = vld [vmem:[#allocation101_spill] sm:$0xff] }
 0x18f   :  { %3385 = vmatmul.mubr.f32.vlgmr.msra.gmra.mrb[2].mxu1 %v7591_v40  ;;  %v7609_v30 = vand.u32 4294901760, %v7608_v41  ;;  %v7637_v41 = vld [vmem:[#allocation56_spill] sm:$0xff] }
 0x190   :  { %4410 = vmatpush1.bf16.msra.mxu1 %v4409_v52  ;;  %3390 = vmatprep.mubr.f32.mxu1 %v7057_v48  ;;  %v4227_v52 = vpack.c.bf16 %v7612_v60, %v7610_v37 }
 0x191   :  { %4412 = vmatprep.subr.bf16.mxu1 %v4411_v5  ;;  %4222 = vmatpush1.bf16.msra.mxu0 %v4221_v24  ;;  %v4225_v40 = vpack.c.bf16 %v7609_v30, %v7607_v16  ;;  %v4417_v5 = vpack.c.bf16 %v7615_v17, %v7614_v36  ;;  %v7618_v24 = vand.u32 4294901760, %v7543_v50  ;;  %v7626_v50 = vld [vmem:[#allocation93_spill] sm:$0xff]  ;;  %v7638_v30 = vld [vmem:[#allocation102_spill] sm:$0xff] }
 0x192   :  { %4224 = vmatprep.subr.bf16.mxu0 %v4223_v22  ;;  %2490 = vmatmul.mubr.f32.gmra.mrb[4].mxu0 %v7613_v55  ;;  %v4231_v22 = vpack.c.bf16 %v7622_v62, %v7621_v7  ;;  %v7636_v16 = vld [vmem:[#allocation53_spill] sm:$0xff] }
 0x193   :  { %3394 = vmatmul.mubr.f32.gmra.mrb[4].mxu1 %v7613_v55  ;;  %2656 = vmatprep.mubr.f32.mxu0 %v7057_v48  ;;  %v4229_v3 = vpack.c.bf16 %v7620_v8, %v7618_v24 }
 0x194   :  { %4414 = vmatpush1.bf16.msra.mxu1 %v4413_v33  ;;  %3560 = vmatprep.mubr.f32.mxu1 %v7057_v48  ;;  %v7628_v33 = vld [vmem:[#allocation94_spill] sm:$0xff] }
 0x195   :  { %4416 = vmatprep.subr.bf16.mxu1 %v4415_v59  ;;  %4226 = vmatpush1.bf16.msra.mxu0 %v4225_v40  ;;  %v7634_v59 = vld [vmem:[#allocation44_spill] sm:$0xff]  ;;  %v7639_v40 = vld [vmem:[#allocation87_spill] sm:$0xff] }
 0x196   :  { %4228 = vmatprep.subr.bf16.mxu0 %v4227_v52 }
 0x198   :  { %4418 = vmatpush1.bf16.msra.mxu1 %v4417_v5 }
 0x199   :  { %4420 = vmatprep.subr.bf16.mxu1 %v4419_v2  ;;  %4230 = vmatpush1.bf16.msra.mxu0 %v4229_v3 }
 0x19a   :  { %4232 = vmatprep.subr.bf16.mxu0 %v4231_v22 }
 0x19c   :  { %4422 = vmatpush1.bf16.msra.mxu1 %v7623_v19 }
 0x19d   :  { %4424 = vmatprep.subr.bf16.mxu1 %v7624_v25  ;;  %4234 = vmatpush1.bf16.msra.mxu0 %v7625_v47 }
 0x19e   :  { %4236 = vmatprep.subr.bf16.mxu0 %v7626_v50 }
 0x1a0   :  { %4426 = vmatpush1.bf16.msra.mxu1 %v7627_v12 }
 0x1a1   :  { %4428 = vmatprep.subr.bf16.mxu1 %v7628_v33  ;;  %4238 = vmatpush1.bf16.msra.mxu0 %v7629_v42 }
 0x1a2   :  { %4240 = vmatprep.subr.bf16.mxu0 %v7630_v56 }
 0x1a4   :  { %4430 = vmatpush1.bf16.msra.mxu1 %v7631_v58 }
 0x1a5   :  { %4432 = vmatprep.subr.bf16.mxu1 %v7632_v45  ;;  %4242 = vmatpush1.bf16.msra.mxu0 %v7633_v28 }
 0x1a6   :  { %4244 = vmatprep.subr.bf16.mxu0 %v7634_v59 }
 0x1a8   :  { %4434 = vmatpush1.bf16.msra.mxu1 %v7635_v38 }
 0x1a9   :  { %4436 = vmatprep.subr.bf16.mxu1 %v7636_v16  ;;  %4246 = vmatpush1.bf16.msra.mxu0 %v7637_v41 }
 0x1aa   :  { %4248 = vmatprep.subr.bf16.mxu0 %v7549_v34  ;;  %v7640_v34 = vld [vmem:[#allocation71_spill] sm:$0xff] }
 0x1ac   :  { %4438 = vmatpush1.bf16.msra.mxu1 %v7638_v30  ;;  %2658 = vmatmul.mubr.f32.vlgmr.msra.gmra.mrb[2].mxu0 %v7639_v40 }
 0x1ad   :  { %4440 = vmatprep.subr.bf16.mxu1 %v7551_v14  ;;  %4250 = vmatpush1.bf16.msra.mxu0 %v7552_v18  ;;  %v7641_v14 = vld [vmem:[#allocation79_spill] sm:$0xff]  ;;  %v7642_v18 = vld [vmem:[#allocation81_spill] sm:$0xff] }
 0x1ae   :  { %4252 = vmatprep.subr.bf16.mxu0 %v7553_v11  ;;  %2663 = vmatprep.mubr.f32.mxu0 %v7057_v48  ;;  %v7643_v11 = vld [vmem:[#allocation47_spill] sm:$0xff] }
 0x1af   :  { %3562 = vmatmul.mubr.f32.vlgmr.msra.gmra.mrb[2].mxu1 %v7639_v40 }
 0x1b0   :  { %4442 = vmatpush1.bf16.msra.mxu1 %v7554_v63  ;;  %3567 = vmatprep.mubr.f32.mxu1 %v7057_v48  ;;  %v7644_v63 = vld [vmem:[#allocation89_spill] sm:$0xff] }
 0x1b1   :  { %4444 = vmatprep.subr.bf16.mxu1 %v7555_v27  ;;  %4254 = vmatpush1.bf16.msra.mxu0 %v7556_v26 }
 0x1b2   :  { %4256 = vmatprep.subr.bf16.mxu0 %v7557_v39  ;;  %2665 = vmatmul.mubr.f32.gmra.mrb[4].mxu0 %v7640_v34 }
 0x1b3   :  { %3569 = vmatmul.mubr.f32.gmra.mrb[4].mxu1 %v7640_v34  ;;  %2767 = vmatprep.mubr.f32.mxu0 %v7057_v48 }
 0x1b4   :  { %4446 = vmatpush1.bf16.msra.mxu1 %v7559_v9  ;;  %3671 = vmatprep.mubr.f32.mxu1 %v7057_v48 }
 0x1b5   :  { %4448 = vmatprep.subr.bf16.mxu1 %v7560_v0  ;;  %4258 = vmatpush1.bf16.msra.mxu0 %v7561_v51 }
 0x1b6   :  { %4260 = vmatprep.subr.bf16.mxu0 %v7562_v15 }
 0x1b8   :  { %4450 = vmatpush1.bf16.msra.mxu1 %v7563_v21 }
 0x1b9   :  { %4452 = vmatprep.subr.bf16.mxu1 %v7564_v54  ;;  %4262 = vmatpush1.bf16.msra.mxu0 %v7565_v29 }
 0x1ba   :  { %4264 = vmatprep.subr.bf16.mxu0 %v7566_v46 }
 0x1bc   :  { %4454 = vmatpush1.bf16.msra.mxu1 %v7567_v31 }
 0x1bd   :  { %4456 = vmatprep.subr.bf16.mxu1 %v7568_v4  ;;  %4266 = vmatpush1.bf16.msra.mxu0 %v7569_v13 }
 0x1be   :  { %4268 = vmatprep.subr.bf16.mxu0 %v7570_v57 }
 0x1c0   :  { %4458 = vmatpush1.bf16.msra.mxu1 %v7571_v6 }
 0x1c1   :  { %4460 = vmatprep.subr.bf16.mxu1 %v7572_v20  ;;  %4270 = vmatpush1.bf16.msra.mxu0 %v7573_v23 }
 0x1c2   :  { %4272 = vmatprep.subr.bf16.mxu0 %v7574_v44 }
 0x1c4   :  { %4462 = vmatpush1.bf16.msra.mxu1 %v7575_v53 }
 0x1c5   :  { %4464 = vmatprep.subr.bf16.mxu1 %v7641_v14  ;;  %4274 = vmatpush1.bf16.msra.mxu0 %v7642_v18 }
 0x1c6   :  { %4276 = vmatprep.subr.bf16.mxu0 %v7643_v11 }
 0x1c8   :  { %4466 = vmatpush1.bf16.msra.mxu1 %v7581_v1 }
 0x1c9   :  { %4468 = vmatprep.subr.bf16.mxu1 %v7644_v63  ;;  %4278 = vmatpush1.bf16.msra.mxu0 %v7583_v49 }
 0x1cc   :  { %4470 = vmatpush1.bf16.msra.mxu1 %v7590_v43  ;;  %2769 = vmatmul.mubr.f32.vlgmr.msra.gmra.mrb[2].mxu0 %v7639_v40 }
 0x1cd   :  { %2774 = vmatprep.mubr.f32.mxu0 %v7057_v48 }
 0x1cf   :  { %3673 = vmatmul.mubr.f32.vlgmr.msra.gmra.mrb[2].mxu1 %v7639_v40 }
 0x1d0   :  { %3678 = vmatprep.mubr.f32.mxu1 %v7057_v48  ;;  %2776 = vmatmul.mubr.f32.gmra.mrb[4].mxu0 %v7640_v34 }
 0x1d3   :  { %3680 = vmatmul.mubr.f32.gmra.mrb[4].mxu1 %v7640_v34 }
 0x1d8   :  { %v948_v27 = vpop.f32.mrb[0].mxu0 }
 0x1d9   :  { %1808 = vst [vmem:[%s6655_s4] sm:$0xff] %v948_v27  ;;  %v950_v26 = vpop.f32.mrb[1].mxu0 }
 0x1da   :  { %1809 = vst [vmem:[%s6655_s4 + $0x8] sm:$0xff] %v950_v26  ;;  %v1803_v39 = vpop.f32.mrb[0].mxu1 }
 0x1db   :  { %1810 = vst [vmem:[%s6655_s4 + $0x10] sm:$0xff] %v1803_v39  ;;  %v1805_v48 = vpop.f32.mrb[1].mxu1 }
 0x1dc   :  { %1811 = vst [vmem:[%s6655_s4 + $0x18] sm:$0xff] %v1805_v48 }
 0x29f   :  { %v2770_v9 = vpop.f32.mrb[2].mxu0 }
 0x2a0   :  { %3686 = vst [vmem:[%s6656_s5] sm:$0xff] %v2770_v9  ;;  %v2772_v0 = vpop.f32.mrb[3].mxu0 }
 0x2a1   :  { %3687 = vst [vmem:[%s6656_s5 + $0x8] sm:$0xff] %v2772_v0 }
 0x2a2   :  { %v3674_v51 = vpop.f32.mrb[2].mxu1 }
 0x2a3   :  { %3688 = vst [vmem:[%s6656_s5 + $0x10] sm:$0xff] %v3674_v51  ;;  %v3676_v15 = vpop.f32.mrb[3].mxu1  ;;  %v2777_v21 = vpop.f32.mrb[4].mxu0 }
 0x2a4   :  { %3689 = vst [vmem:[%s6656_s5 + $0x18] sm:$0xff] %v3676_v15  ;;  %3690 = vst [vmem:[%s6656_s5 + $0x20] sm:$0xff] %v2777_v21  ;;  %v2779_v54 = vpop.f32.mrb[5].mxu0 }
 0x2a5   :  { %3691 = vst [vmem:[%s6656_s5 + $0x28] sm:$0xff] %v2779_v54 }
 0x2a6   :  { %v3681_v29 = vpop.f32.mrb[4].mxu1 }
 0x2a7   :  { %3692 = vst [vmem:[%s6656_s5 + $0x30] sm:$0xff] %v3681_v29  ;;  %v3683_v46 = vpop.f32.mrb[5].mxu1 }
 0x2a8   :  { %3693 = vst [vmem:[%s6656_s5 + $0x38] sm:$0xff] %v3683_v46 }
 0x2a9   :  { %3702 = vsyncpa [#allocation3], 1 }

</bundles_post_ra>
